<compile_context>
chip_gen: v5e
topology: v5e:2x2
jax: 0.10.0
libtpu: 0.0.40
codegen_flags: <defaults>
</compile_context>

<pallas_src>
import functools

import numpy as np
import jax
import jax.numpy as jnp
from jax import lax
from jax.experimental import pallas as pl
from jax.experimental.pallas import tpu as pltpu

CONV_LEAKY_SLOPE = 0.1    # slope assumed for the conv() helper's LeakyReLU
BLOCK_LEAKY_SLOPE = 0.01  # nn.LeakyReLU() default used for the final activation


def _leaky(x, slope):
    return jnp.where(x >= 0, x, slope * x)


def basic_block_kernel(x_ref, mask_ref, w1_ref, b1_ref, w2_ref, b2_ref,
                       o_ref, mid_ref, *, H, W):
    # x_ref   : (1, Pin, Cp)  flattened zero-padded input slab, j = y*(W+2)+x
    # mask_ref: (L, 1)        1.0 for valid columns (x < W), 0.0 for wrap cols
    # w*_ref  : (9*Cp, Cp)    conv weights (HWIO, BN scale folded, flattened)
    # b*_ref  : (1, Cp)       folded batch-norm bias
    # o_ref   : (1, L, Cp)    output slab (garbage cols sliced off by wrapper)
    # mid_ref : VMEM (Pin, Cp) scratch: conv1 output re-embedded as padded slab
    Wp = W + 2
    L = H * Wp
    Cp = o_ref.shape[2]
    Pin = mid_ref.shape[0]

    # ---- conv1: im2col (K = 9*Cp) -> single MXU dot, + bias, + LeakyReLU -----
    patches1 = jnp.concatenate(
        [x_ref[0, kh * Wp + kw: kh * Wp + kw + L, :]
         for kh in range(3) for kw in range(3)], axis=1)           # (L, 9*Cp)
    acc1 = jnp.dot(patches1, w1_ref[...], preferred_element_type=jnp.float32)
    out1 = _leaky(acc1 + b1_ref[...], CONV_LEAKY_SLOPE)

    # Zero the wrap-around columns so they act as conv2's left/right padding.
    out1 = out1 * mask_ref[...]

    # ---- re-embed conv1 output as a zero-bordered flat slab (VMEM scratch) ---
    # Only the thin head/tail rows need explicit zeros; the interior (including
    # all border columns, which are already zero in out1) is overwritten.
    mid_ref[0:Wp + 1, :] = jnp.zeros((Wp + 1, Cp), jnp.float32)
    mid_ref[Wp + 1:Wp + 1 + L, :] = out1
    mid_ref[Wp + 1 + L:Pin, :] = jnp.zeros((Pin - Wp - 1 - L, Cp), jnp.float32)

    # ---- conv2: same im2col trick, BN2 scale folded, no activation -----------
    patches2 = jnp.concatenate(
        [mid_ref[kh * Wp + kw: kh * Wp + kw + L, :]
         for kh in range(3) for kw in range(3)], axis=1)           # (L, 9*Cp)
    acc2 = jnp.dot(patches2, w2_ref[...], preferred_element_type=jnp.float32)
    out2 = acc2 + b2_ref[...]

    # ---- residual add + final LeakyReLU --------------------------------------
    identity = x_ref[0, Wp + 1:Wp + 1 + L, :]
    o_ref[0] = _leaky(out2 + identity, BLOCK_LEAKY_SLOPE).astype(o_ref.dtype)


def basic_block_forward(x_nchw, params):
    w1, s1, b1 = params["w1"], params["s1"], params["b1"]
    w2, s2, b2 = params["w2"], params["s2"], params["b2"]
    N, Cin, H, W = x_nchw.shape
    Cout = w1.shape[-1]
    assert Cin == Cout, "identity path requires Cin == Cout (downsample=None)"

    Cp = ((max(Cin, Cout) + 127) // 128) * 128     # lane-dense channel count
    Wp = W + 2
    L = H * Wp                                     # output slab rows per image
    Pin = (H + 3) * Wp                             # input/mid slab rows (+tail)

    # NCHW -> NHWC, zero-pad spatial (1 top / 2 bottom rows, 1 col each side)
    # and channels up to the 128-lane boundary in a single pad, then flatten
    # (H, W) so channels sit on the lane axis everywhere inside the kernel.
    x_nhwc = jnp.transpose(x_nchw, (0, 2, 3, 1))
    x_slab = jnp.pad(
        x_nhwc, ((0, 0), (1, 2), (1, 1), (0, Cp - Cin))).reshape(N, Pin, Cp)

    def fold(w, s, b):
        wf = w * s[0][None, None, None, :]          # fold BN scale into weights
        wf = jnp.pad(wf, ((0, 0), (0, 0),
                          (0, Cp - w.shape[2]), (0, Cp - w.shape[3])))
        bf = jnp.pad(b, ((0, 0), (0, Cp - b.shape[1])))
        return wf.reshape(9 * Cp, Cp), bf

    w1f, b1f = fold(w1, s1, b1)
    w2f, b2f = fold(w2, s2, b2)

    # Static column-validity mask (x < W) for the flattened slab.
    col_idx = np.arange(L) % Wp
    mask = jnp.asarray((col_idx < W).astype(np.float32).reshape(L, 1))

    kernel = functools.partial(basic_block_kernel, H=H, W=W)

    out_slab = pl.pallas_call(
        kernel,
        out_shape=jax.ShapeDtypeStruct((N, L, Cp), x_nchw.dtype),
        grid_spec=pltpu.PrefetchScalarGridSpec(
            num_scalar_prefetch=0,
            grid=(N,),
            in_specs=[
                pl.BlockSpec((1, Pin, Cp), lambda n: (n, 0, 0)),
                pl.BlockSpec((L, 1), lambda n: (0, 0)),
                pl.BlockSpec((9 * Cp, Cp), lambda n: (0, 0)),
                pl.BlockSpec((1, Cp), lambda n: (0, 0)),
                pl.BlockSpec((9 * Cp, Cp), lambda n: (0, 0)),
                pl.BlockSpec((1, Cp), lambda n: (0, 0)),
            ],
            out_specs=pl.BlockSpec((1, L, Cp), lambda n: (n, 0, 0)),
            scratch_shapes=[pltpu.VMEM((Pin, Cp), jnp.float32)],
        ),
        compiler_params=pltpu.CompilerParams(
            dimension_semantics=("parallel",)),
    )(x_slab, mask, w1f, b1f, w2f, b2f)

    # Drop wrap-around columns / padded channels, back to NCHW.
    out = out_slab.reshape(N, H, Wp, Cp)[:, :, :W, :Cout]
    return jnp.transpose(out, (0, 3, 1, 2))


def init_params(key, in_channel, out_channel):
    ks = jax.random.split(key, 10)
    eps = 1e-5
    # conv weights: kaiming-normal-like init in PyTorch OIHW, converted to HWIO
    fan1 = in_channel * 9
    w1_oihw = jax.random.normal(ks[0], (out_channel, in_channel, 3, 3),
                                jnp.float32) * (2.0 / fan1) ** 0.5
    fan2 = out_channel * 9
    w2_oihw = jax.random.normal(ks[1], (out_channel, out_channel, 3, 3),
                                jnp.float32) * (2.0 / fan2) ** 0.5
    w1 = jnp.transpose(w1_oihw, (2, 3, 1, 0))
    w2 = jnp.transpose(w2_oihw, (2, 3, 1, 0))

    def folded_bn(kg, kb, km, kv):
        gamma = 1.0 + 0.1 * jax.random.normal(kg, (out_channel,), jnp.float32)
        beta = 0.1 * jax.random.normal(kb, (out_channel,), jnp.float32)
        mean = 0.1 * jax.random.normal(km, (out_channel,), jnp.float32)
        var = jnp.abs(jax.random.normal(kv, (out_channel,), jnp.float32)) + 0.5
        scale = gamma / jnp.sqrt(var + eps)
        bias = beta - mean * scale
        return scale.reshape(1, -1), bias.reshape(1, -1)

    s1, b1 = folded_bn(ks[2], ks[3], ks[4], ks[5])
    s2, b2 = folded_bn(ks[6], ks[7], ks[8], ks[9])
    return dict(w1=w1, s1=s1, b1=b1, w2=w2, s2=s2, b2=b2)


def ref_forward(x_nchw, params):
    """Pure-JAX reference (lax conv) for correctness checking."""
    x = jnp.transpose(x_nchw, (0, 2, 3, 1))
    dn = ("NHWC", "HWIO", "NHWC")
    c1 = lax.conv_general_dilated(x, params["w1"], (1, 1), ((1, 1), (1, 1)),
                                  dimension_numbers=dn)
    c1 = _leaky(c1 * params["s1"][0] + params["b1"][0], CONV_LEAKY_SLOPE)
    c2 = lax.conv_general_dilated(c1, params["w2"], (1, 1), ((1, 1), (1, 1)),
                                  dimension_numbers=dn)
    c2 = c2 * params["s2"][0] + params["b2"][0]
    y = _leaky(c2 + x, BLOCK_LEAKY_SLOPE)
    return jnp.transpose(y, (0, 3, 1, 2))


if __name__ == "__main__":
    key = jax.random.PRNGKey(0)
    k_x, k_p = jax.random.split(key)

    N, C, H, W = 2, 4, 16, 16                 # small shapes; in_channel == out_channel
    x = jax.random.normal(k_x, (N, C, H, W), jnp.float32)
    params = init_params(k_p, C, C)

    y = basic_block_forward(x, params)
    jax.block_until_ready(y)

    y_ref = ref_forward(x, params)
    assert y.shape == (N, C, H, W)
    assert jnp.allclose(y, y_ref, rtol=1e-3, atol=1e-3), "mismatch vs JAX reference"

    print("KERNEL_OK")
</pallas_src>

<mosaic_0001>
module attributes {stable_mosaic.version = 11 : i64} {
  func.func @basic_block_kernel(%arg0: i32, %arg1: memref<1x342x128xf32, #tpu.memory_space<vmem>>, %arg2: memref<288x1xf32, #tpu.memory_space<vmem>>, %arg3: memref<1152x128xf32, #tpu.memory_space<vmem>>, %arg4: memref<1x128xf32, #tpu.memory_space<vmem>>, %arg5: memref<1152x128xf32, #tpu.memory_space<vmem>>, %arg6: memref<1x128xf32, #tpu.memory_space<vmem>>, %arg7: memref<1x288x128xf32, #tpu.memory_space<vmem>>, %arg8: memref<342x128xf32, #tpu.memory_space<vmem>>) attributes {dimension_semantics = [#tpu.dimension_semantics<parallel>], iteration_bounds = array<i64: 2>, scalar_prefetch = 0 : i64, scratch_operands = 1 : i64, tpu.core_type = #tpu.core_type<tc>, window_params = [{transform_indices = @transform_0, window_bounds = array<i64: 1, 342, 128>}, {pipeline_mode = #tpu.pipeline_mode<synchronous>, transform_indices = @transform_1, window_bounds = array<i64: 288, 1>}, {pipeline_mode = #tpu.pipeline_mode<synchronous>, transform_indices = @transform_2, window_bounds = array<i64: 1152, 128>}, {pipeline_mode = #tpu.pipeline_mode<synchronous>, transform_indices = @transform_3, window_bounds = array<i64: 1, 128>}, {pipeline_mode = #tpu.pipeline_mode<synchronous>, transform_indices = @transform_4, window_bounds = array<i64: 1152, 128>}, {pipeline_mode = #tpu.pipeline_mode<synchronous>, transform_indices = @transform_5, window_bounds = array<i64: 1, 128>}, {transform_indices = @transform_6, window_bounds = array<i64: 1, 288, 128>}]} {
    %c0 = arith.constant 0 : index
    %c0_0 = arith.constant 0 : index
    %c0_1 = arith.constant 0 : index
    %0 = vector.load %arg1[%c0, %c0_0, %c0_1] : memref<1x342x128xf32, #tpu.memory_space<vmem>>, vector<1x288x128xf32>
    %1 = vector.shape_cast %0 : vector<1x288x128xf32> to vector<288x128xf32>
    %c0_2 = arith.constant 0 : index
    %c1 = arith.constant 1 : index
    %c0_3 = arith.constant 0 : index
    %2 = vector.load %arg1[%c0_2, %c1, %c0_3] : memref<1x342x128xf32, #tpu.memory_space<vmem>>, vector<1x288x128xf32>
    %3 = vector.shape_cast %2 : vector<1x288x128xf32> to vector<288x128xf32>
    %c0_4 = arith.constant 0 : index
    %c2 = arith.constant 2 : index
    %c0_5 = arith.constant 0 : index
    %4 = vector.load %arg1[%c0_4, %c2, %c0_5] : memref<1x342x128xf32, #tpu.memory_space<vmem>>, vector<1x288x128xf32>
    %5 = vector.shape_cast %4 : vector<1x288x128xf32> to vector<288x128xf32>
    %c0_6 = arith.constant 0 : index
    %c18 = arith.constant 18 : index
    %c0_7 = arith.constant 0 : index
    %6 = vector.load %arg1[%c0_6, %c18, %c0_7] : memref<1x342x128xf32, #tpu.memory_space<vmem>>, vector<1x288x128xf32>
    %7 = vector.shape_cast %6 : vector<1x288x128xf32> to vector<288x128xf32>
    %c0_8 = arith.constant 0 : index
    %c19 = arith.constant 19 : index
    %c0_9 = arith.constant 0 : index
    %8 = vector.load %arg1[%c0_8, %c19, %c0_9] : memref<1x342x128xf32, #tpu.memory_space<vmem>>, vector<1x288x128xf32>
    %9 = vector.shape_cast %8 : vector<1x288x128xf32> to vector<288x128xf32>
    %c0_10 = arith.constant 0 : index
    %c20 = arith.constant 20 : index
    %c0_11 = arith.constant 0 : index
    %10 = vector.load %arg1[%c0_10, %c20, %c0_11] : memref<1x342x128xf32, #tpu.memory_space<vmem>>, vector<1x288x128xf32>
    %11 = vector.shape_cast %10 : vector<1x288x128xf32> to vector<288x128xf32>
    %c0_12 = arith.constant 0 : index
    %c36 = arith.constant 36 : index
    %c0_13 = arith.constant 0 : index
    %12 = vector.load %arg1[%c0_12, %c36, %c0_13] : memref<1x342x128xf32, #tpu.memory_space<vmem>>, vector<1x288x128xf32>
    %13 = vector.shape_cast %12 : vector<1x288x128xf32> to vector<288x128xf32>
    %c0_14 = arith.constant 0 : index
    %c37 = arith.constant 37 : index
    %c0_15 = arith.constant 0 : index
    %14 = vector.load %arg1[%c0_14, %c37, %c0_15] : memref<1x342x128xf32, #tpu.memory_space<vmem>>, vector<1x288x128xf32>
    %15 = vector.shape_cast %14 : vector<1x288x128xf32> to vector<288x128xf32>
    %c0_16 = arith.constant 0 : index
    %c38 = arith.constant 38 : index
    %c0_17 = arith.constant 0 : index
    %16 = vector.load %arg1[%c0_16, %c38, %c0_17] : memref<1x342x128xf32, #tpu.memory_space<vmem>>, vector<1x288x128xf32>
    %17 = vector.shape_cast %16 : vector<1x288x128xf32> to vector<288x128xf32>
    %18 = tpu.concatenate %1, %3, %5, %7, %9, %11, %13, %15, %17 in 1 : vector<288x128xf32>, vector<288x128xf32>, vector<288x128xf32>, vector<288x128xf32>, vector<288x128xf32>, vector<288x128xf32>, vector<288x128xf32>, vector<288x128xf32>, vector<288x128xf32> -> vector<288x1152xf32>
    %c0_18 = arith.constant 0 : index
    %c0_19 = arith.constant 0 : index
    %19 = vector.load %arg3[%c0_18, %c0_19] : memref<1152x128xf32, #tpu.memory_space<vmem>>, vector<1152x128xf32>
    %cst = arith.constant dense<0.000000e+00> : vector<288x128xf32>
    %20 = tpu.matmul %18, %19, %cst {dimension_numbers = #tpu.dot_dimension_numbers<[1], [0], [0], [1], [0, 0, 1, 1], [], []>} : vector<288x1152xf32>, vector<1152x128xf32>, vector<288x128xf32> -> vector<288x128xf32>
    %c0_20 = arith.constant 0 : index
    %c0_21 = arith.constant 0 : index
    %21 = vector.load %arg4[%c0_20, %c0_21] : memref<1x128xf32, #tpu.memory_space<vmem>>, vector<1x128xf32>
    %22 = vector.broadcast %21 : vector<1x128xf32> to vector<288x128xf32>
    %23 = arith.addf %20, %22 : vector<288x128xf32>
    %cst_22 = arith.constant 0.000000e+00 : f32
    %24 = vector.broadcast %cst_22 : f32 to vector<288x128xf32>
    %25 = arith.cmpf oge, %23, %24 : vector<288x128xf32>
    %cst_23 = arith.constant 1.000000e-01 : f32
    %26 = vector.broadcast %cst_23 : f32 to vector<288x128xf32>
    %27 = arith.mulf %26, %23 : vector<288x128xf32>
    %28 = arith.select %25, %23, %27 : vector<288x128xi1>, vector<288x128xf32>
    %c0_24 = arith.constant 0 : index
    %c0_25 = arith.constant 0 : index
    %29 = vector.load %arg2[%c0_24, %c0_25] : memref<288x1xf32, #tpu.memory_space<vmem>>, vector<288x1xf32>
    %30 = vector.broadcast %29 : vector<288x1xf32> to vector<288x128xf32>
    %31 = arith.mulf %28, %30 : vector<288x128xf32>
    %cst_26 = arith.constant 0.000000e+00 : f32
    %32 = vector.broadcast %cst_26 : f32 to vector<19x128xf32>
    %c0_27 = arith.constant 0 : index
    %c0_28 = arith.constant 0 : index
    %33 = vector.load %arg8[%c0_27, %c0_28] : memref<342x128xf32, #tpu.memory_space<vmem>>, vector<19x128xf32>
    tpu.vector_store %arg8[%c0_27, %c0_28], %32 {strides = array<i32>} : memref<342x128xf32, #tpu.memory_space<vmem>>, vector<19x128xf32>,
    %c19_29 = arith.constant 19 : index
    %c0_30 = arith.constant 0 : index
    %34 = vector.load %arg8[%c19_29, %c0_30] : memref<342x128xf32, #tpu.memory_space<vmem>>, vector<288x128xf32>
    tpu.vector_store %arg8[%c19_29, %c0_30], %31 {strides = array<i32>} : memref<342x128xf32, #tpu.memory_space<vmem>>, vector<288x128xf32>,
    %cst_31 = arith.constant 0.000000e+00 : f32
    %35 = vector.broadcast %cst_31 : f32 to vector<35x128xf32>
    %c307 = arith.constant 307 : index
    %c0_32 = arith.constant 0 : index
    %36 = vector.load %arg8[%c307, %c0_32] : memref<342x128xf32, #tpu.memory_space<vmem>>, vector<35x128xf32>
    tpu.vector_store %arg8[%c307, %c0_32], %35 {strides = array<i32>} : memref<342x128xf32, #tpu.memory_space<vmem>>, vector<35x128xf32>,
    %c0_33 = arith.constant 0 : index
    %c0_34 = arith.constant 0 : index
    %37 = vector.load %arg8[%c0_33, %c0_34] : memref<342x128xf32, #tpu.memory_space<vmem>>, vector<288x128xf32>
    %c1_35 = arith.constant 1 : index
    %c0_36 = arith.constant 0 : index
    %38 = vector.load %arg8[%c1_35, %c0_36] : memref<342x128xf32, #tpu.memory_space<vmem>>, vector<288x128xf32>
    %c2_37 = arith.constant 2 : index
    %c0_38 = arith.constant 0 : index
    %39 = vector.load %arg8[%c2_37, %c0_38] : memref<342x128xf32, #tpu.memory_space<vmem>>, vector<288x128xf32>
    %c18_39 = arith.constant 18 : index
    %c0_40 = arith.constant 0 : index
    %40 = vector.load %arg8[%c18_39, %c0_40] : memref<342x128xf32, #tpu.memory_space<vmem>>, vector<288x128xf32>
    %c19_41 = arith.constant 19 : index
    %c0_42 = arith.constant 0 : index
    %41 = vector.load %arg8[%c19_41, %c0_42] : memref<342x128xf32, #tpu.memory_space<vmem>>, vector<288x128xf32>
    %c20_43 = arith.constant 20 : index
    %c0_44 = arith.constant 0 : index
    %42 = vector.load %arg8[%c20_43, %c0_44] : memref<342x128xf32, #tpu.memory_space<vmem>>, vector<288x128xf32>
    %c36_45 = arith.constant 36 : index
    %c0_46 = arith.constant 0 : index
    %43 = vector.load %arg8[%c36_45, %c0_46] : memref<342x128xf32, #tpu.memory_space<vmem>>, vector<288x128xf32>
    %c37_47 = arith.constant 37 : index
    %c0_48 = arith.constant 0 : index
    %44 = vector.load %arg8[%c37_47, %c0_48] : memref<342x128xf32, #tpu.memory_space<vmem>>, vector<288x128xf32>
    %c38_49 = arith.constant 38 : index
    %c0_50 = arith.constant 0 : index
    %45 = vector.load %arg8[%c38_49, %c0_50] : memref<342x128xf32, #tpu.memory_space<vmem>>, vector<288x128xf32>
    %46 = tpu.concatenate %37, %38, %39, %40, %41, %42, %43, %44, %45 in 1 : vector<288x128xf32>, vector<288x128xf32>, vector<288x128xf32>, vector<288x128xf32>, vector<288x128xf32>, vector<288x128xf32>, vector<288x128xf32>, vector<288x128xf32>, vector<288x128xf32> -> vector<288x1152xf32>
    %c0_51 = arith.constant 0 : index
    %c0_52 = arith.constant 0 : index
    %47 = vector.load %arg5[%c0_51, %c0_52] : memref<1152x128xf32, #tpu.memory_space<vmem>>, vector<1152x128xf32>
    %cst_53 = arith.constant dense<0.000000e+00> : vector<288x128xf32>
    %48 = tpu.matmul %46, %47, %cst_53 {dimension_numbers = #tpu.dot_dimension_numbers<[1], [0], [0], [1], [0, 0, 1, 1], [], []>} : vector<288x1152xf32>, vector<1152x128xf32>, vector<288x128xf32> -> vector<288x128xf32>
    %c0_54 = arith.constant 0 : index
    %c0_55 = arith.constant 0 : index
    %49 = vector.load %arg6[%c0_54, %c0_55] : memref<1x128xf32, #tpu.memory_space<vmem>>, vector<1x128xf32>
    %50 = vector.broadcast %49 : vector<1x128xf32> to vector<288x128xf32>
    %51 = arith.addf %48, %50 : vector<288x128xf32>
    %c0_56 = arith.constant 0 : index
    %c19_57 = arith.constant 19 : index
    %c0_58 = arith.constant 0 : index
    %52 = vector.load %arg1[%c0_56, %c19_57, %c0_58] : memref<1x342x128xf32, #tpu.memory_space<vmem>>, vector<1x288x128xf32>
    %53 = vector.shape_cast %52 : vector<1x288x128xf32> to vector<288x128xf32>
    %54 = arith.addf %51, %53 : vector<288x128xf32>
    %cst_59 = arith.constant 0.000000e+00 : f32
    %55 = vector.broadcast %cst_59 : f32 to vector<288x128xf32>
    %56 = arith.cmpf oge, %54, %55 : vector<288x128xf32>
    %cst_60 = arith.constant 0.00999999977 : f32
    %57 = vector.broadcast %cst_60 : f32 to vector<288x128xf32>
    %58 = arith.mulf %57, %54 : vector<288x128xf32>
    %59 = arith.select %56, %54, %58 : vector<288x128xi1>, vector<288x128xf32>
    %c0_61 = arith.constant 0 : index
    %c0_62 = arith.constant 0 : index
    %c0_63 = arith.constant 0 : index
    %60 = vector.load %arg7[%c0_61, %c0_62, %c0_63] : memref<1x288x128xf32, #tpu.memory_space<vmem>>, vector<1x288x128xf32>
    %61 = vector.shape_cast %60 : vector<1x288x128xf32> to vector<288x128xf32>
    %62 = vector.shape_cast %59 : vector<288x128xf32> to vector<1x288x128xf32>
    tpu.vector_store %arg7[%c0_61, %c0_62, %c0_63], %62 {strides = array<i32>} : memref<1x288x128xf32, #tpu.memory_space<vmem>>, vector<1x288x128xf32>,
    return
  }
  func.func @transform_0(%arg0: i32) -> (i32, i32, i32) {
    %c0_i32 = arith.constant 0 : i32
    %c0_i32_0 = arith.constant 0 : i32
    %c0_i32_1 = arith.constant 0 : i32
    return %arg0, %c0_i32, %c0_i32_0 : i32, i32, i32
  }
  func.func @transform_1(%arg0: i32) -> (i32, i32) {
    %c0_i32 = arith.constant 0 : i32
    %c0_i32_0 = arith.constant 0 : i32
    %c0_i32_1 = arith.constant 0 : i32
    return %c0_i32, %c0_i32_0 : i32, i32
  }
  func.func @transform_2(%arg0: i32) -> (i32, i32) {
    %c0_i32 = arith.constant 0 : i32
    %c0_i32_0 = arith.constant 0 : i32
    %c0_i32_1 = arith.constant 0 : i32
    return %c0_i32, %c0_i32_0 : i32, i32
  }
  func.func @transform_3(%arg0: i32) -> (i32, i32) {
    %c0_i32 = arith.constant 0 : i32
    %c0_i32_0 = arith.constant 0 : i32
    %c0_i32_1 = arith.constant 0 : i32
    return %c0_i32, %c0_i32_0 : i32, i32
  }
  func.func @transform_4(%arg0: i32) -> (i32, i32) {
    %c0_i32 = arith.constant 0 : i32
    %c0_i32_0 = arith.constant 0 : i32
    %c0_i32_1 = arith.constant 0 : i32
    return %c0_i32, %c0_i32_0 : i32, i32
  }
  func.func @transform_5(%arg0: i32) -> (i32, i32) {
    %c0_i32 = arith.constant 0 : i32
    %c0_i32_0 = arith.constant 0 : i32
    %c0_i32_1 = arith.constant 0 : i32
    return %c0_i32, %c0_i32_0 : i32, i32
  }
  func.func @transform_6(%arg0: i32) -> (i32, i32, i32) {
    %c0_i32 = arith.constant 0 : i32
    %c0_i32_0 = arith.constant 0 : i32
    %c0_i32_1 = arith.constant 0 : i32
    return %arg0, %c0_i32, %c0_i32_0 : i32, i32, i32
  }
}

</mosaic_0001>

<bundles_post_ra>
// kernel: tpu_custom_call.1
= control target key start
LH: loop header
LB: loop body
LE: loop exit
PB: predicated region body
PF: predicated region fallthrough
CT: control target
= control target key end

     0   :  { %11 = vsyncpa [#allocation4], 0  ;;  %s6209_s0 = inlined_call_operand.vmem [shape: f32[2,342,128], index: 0, kind: input, shape index: {}]   ;;  %s6210_s1 = inlined_call_operand.vmem [shape: f32[288,1], index: 1, kind: input, shape index: {}]   ;;  %s6211_s2 = inlined_call_operand.vmem [shape: f32[1152,128], index: 2, kind: input, shape index: {}]   ;;  %s6212_s3 = inlined_call_operand.vmem [shape: f32[1,128], index: 3, kind: input, shape index: {}]   ;;  %s6213_s4 = inlined_call_operand.hbm [shape: f32[1152,128], index: 4, kind: input, shape index: {}]   ;;  %s6214_s5 = inlined_call_operand.vmem [shape: f32[1,128], index: 5, kind: input, shape index: {}]   ;;  %s6215_s6 = inlined_call_operand.hbm [shape: f32[2,288,128], index: 6, kind: output, shape index: {}]  }
   0x1   :  { %12 = vsyncpa [#allocation5], 0 }
   0x2   :  { %14 = vsyncpa [#allocation5 + $0x1], 0  ;;  %s4317_s21 = smov 0   ;;  %s4319_s22 = smov 0  }
   0x3   :  { %s4321_s23 = smov 0   ;;  %s4323_s24 = smov 0  }
   0x4 LB: > { %s4338_s25 = sadd.s32 4294967295, %s4273_s24   ;;  %s4035_s26 = sadd.s32 4294967294, %s4273_s24   ;;  %s4273_s24 = sphi %s4323_s24, %s6267_s24   ;;  %s4269_s23 = sphi %s4321_s23, %s6266_s23   ;;  %s4265_s22 = sphi %s4319_s22, %s6265_s22   ;;  %s4261_s21 = sphi %s4317_s21, %s6264_s21  }
   0x5   : > { %s4342_s27 = sadd.s32 1, %s4273_s24   ;;  %s158_s28 = sadd.s32 1, %s4269_s23 }
   0x6   : > { %s155_s29 = ssub.s32 %s4273_s24, %s4342_s27  ;;  %p168_p0 = scmp.ne.s32.totalorder %s4269_s23, %s4265_s22 }
   0x7   : > { %p156_p1 = scmp.eq.s32.totalorder %s155_s29, 0  ;;  %p169_p2 = scmp.eq.s32.totalorder %s4338_s25, 1 }
   0x8   : > { %p174_p3 = scmp.ne.s32.totalorder %s4265_s22, %s4261_s21  ;;  %p175_p4 = scmp.eq.s32.totalorder %s4035_s26, 1 }
   0x9   : > { %s4353_s30 = scalar_select %p156_p1, %s4269_s23, %s158_s28  }
   0xa   : > { %p4355_p5 = por %p169_p2, %p168_p0  ;;  %p4359_p6 = por %p175_p4, %p174_p3 }
   0xb   : > { %p4036_p7 = scmp.ge.s32.totalorder %s4273_s24, 1  ;;  %p182_p8 = scmp.lt.s32.totalorder %s4273_s24, 3 }
   0xc   : > { %p4094_p9 = scmp.eq.s32.totalorder %s4338_s25, 0  ;;  %s202_s11 = sshll.u32 %s6213_s4, 4  ;;  %s203_s11 = int_to_ptr.hbm [resolvable:$true] %s202_s11 }
   0xd   : > { %p183_p10 = pnand %p4036_p7, %p182_p8  ;;  %s4275_s12 = smov [#allocation3]  }
   0xe   : > { %s204_s13 = sshll.u32 %s4275_s12, 4  ;;  %s4276_s14 = smov 128   ;;  %s205_s13 = int_to_ptr.vmem [resolvable:$true] %s204_s13 }
   0xf   : > { %p4086_p11 = pneg %p183_p10  ;;  %s4277_s15 = smov 8  }
  0x10   : > { %231 = sbr.rel (%p183_p10) target bundleno = 1615 (0x64f), region = 44 }
  0x11   : > { %p4087_p12 = pnand %p4094_p9, %p4086_p11 }
  0x13   : > { %4089 = dma.hbm_to_vmem [thread:$0]  (!%p4087_p12), %s203_s11, 18432, %s205_s13, [#allocation4], %s4276_s14, %s4276_s14, %s4277_s15  }
  0x15   : > { %4252 = dma.done.wait (%p4094_p9), [#allocation4], 18432  }
  0x16   : > { %4254 = vsyncadd (%p4094_p9), [#allocation4], 4294948864  ;;  %v538_v0 = vld [vmem:[%s6211_s2 + $0x78] sm:$0xff]  ;;  %v537_v2 = vld [vmem:[%s6211_s2 + $0x70] sm:$0xff]  ;;  %p262_p13 = scmp.lt.s32.totalorder %s4338_s25, 1  ;;  %s259_s26 = sand.u32 1, %s4265_s22  }
  0x17   : > { %v554_v1 = vld [vmem:[%s6211_s2 + $0xf8] sm:$0xff]  ;;  %671 = vmatpush.msra.mxu0 %v538_v0  ;;  %4045 = vmatpush.msra.mxu2 %v538_v0  ;;  %v553_v3 = vld [vmem:[%s6211_s2 + $0xf0] sm:$0xff]  ;;  %v536_v4 = vld [vmem:[%s6211_s2 + $0x68] sm:$0xff]  ;;  %s4077_s29 = smul.u32 288, %s259_s26  ;;  %s4227_s19 = scalar_lea.hbm %s6215_s6, 576 }
  0x18   : > { %4061 = vmatpush.msra.mxu3 %v554_v1  ;;  %796 = vmatpush.msra.mxu1 %v554_v1  ;;  %v552_v5 = vld [vmem:[%s6211_s2 + $0xe8] sm:$0xff]  ;;  %v535_v6 = vld [vmem:[%s6211_s2 + $0x60] sm:$0xff]  ;;  %v534_v8 = vld [vmem:[%s6211_s2 + $0x58] sm:$0xff]  ;;  %s263_s13 = scalar_select %p262_p13, %s4338_s25, 1 }
  0x19   : > { %672 = vmatpush.msra.mxu0 %v537_v2  ;;  %4046 = vmatpush.msra.mxu2 %v537_v2  ;;  %v551_v7 = vld [vmem:[%s6211_s2 + $0xe0] sm:$0xff]  ;;  %v550_v9 = vld [vmem:[%s6211_s2 + $0xd8] sm:$0xff]  ;;  %v533_v10 = vld [vmem:[%s6211_s2 + $0x50] sm:$0xff]  ;;  %s4079_s9 = smul.u32 288, %s4338_s25  ;;  %s3946_s25 = scalar_lea.sflag [#allocation5], %s259_s26 }
  0x1a   : > { %4062 = vmatpush.msra.mxu3 %v553_v3  ;;  %797 = vmatpush.msra.mxu1 %v553_v3  ;;  %v549_v11 = vld [vmem:[%s6211_s2 + $0xd0] sm:$0xff]  ;;  %v532_v12 = vld [vmem:[%s6211_s2 + $0x48] sm:$0xff]  ;;  %v531_v14 = vld [vmem:[%s6211_s2 + $0x40] sm:$0xff]  ;;  %s4078_s28 = smul.u32 344, %s263_s13 }
  0x1b   : > { %673 = vmatpush.msra.mxu0 %v536_v4  ;;  %4047 = vmatpush.msra.mxu2 %v536_v4  ;;  %v548_v13 = vld [vmem:[%s6211_s2 + $0xc8] sm:$0xff]  ;;  %v547_v15 = vld [vmem:[%s6211_s2 + $0xc0] sm:$0xff]  ;;  %v530_v16 = vld [vmem:[%s6211_s2 + $0x38] sm:$0xff]  ;;  %s3957_s12 = scalar_lea.hbm %s6215_s6, %s4079_s9 }
  0x1c   : > { %4063 = vmatpush.msra.mxu3 %v552_v5  ;;  %798 = vmatpush.msra.mxu1 %v552_v5  ;;  %v546_v17 = vld [vmem:[%s6211_s2 + $0xb8] sm:$0xff]  ;;  %v529_v18 = vld [vmem:[%s6211_s2 + $0x30] sm:$0xff]  ;;  %v528_v20 = vld [vmem:[%s6211_s2 + $0x28] sm:$0xff]  ;;  %s4467_s18 = scalar_lea.vmem %s6209_s0, %s4078_s28  ;;  %s5959_s28 = scalar_lea.vmem [#allocation6], %s4077_s29 }
  0x1d   : > { %674 = vmatpush.msra.mxu0 %v535_v6  ;;  %4048 = vmatpush.msra.mxu2 %v535_v6  ;;  %v545_v19 = vld [vmem:[%s6211_s2 + $0xb0] sm:$0xff]  ;;  %v544_v21 = vld [vmem:[%s6211_s2 + $0xa8] sm:$0xff]  ;;  %v527_v22 = vld [vmem:[%s6211_s2 + $0x20] sm:$0xff]  ;;  %s3958_s14 = sshll.u32 %s5959_s28, 4  ;;  %s3960_s13 = sshll.u32 %s3957_s12, 4  ;;  %s3959_s14 = int_to_ptr.vmem [resolvable:$true] %s3958_s14  ;;  %s3961_s13 = int_to_ptr.hbm [resolvable:$true] %s3960_s13 }
  0x1e   : > { %4064 = vmatpush.msra.mxu3 %v551_v7  ;;  %799 = vmatpush.msra.mxu1 %v551_v7  ;;  %v543_v23 = vld [vmem:[%s6211_s2 + $0xa0] sm:$0xff]  ;;  %v526_v24 = vld [vmem:[%s6211_s2 + $0x18] sm:$0xff]  ;;  %v525_v26 = vld [vmem:[%s6211_s2 + $0x10] sm:$0xff]  ;;  %s4221_s15 = sshra.s32 %s3961_s13, 4  ;;  %s4222_s15 = int_to_ptr.hbm [resolvable:$true] %s4221_s15 }
  0x1f   : > { %675 = vmatpush.msra.mxu0 %v534_v8  ;;  %4049 = vmatpush.msra.mxu2 %v534_v8  ;;  %v542_v25 = vld [vmem:[%s6211_s2 + $0x98] sm:$0xff]  ;;  %v541_v27 = vld [vmem:[%s6211_s2 + $0x90] sm:$0xff]  ;;  %v524_v28 = vld [vmem:[%s6211_s2 + $0x8] sm:$0xff]  ;;  %p4228_p3 = scmp.lt.s32.totalorder %s4222_s15, %s6215_s6 }
  0x20   : > { %4065 = vmatpush.msra.mxu3 %v550_v9  ;;  %800 = vmatpush.msra.mxu1 %v550_v9  ;;  %v540_v29 = vld [vmem:[%s6211_s2 + $0x88] sm:$0xff]  ;;  %v523_v30 = vld [vmem:[%s6211_s2] sm:$0xff]  ;;  %v285_v33 = vld [vmem:[%s4467_s18 + $0x90] sm:$0xff] }
  0x21   : > { %676 = vmatpush.msra.mxu0 %v533_v10  ;;  %4050 = vmatpush.msra.mxu2 %v533_v10  ;;  %v539_v31 = vld [vmem:[%s6211_s2 + $0x80] sm:$0xff]  ;;  %v321_v34 = vld [vmem:[%s4467_s18 + $0x91] sm:$0xff]  ;;  %v568_v42 = vld [vmem:[%s6211_s2 + $0x168] sm:$0xff] }
  0x22   : > { %4066 = vmatpush.msra.mxu3 %v549_v11  ;;  %801 = vmatpush.msra.mxu1 %v549_v11  ;;  %v267_v32 = vld [vmem:[%s4467_s18] sm:$0xff]  ;;  %v570_v35 = vld [vmem:[%s6211_s2 + $0x178] sm:$0xff]  ;;  %v569_v38 = vld [vmem:[%s6211_s2 + $0x170] sm:$0xff] }
  0x23   : > { %677 = vmatpush.msra.mxu0 %v532_v12  ;;  %4051 = vmatpush.msra.mxu2 %v532_v12  ;;  %v586_v36 = vld [vmem:[%s6211_s2 + $0x1f8] sm:$0xff]  ;;  %v585_v39 = vld [vmem:[%s6211_s2 + $0x1f0] sm:$0xff]  ;;  %v303_v40 = vld [vmem:[%s4467_s18 + $0x1] sm:$0xff] }
  0x24   : > { %4067 = vmatpush.msra.mxu3 %v548_v13  ;;  %802 = vmatpush.msra.mxu1 %v548_v13  ;;  %v602_v37 = vld [vmem:[%s6211_s2 + $0x278] sm:$0xff]  ;;  %v601_v41 = vld [vmem:[%s6211_s2 + $0x270] sm:$0xff]  ;;  %v584_v43 = vld [vmem:[%s6211_s2 + $0x1e8] sm:$0xff] }
  0x25   : > { %678 = vmatpush.msra.mxu0 %v531_v14  ;;  %4052 = vmatpush.msra.mxu2 %v531_v14  ;;  %v600_v44 = vld [vmem:[%s6211_s2 + $0x268] sm:$0xff]  ;;  %v567_v46 = vld [vmem:[%s6211_s2 + $0x160] sm:$0xff]  ;;  %v286_v47 = vld [vmem:[%s4467_s18 + $0x98] sm:$0xff] }
  0x26   : > { %4068 = vmatpush.msra.mxu3 %v547_v15  ;;  %803 = vmatpush.msra.mxu1 %v547_v15  ;;  %v268_v45 = vld [vmem:[%s4467_s18 + $0x8] sm:$0xff]  ;;  %v322_v48 = vld [vmem:[%s4467_s18 + $0x99] sm:$0xff]  ;;  %v565_v53 = vld [vmem:[%s6211_s2 + $0x150] sm:$0xff] }
  0x27   : > { %679 = vmatpush.msra.mxu0 %v530_v16  ;;  %4053 = vmatpush.msra.mxu2 %v530_v16  ;;  %v583_v49 = vld [vmem:[%s6211_s2 + $0x1e0] sm:$0xff]  ;;  %v566_v50 = vld [vmem:[%s6211_s2 + $0x158] sm:$0xff]  ;;  %v304_v54 = vld [vmem:[%s4467_s18 + $0x9] sm:$0xff] }
  0x28   : > { %4069 = vmatpush.msra.mxu3 %v546_v17  ;;  %804 = vmatpush.msra.mxu1 %v546_v17  ;;  %v599_v51 = vld [vmem:[%s6211_s2 + $0x260] sm:$0xff]  ;;  %v582_v52 = vld [vmem:[%s6211_s2 + $0x1d8] sm:$0xff]  ;;  %v581_v56 = vld [vmem:[%s6211_s2 + $0x1d0] sm:$0xff] }
  0x29   : > { %680 = vmatpush.msra.mxu0 %v529_v18  ;;  %4054 = vmatpush.msra.mxu2 %v529_v18  ;;  %v598_v55 = vld [vmem:[%s6211_s2 + $0x258] sm:$0xff]  ;;  %v269_v57 = vld [vmem:[%s4467_s18 + $0x10] sm:$0xff]  ;;  %v287_v58 = vld [vmem:[%s4467_s18 + $0xa0] sm:$0xff] }
  0x2a   : > { %4070 = vmatpush.msra.mxu3 %v545_v19  ;;  %805 = vmatpush.msra.mxu1 %v545_v19  ;;  %v323_v59 = vld [vmem:[%s4467_s18 + $0xa1] sm:$0xff]  ;;  %v597_v61 = vld [vmem:[%s6211_s2 + $0x250] sm:$0xff]  ;;  %v270_v63 = vld [vmem:[%s4467_s18 + $0x18] sm:$0xff] }
  0x2b   : > { %681 = vmatpush.msra.mxu0 %v528_v20  ;;  %4055 = vmatpush.msra.mxu2 %v528_v20  ;;  %v564_v60 = vld [vmem:[%s6211_s2 + $0x148] sm:$0xff]  ;;  %v305_v62 = vld [vmem:[%s4467_s18 + $0x11] sm:$0xff]  ;;  %v563_v3 = vld [vmem:[%s6211_s2 + $0x140] sm:$0xff] }
  0x2c   : > { %4071 = vmatpush.msra.mxu3 %v544_v21  ;;  %806 = vmatpush.msra.mxu1 %v544_v21  ;;  %v288_v0 = vld [vmem:[%s4467_s18 + $0xa8] sm:$0xff]  ;;  %v306_v4 = vld [vmem:[%s4467_s18 + $0x19] sm:$0xff]  ;;  %v289_v6 = vld [vmem:[%s4467_s18 + $0xb0] sm:$0xff] }
  0x2d   : > { %682 = vmatpush.msra.mxu0 %v527_v22  ;;  %4056 = vmatpush.msra.mxu2 %v527_v22  ;;  %v324_v1 = vld [vmem:[%s4467_s18 + $0xa9] sm:$0xff]  ;;  %v271_v5 = vld [vmem:[%s4467_s18 + $0x20] sm:$0xff]  ;;  %v325_v7 = vld [vmem:[%s4467_s18 + $0xb1] sm:$0xff] }
  0x2e   : > { %4072 = vmatpush.msra.mxu3 %v543_v23  ;;  %807 = vmatpush.msra.mxu1 %v543_v23  ;;  %v580_v2 = vld [vmem:[%s6211_s2 + $0x1c8] sm:$0xff]  ;;  %v579_v9 = vld [vmem:[%s6211_s2 + $0x1c0] sm:$0xff]  ;;  %v290_v12 = vld [vmem:[%s4467_s18 + $0xb8] sm:$0xff] }
  0x2f   : > { %683 = vmatpush.msra.mxu0 %v526_v24  ;;  %4057 = vmatpush.msra.mxu2 %v526_v24  ;;  %v596_v8 = vld [vmem:[%s6211_s2 + $0x248] sm:$0xff]  ;;  %v326_v13 = vld [vmem:[%s4467_s18 + $0xb9] sm:$0xff]  ;;  %v273_v18 = vld [vmem:[%s4467_s18 + $0x30] sm:$0xff] }
  0x30   : > { %4073 = vmatpush.msra.mxu3 %v542_v25  ;;  %808 = vmatpush.msra.mxu1 %v542_v25  ;;  %v307_v10 = vld [vmem:[%s4467_s18 + $0x21] sm:$0xff]  ;;  %v562_v14 = vld [vmem:[%s6211_s2 + $0x138] sm:$0xff]  ;;  %v308_v17 = vld [vmem:[%s4467_s18 + $0x29] sm:$0xff] }
  0x31   : > { %684 = vmatpush.msra.mxu0 %v525_v26  ;;  %4058 = vmatpush.msra.mxu2 %v525_v26  ;;  %v272_v11 = vld [vmem:[%s4467_s18 + $0x28] sm:$0xff]  ;;  %v595_v15 = vld [vmem:[%s6211_s2 + $0x240] sm:$0xff]  ;;  %v578_v16 = vld [vmem:[%s6211_s2 + $0x1b8] sm:$0xff] }
  0x32   : > { %4074 = vmatpush.msra.mxu3 %v541_v27  ;;  %809 = vmatpush.msra.mxu1 %v541_v27  ;;  %v291_v19 = vld [vmem:[%s4467_s18 + $0xc0] sm:$0xff]  ;;  %v561_v21 = vld [vmem:[%s6211_s2 + $0x130] sm:$0xff]  ;;  %v594_v22 = vld [vmem:[%s6211_s2 + $0x238] sm:$0xff] }
  0x33   : > { %685 = vmatpush.msra.mxu0 %v524_v28  ;;  %4059 = vmatpush.msra.mxu2 %v524_v28  ;;  %v327_v20 = vld [vmem:[%s4467_s18 + $0xc1] sm:$0xff]  ;;  %v577_v23 = vld [vmem:[%s6211_s2 + $0x1b0] sm:$0xff]  ;;  %v274_v25 = vld [vmem:[%s4467_s18 + $0x38] sm:$0xff] }
  0x34   : > { %4075 = vmatpush.msra.mxu3 %v540_v29  ;;  %810 = vmatpush.msra.mxu1 %v540_v29  ;;  %v309_v24 = vld [vmem:[%s4467_s18 + $0x31] sm:$0xff]  ;;  %v292_v26 = vld [vmem:[%s4467_s18 + $0xc8] sm:$0xff] }
  0x35   : > { %686 = vmatpush.msra.mxu0 %v523_v30  ;;  %4060 = vmatpush.msra.mxu2 %v523_v30  ;;  %v328_v27 = vld [vmem:[%s4467_s18 + $0xc9] sm:$0xff]  ;;  %v310_v30 = vld [vmem:[%s4467_s18 + $0x39] sm:$0xff] }
  0x36   : > { %4076 = vmatpush.msra.mxu3 %v539_v31  ;;  %687 = vmatmul.f32.vlgmr.msra.gmra.mxu0 %v267_v32  ;;  %v560_v28 = vld [vmem:[%s6211_s2 + $0x128] sm:$0xff]  ;;  %v593_v29 = vld [vmem:[%s6211_s2 + $0x230] sm:$0xff]  ;;  %v275_v32 = vld [vmem:[%s4467_s18 + $0x40] sm:$0xff] }
  0x37   : > { %741 = vmatmul.f32.vlgmr.msra.gmra.mxu2 %v285_v33  ;;  %866 = vmatmul.f32.vlgmr.msra.gmra.mxu3 %v321_v34  ;;  %v293_v33 = vld [vmem:[%s4467_s18 + $0xd0] sm:$0xff] }
  0x38   : > { %921 = vmatpush.msrb.mxu2 %v570_v35  ;;  %1046 = vmatpush.msrb.mxu3 %v586_v36  ;;  %v329_v34 = vld [vmem:[%s4467_s18 + $0xd1] sm:$0xff]  ;;  %v559_v35 = vld [vmem:[%s6211_s2 + $0x120] sm:$0xff]  ;;  %v592_v36 = vld [vmem:[%s6211_s2 + $0x228] sm:$0xff] }
  0x39   : > { %1171 = vmatpush.msrb.mxu0 %v602_v37  ;;  %811 = vmatpush.msra.mxu1 %v539_v31  ;;  %v576_v31 = vld [vmem:[%s6211_s2 + $0x1a8] sm:$0xff] }
  0x3a   : > { %922 = vmatpush.msrb.mxu2 %v569_v38  ;;  %1047 = vmatpush.msrb.mxu3 %v585_v39  ;;  %v311_v37 = vld [vmem:[%s4467_s18 + $0x41] sm:$0xff] }
  0x3b   : > { %812 = vmatmul.f32.vlgmr.msra.gmra.mxu1 %v303_v40  ;;  %1172 = vmatpush.msrb.mxu0 %v601_v41  ;;  %v575_v38 = vld [vmem:[%s6211_s2 + $0x1a0] sm:$0xff]  ;;  %v276_v39 = vld [vmem:[%s4467_s18 + $0x48] sm:$0xff]  ;;  %v294_v40 = vld [vmem:[%s4467_s18 + $0xd8] sm:$0xff] }
  0x3c   : > { %923 = vmatpush.msrb.mxu2 %v568_v42  ;;  %1048 = vmatpush.msrb.mxu3 %v584_v43  ;;  %v330_v41 = vld [vmem:[%s4467_s18 + $0xd9] sm:$0xff] }
  0x3d   : > { %1173 = vmatpush.msrb.mxu0 %v600_v44  ;;  %v558_v42 = vld [vmem:[%s6211_s2 + $0x118] sm:$0xff]  ;;  %v591_v43 = vld [vmem:[%s6211_s2 + $0x220] sm:$0xff]  ;;  %v312_v44 = vld [vmem:[%s4467_s18 + $0x49] sm:$0xff] }
  0x3e   : > { %690 = vmatmul.f32.gmra.mxu0 %v268_v45  ;;  %924 = vmatpush.msrb.mxu2 %v567_v46  ;;  %v574_v45 = vld [vmem:[%s6211_s2 + $0x198] sm:$0xff]  ;;  %v277_v46 = vld [vmem:[%s4467_s18 + $0x50] sm:$0xff] }
  0x3f   : > { %744 = vmatmul.f32.gmra.mxu2 %v286_v47  ;;  %869 = vmatmul.f32.gmra.mxu3 %v322_v48  ;;  %v295_v47 = vld [vmem:[%s4467_s18 + $0xe0] sm:$0xff] }
  0x40   : > { %1049 = vmatpush.msrb.mxu3 %v583_v49  ;;  %925 = vmatpush.msrb.mxu2 %v566_v50  ;;  %v331_v48 = vld [vmem:[%s4467_s18 + $0xe1] sm:$0xff]  ;;  %v557_v49 = vld [vmem:[%s6211_s2 + $0x110] sm:$0xff]  ;;  %v590_v50 = vld [vmem:[%s6211_s2 + $0x218] sm:$0xff] }
  0x41   : > { %1174 = vmatpush.msrb.mxu0 %v599_v51  ;;  %v313_v51 = vld [vmem:[%s4467_s18 + $0x51] sm:$0xff] }
  0x42   : > { %1050 = vmatpush.msrb.mxu3 %v582_v52  ;;  %926 = vmatpush.msrb.mxu2 %v565_v53  ;;  %v573_v52 = vld [vmem:[%s6211_s2 + $0x190] sm:$0xff]  ;;  %v278_v53 = vld [vmem:[%s4467_s18 + $0x58] sm:$0xff] }
  0x43   : > { %815 = vmatmul.f32.gmra.mxu1 %v304_v54  ;;  %1175 = vmatpush.msrb.mxu0 %v598_v55  ;;  %v296_v54 = vld [vmem:[%s4467_s18 + $0xe8] sm:$0xff] }
  0x44   : > { %1051 = vmatpush.msrb.mxu3 %v581_v56  ;;  %927 = vmatpush.msrb.mxu2 %v564_v60  ;;  %v332_v55 = vld [vmem:[%s4467_s18 + $0xe9] sm:$0xff]  ;;  %v314_v56 = vld [vmem:[%s4467_s18 + $0x59] sm:$0xff] }
  0x45   : > { %1176 = vmatpush.msrb.mxu0 %v597_v61  ;;  %v618_v60 = vld [vmem:[%s6211_s2 + $0x2f8] sm:$0xff]  ;;  %v556_v61 = vld [vmem:[%s6211_s2 + $0x108] sm:$0xff] }
  0x46   : > { %693 = vmatmul.f32.gmra.mxu0 %v269_v57  ;;  %1052 = vmatpush.msrb.mxu3 %v580_v2  ;;  %v279_v57 = vld [vmem:[%s4467_s18 + $0x60] sm:$0xff] }
  0x47   : > { %747 = vmatmul.f32.gmra.mxu2 %v287_v58  ;;  %872 = vmatmul.f32.gmra.mxu3 %v323_v59  ;;  %v297_v58 = vld [vmem:[%s4467_s18 + $0xf0] sm:$0xff]  ;;  %v315_v2 = vld [vmem:[%s4467_s18 + $0x61] sm:$0xff] }
  0x48   : > { %928 = vmatpush.msrb.mxu2 %v563_v3  ;;  %1177 = vmatpush.msrb.mxu0 %v596_v8  ;;  %v333_v59 = vld [vmem:[%s4467_s18 + $0xf1] sm:$0xff]  ;;  %v615_v3 = vld [vmem:[%s6211_s2 + $0x2e0] sm:$0xff] }
  0x49   : > { %1053 = vmatpush.msrb.mxu3 %v579_v9  ;;  %1296 = vmatpush.msrb.mxu1 %v618_v60  ;;  %v555_v8 = vld [vmem:[%s6211_s2 + $0x100] sm:$0xff]  ;;  %v613_v9 = vld [vmem:[%s6211_s2 + $0x2d0] sm:$0xff] }
  0x4a   : > { %929 = vmatpush.msrb.mxu2 %v562_v14  ;;  %1178 = vmatpush.msrb.mxu0 %v595_v15  ;;  %v611_v14 = vld [vmem:[%s6211_s2 + $0x2c0] sm:$0xff]  ;;  %v281_v15 = vld [vmem:[%s4467_s18 + $0x70] sm:$0xff] }
  0x4b   : > { %818 = vmatmul.f32.gmra.mxu1 %v305_v62  ;;  %1054 = vmatpush.msrb.mxu3 %v578_v16  ;;  %v589_v62 = vld [vmem:[%s6211_s2 + $0x210] sm:$0xff]  ;;  %v610_v16 = vld [vmem:[%s6211_s2 + $0x2b8] sm:$0xff] }
  0x4c   : > { %930 = vmatpush.msrb.mxu2 %v561_v21  ;;  %1179 = vmatpush.msrb.mxu0 %v594_v22  ;;  %v634_v21 = vld [vmem:[%s6211_s2 + $0x378] sm:$0xff]  ;;  %v608_v22 = vld [vmem:[%s6211_s2 + $0x2a8] sm:$0xff] }
  0x4d   : > { %1055 = vmatpush.msrb.mxu3 %v577_v23  ;;  %v650_v23 = vld [vmem:[%s6211_s2 + $0x3f8] sm:$0xff] }
  0x4e   : > { %696 = vmatmul.f32.gmra.mxu0 %v270_v63  ;;  %931 = vmatpush.msrb.mxu2 %v560_v28  ;;  %v617_v63 = vld [vmem:[%s6211_s2 + $0x2f0] sm:$0xff]  ;;  %v300_v28 = vld [vmem:[%s4467_s18 + $0x108] sm:$0xff] }
  0x4f   : > { %750 = vmatmul.f32.gmra.mxu2 %v288_v0  ;;  %875 = vmatmul.f32.gmra.mxu3 %v324_v1  ;;  %v572_v0 = vld [vmem:[%s6211_s2 + $0x188] sm:$0xff]  ;;  %v341_v60 = vld [vmem:[%s4467_s18 + $0x12] sm:$0xff] }
  0x50   : > { %1180 = vmatpush.msrb.mxu0 %v593_v29  ;;  %1056 = vmatpush.msrb.mxu3 %v576_v31  ;;  %v616_v1 = vld [vmem:[%s6211_s2 + $0x2e8] sm:$0xff] }
  0x51   : > { %932 = vmatpush.msrb.mxu2 %v559_v35  ;;  %1297 = vmatpush.msrb.mxu1 %v617_v63  ;;  %v336_v29 = vld [vmem:[%s4467_s18 + $0x109] sm:$0xff] }
  0x52   : > { %1181 = vmatpush.msrb.mxu0 %v592_v36  ;;  %1057 = vmatpush.msrb.mxu3 %v575_v38  ;;  %v604_v31 = vld [vmem:[%s6211_s2 + $0x288] sm:$0xff]  ;;  %v283_v36 = vld [vmem:[%s4467_s18 + $0x80] sm:$0xff]  ;;  %v337_v38 = vld [vmem:[%s4467_s18 + $0x111] sm:$0xff] }
  0x53   : > { %821 = vmatmul.f32.gmra.mxu1 %v306_v4  ;;  %933 = vmatpush.msrb.mxu2 %v558_v42  ;;  %v280_v4 = vld [vmem:[%s4467_s18 + $0x68] sm:$0xff] }
  0x54   : > { %1182 = vmatpush.msrb.mxu0 %v591_v43  ;;  %1058 = vmatpush.msrb.mxu3 %v574_v45  ;;  %v319_v42 = vld [vmem:[%s4467_s18 + $0x81] sm:$0xff] }
  0x55   : > { %934 = vmatpush.msrb.mxu2 %v557_v49  ;;  %1298 = vmatpush.msrb.mxu1 %v616_v1  ;;  %v338_v49 = vld [vmem:[%s4467_s18 + $0x119] sm:$0xff] }
  0x56   : > { %699 = vmatmul.f32.gmra.mxu0 %v271_v5  ;;  %1059 = vmatpush.msrb.mxu3 %v573_v52  ;;  %v614_v5 = vld [vmem:[%s6211_s2 + $0x2d8] sm:$0xff] }
  0x57   : > { %753 = vmatmul.f32.gmra.mxu2 %v289_v6  ;;  %878 = vmatmul.f32.gmra.mxu3 %v325_v7  ;;  %v298_v6 = vld [vmem:[%s4467_s18 + $0xf8] sm:$0xff] }
  0x58   : > { %1183 = vmatpush.msrb.mxu0 %v590_v50  ;;  %935 = vmatpush.msrb.mxu2 %v556_v61  ;;  %v334_v7 = vld [vmem:[%s4467_s18 + $0xf9] sm:$0xff] }
  0x59   : > { %1060 = vmatpush.msrb.mxu3 %v572_v0  ;;  %1299 = vmatpush.msrb.mxu1 %v615_v3  ;;  %v413_v0 = vld [vmem:[%s4467_s18 + $0x14] sm:$0xff] }
  0x5a   : > { %1184 = vmatpush.msrb.mxu0 %v589_v62  ;;  %936 = vmatpush.msrb.mxu2 %v555_v8  ;;  %v665_v62 = vld [vmem:[%s6211_s2 + $0x470] sm:$0xff] }
  0x5b   : > { %824 = vmatmul.f32.gmra.mxu1 %v307_v10  ;;  %v588_v10 = vld [vmem:[%s6211_s2 + $0x208] sm:$0xff] }
  0x5c   : > { %1300 = vmatpush.msrb.mxu1 %v614_v5  ;;  %1185 = vmatpush.msrb.mxu0 %v588_v10  ;;  %v378_v5 = vld [vmem:[%s4467_s18 + $0x1b] sm:$0xff]  ;;  %v648_v10 = vld [vmem:[%s6211_s2 + $0x3e8] sm:$0xff] }
  0x5d   : > { %1421 = vmatpush.msra.mxu2 %v634_v21 }
  0x5e   : > { %702 = vmatmul.f32.gmra.mxu0 %v272_v11  ;;  %v571_v11 = vld [vmem:[%s6211_s2 + $0x180] sm:$0xff]  ;;  %1301 = vmatpush.msrb.mxu1 %v613_v9  ;;  %v632_v9 = vld [vmem:[%s6211_s2 + $0x368] sm:$0xff] }
  0x5f   : > { %756 = vmatmul.f32.gmra.mxu2 %v290_v12  ;;  %881 = vmatmul.f32.gmra.mxu3 %v326_v13  ;;  %v612_v12 = vld [vmem:[%s6211_s2 + $0x2c8] sm:$0xff] }
  0x60   : > { %v316_v13 = vld [vmem:[%s4467_s18 + $0x69] sm:$0xff]  ;;  %1061 = vmatpush.msrb.mxu3 %v571_v11  ;;  %1302 = vmatpush.msrb.mxu1 %v612_v12  ;;  %v414_v12 = vld [vmem:[%s4467_s18 + $0x1c] sm:$0xff] }
  0x62   : > { %1303 = vmatpush.msrb.mxu1 %v611_v14  ;;  %1546 = vmatpush.msra.mxu3 %v650_v23 }
  0x63   : > { %827 = vmatmul.f32.gmra.mxu1 %v308_v17  ;;  %v299_v17 = vld [vmem:[%s4467_s18 + $0x100] sm:$0xff] }
  0x64   : > { %1304 = vmatpush.msrb.mxu1 %v610_v16 }
  0x66   : > { %705 = vmatmul.f32.gmra.mxu0 %v273_v18  ;;  %v335_v18 = vld [vmem:[%s4467_s18 + $0x101] sm:$0xff] }
  0x67   : > { %759 = vmatmul.f32.gmra.mxu2 %v291_v19  ;;  %884 = vmatmul.f32.gmra.mxu3 %v327_v20  ;;  %v587_v19 = vld [vmem:[%s6211_s2 + $0x200] sm:$0xff]  ;;  %v609_v20 = vld [vmem:[%s6211_s2 + $0x2b0] sm:$0xff] }
  0x68   : > { %1186 = vmatpush.msrb.mxu0 %v587_v19  ;;  %1305 = vmatpush.msrb.mxu1 %v609_v20  ;;  %v664_v20 = vld [vmem:[%s6211_s2 + $0x468] sm:$0xff] }
  0x6a   : > { %1306 = vmatpush.msrb.mxu1 %v608_v22  ;;  %v415_v22 = vld [vmem:[%s4467_s18 + $0x24] sm:$0xff] }
  0x6b   : > { %830 = vmatmul.f32.gmra.mxu1 %v309_v24  ;;  %v317_v24 = vld [vmem:[%s4467_s18 + $0x71] sm:$0xff] }
  0x6e   : > { %708 = vmatmul.f32.gmra.mxu0 %v274_v25  ;;  %v607_v25 = vld [vmem:[%s6211_s2 + $0x2a0] sm:$0xff] }
  0x6f   : > { %762 = vmatmul.f32.gmra.mxu2 %v292_v26  ;;  %887 = vmatmul.f32.gmra.mxu3 %v328_v27  ;;  %v282_v26 = vld [vmem:[%s4467_s18 + $0x78] sm:$0xff] }
  0x70   : > { %v606_v27 = vld [vmem:[%s6211_s2 + $0x298] sm:$0xff]  ;;  %1307 = vmatpush.msrb.mxu1 %v607_v25 }
  0x72   : > { %1308 = vmatpush.msrb.mxu1 %v606_v27  ;;  %v380_v27 = vld [vmem:[%s4467_s18 + $0x2b] sm:$0xff] }
  0x73   : > { %833 = vmatmul.f32.gmra.mxu1 %v310_v30  ;;  %v605_v30 = vld [vmem:[%s6211_s2 + $0x290] sm:$0xff] }
  0x74   : > { %1309 = vmatpush.msrb.mxu1 %v605_v30  ;;  %v631_v30 = vld [vmem:[%s6211_s2 + $0x360] sm:$0xff] }
  0x76   : > { %711 = vmatmul.f32.gmra.mxu0 %v275_v32  ;;  %v666_v32 = vld [vmem:[%s6211_s2 + $0x478] sm:$0xff]  ;;  %1310 = vmatpush.msrb.mxu1 %v604_v31  ;;  %v647_v31 = vld [vmem:[%s6211_s2 + $0x3e0] sm:$0xff] }
  0x77   : > { %765 = vmatmul.f32.gmra.mxu2 %v293_v33  ;;  %890 = vmatmul.f32.gmra.mxu3 %v329_v34  ;;  %v318_v33 = vld [vmem:[%s4467_s18 + $0x79] sm:$0xff] }
  0x78   : > { %1671 = vmatpush.msra.mxu0 %v666_v32  ;;  %v603_v34 = vld [vmem:[%s6211_s2 + $0x280] sm:$0xff] }
  0x79   : > { %1311 = vmatpush.msrb.mxu1 %v603_v34 }
  0x7a   : > { %1672 = vmatpush.msra.mxu0 %v665_v62  ;;  %v418_v62 = vld [vmem:[%s4467_s18 + $0x3c] sm:$0xff] }
  0x7b   : > { %836 = vmatmul.f32.gmra.mxu1 %v311_v37  ;;  %v301_v37 = vld [vmem:[%s4467_s18 + $0x110] sm:$0xff] }
  0x7c   : > { %1673 = vmatpush.msra.mxu0 %v664_v20  ;;  %v348_v20 = vld [vmem:[%s4467_s18 + $0x4a] sm:$0xff] }
  0x7e   : > { %714 = vmatmul.f32.gmra.mxu0 %v276_v39  ;;  %v4751_v39 = vld [vmem:[%s6212_s3] ss:$0 sm:$0xff] }
  0x7f   : > { %768 = vmatmul.f32.gmra.mxu2 %v294_v40  ;;  %893 = vmatmul.f32.gmra.mxu3 %v330_v41  ;;  %v633_v40 = vld [vmem:[%s6211_s2 + $0x370] sm:$0xff] }
  0x80   : > { %1422 = vmatpush.msra.mxu2 %v633_v40  ;;  %v381_v40 = vld [vmem:[%s4467_s18 + $0x33] sm:$0xff] }
  0x82   : > { %1423 = vmatpush.msra.mxu2 %v632_v9  ;;  %v662_v9 = vld [vmem:[%s6211_s2 + $0x458] sm:$0xff] }
  0x83   : > { %839 = vmatmul.f32.gmra.mxu1 %v312_v44 }
  0x84   : > { %1424 = vmatpush.msra.mxu2 %v631_v30 }
  0x86   : > { %717 = vmatmul.f32.gmra.mxu0 %v277_v46 }
  0x87   : > { %771 = vmatmul.f32.gmra.mxu2 %v295_v47  ;;  %896 = vmatmul.f32.gmra.mxu3 %v331_v48  ;;  %v284_v47 = vld [vmem:[%s4467_s18 + $0x88] sm:$0xff]  ;;  %v302_v48 = vld [vmem:[%s4467_s18 + $0x118] sm:$0xff] }
  0x8b   : > { %842 = vmatmul.f32.gmra.mxu1 %v313_v51  ;;  %v649_v51 = vld [vmem:[%s6211_s2 + $0x3f0] sm:$0xff] }
  0x8c   : > { %1547 = vmatpush.msra.mxu3 %v649_v51 }
  0x8e   : > { %720 = vmatmul.f32.gmra.mxu0 %v278_v53  ;;  %v320_v53 = vld [vmem:[%s4467_s18 + $0x89] sm:$0xff]  ;;  %1548 = vmatpush.msra.mxu3 %v648_v10 }
  0x8f   : > { %774 = vmatmul.f32.gmra.mxu2 %v296_v54  ;;  %899 = vmatmul.f32.gmra.mxu3 %v332_v55 }
  0x90   : > { %1549 = vmatpush.msra.mxu3 %v647_v31 }
  0x93   : > { %845 = vmatmul.f32.gmra.mxu1 %v314_v56 }
  0x96   : > { %723 = vmatmul.f32.gmra.mxu0 %v279_v57 }
  0x97   : > { %777 = vmatmul.f32.gmra.mxu2 %v297_v58  ;;  %902 = vmatmul.f32.gmra.mxu3 %v333_v59  ;;  %v377_v58 = vld [vmem:[%s4467_s18 + $0x13] sm:$0xff]  ;;  %v339_v59 = vld [vmem:[%s4467_s18 + $0x2] sm:$0xff] }
  0x9b   : > { %848 = vmatmul.f32.gmra.mxu1 %v315_v2 }
  0x9e   : > { %726 = vmatmul.f32.gmra.mxu0 %v280_v4 }
  0x9f   : > { %780 = vmatmul.f32.gmra.mxu2 %v298_v6  ;;  %905 = vmatmul.f32.gmra.mxu3 %v334_v7  ;;  %v340_v6 = vld [vmem:[%s4467_s18 + $0xa] sm:$0xff]  ;;  %v342_v7 = vld [vmem:[%s4467_s18 + $0x1a] sm:$0xff] }
  0xa3   : > { %851 = vmatmul.f32.gmra.mxu1 %v316_v13 }
  0xa6   : > { %729 = vmatmul.f32.gmra.mxu0 %v281_v15 }
  0xa7   : > { %783 = vmatmul.f32.gmra.mxu2 %v299_v17  ;;  %908 = vmatmul.f32.gmra.mxu3 %v335_v18  ;;  %v379_v17 = vld [vmem:[%s4467_s18 + $0x23] sm:$0xff] }
  0xa8   : > { %v343_v18 = vld [vmem:[%s4467_s18 + $0x22] sm:$0xff] }
  0xab   : > { %854 = vmatmul.f32.gmra.mxu1 %v317_v24 }
  0xae   : > { %732 = vmatmul.f32.gmra.mxu0 %v282_v26 }
  0xaf   : > { %786 = vmatmul.f32.gmra.mxu2 %v300_v28  ;;  %911 = vmatmul.f32.gmra.mxu3 %v336_v29  ;;  %v344_v28 = vld [vmem:[%s4467_s18 + $0x2a] sm:$0xff] }
  0xb3   : > { %v4743_v35 = vpop.f32.mrf.mxu0  ;;  %857 = vmatmul.f32.gmra.mxu1 %v318_v33  ;;  %v416_v33 = vld [vmem:[%s4467_s18 + $0x2c] sm:$0xff] }
  0xb6   : > { %735 = vmatmul.f32.gmra.mxu0 %v283_v36 }
  0xb7   : > { %789 = vmatmul.f32.gmra.mxu2 %v301_v37  ;;  %914 = vmatmul.f32.gmra.mxu3 %v337_v38 }
  0xb8   : > { %v4756_v41 = vpop.f32.mrf.mxu1 }
  0xba   : > { %v742_v43 = vpop.f32.mrf.mxu2  ;;  %v867_v44 = vpop.f32.mrf.mxu3 }
  0xbb   : > { %v743_v45 = vadd.f32 %v4751_v39, %v742_v43  ;;  %v4760_v46 = vpop.f32.mrf.mxu0  ;;  %860 = vmatmul.f32.gmra.mxu1 %v319_v42  ;;  %v345_v42 = vld [vmem:[%s4467_s18 + $0x32] sm:$0xff] }
  0xbd   : > { %v4765_v50 = vadd.f32 %v867_v44, %v743_v45  ;;  %v663_v44 = vld [vmem:[%s6211_s2 + $0x460] sm:$0xff] }
  0xbe   : > { %738 = vmatmul.f32.gmra.mxu0 %v284_v47  ;;  %v417_v47 = vld [vmem:[%s4467_s18 + $0x34] sm:$0xff] }
  0xbf   : > { %792 = vmatmul.f32.gmra.mxu2 %v302_v48  ;;  %917 = vmatmul.f32.gmra.mxu3 %v338_v49 }
  0xc0   : > { %v4770_v52 = vpop.f32.mrf.mxu1  ;;  %1674 = vmatpush.msra.mxu0 %v663_v44 }
  0xc2   : > { %v745_v54 = vpop.f32.mrf.mxu2  ;;  %v870_v55 = vpop.f32.mrf.mxu3  ;;  %1675 = vmatpush.msra.mxu0 %v662_v9  ;;  %v351_v9 = vld [vmem:[%s4467_s18 + $0x62] sm:$0xff] }
  0xc3   : > { %v746_v56 = vadd.f32 %v4751_v39, %v745_v54  ;;  %v4774_v57 = vpop.f32.mrf.mxu0  ;;  %863 = vmatmul.f32.gmra.mxu1 %v320_v53  ;;  %v382_v54 = vld [vmem:[%s4467_s18 + $0x3b] sm:$0xff] }
  0xc5   : > { %v4779_v61 = vadd.f32 %v870_v55, %v746_v56  ;;  %v346_v55 = vld [vmem:[%s4467_s18 + $0x3a] sm:$0xff] }
  0xc6   : > { %1187 = vmatmul.f32.vlgmr.msrb.gmra.mxu0 %v377_v58  ;;  %v630_v58 = vld [vmem:[%s6211_s2 + $0x358] sm:$0xff] }
  0xc7   : > { %937 = vmatmul.f32.vlgmr.msrb.gmra.mxu2 %v339_v59  ;;  %1062 = vmatmul.f32.vlgmr.msrb.gmra.mxu3 %v341_v60  ;;  %v646_v59 = vld [vmem:[%s6211_s2 + $0x3d8] sm:$0xff] }
  0xc8   : > { %v4784_v63 = vpop.f32.mrf.mxu1  ;;  %1425 = vmatpush.msra.mxu2 %v630_v58  ;;  %1550 = vmatpush.msra.mxu3 %v646_v59  ;;  %v661_v58 = vld [vmem:[%s6211_s2 + $0x450] sm:$0xff] }
  0xc9   : > { %1676 = vmatpush.msra.mxu0 %v661_v58  ;;  %v389_v58 = vld [vmem:[%s4467_s18 + $0x73] sm:$0xff] }
  0xca   : > { %v748_v1 = vpop.f32.mrf.mxu2  ;;  %v873_v2 = vpop.f32.mrf.mxu3 }
  0xcb   : > { %v749_v3 = vadd.f32 %v4751_v39, %v748_v1  ;;  %v4788_v4 = vpop.f32.mrf.mxu0  ;;  %1312 = vmatmul.f32.vlgmr.msrb.gmra.mxu1 %v413_v0 }
  0xcd   : > { %v4793_v8 = vadd.f32 %v873_v2, %v749_v3 }
  0xce   : > { %1190 = vmatmul.f32.gmra.mxu0 %v378_v5  ;;  %v383_v5 = vld [vmem:[%s4467_s18 + $0x43] sm:$0xff] }
  0xcf   : > { %940 = vmatmul.f32.gmra.mxu2 %v340_v6  ;;  %1065 = vmatmul.f32.gmra.mxu3 %v342_v7  ;;  %v347_v6 = vld [vmem:[%s4467_s18 + $0x42] sm:$0xff] }
  0xd0   : > { %v4801_v11 = vpop.f32.mrf.mxu1 }
  0xd2   : > { %v751_v13 = vpop.f32.mrf.mxu2  ;;  %v876_v14 = vpop.f32.mrf.mxu3 }
  0xd3   : > { %v752_v15 = vadd.f32 %v4751_v39, %v751_v13  ;;  %v4805_v16 = vpop.f32.mrf.mxu0  ;;  %1315 = vmatmul.f32.gmra.mxu1 %v414_v12  ;;  %v419_v12 = vld [vmem:[%s4467_s18 + $0x44] sm:$0xff] }
  0xd5   : > { %v4809_v19 = vadd.f32 %v876_v14, %v752_v15 }
  0xd6   : > { %1193 = vmatmul.f32.gmra.mxu0 %v379_v17 }
  0xd7   : > { %943 = vmatmul.f32.gmra.mxu2 %v341_v60  ;;  %1068 = vmatmul.f32.gmra.mxu3 %v343_v18 }
  0xd8   : > { %v4814_v21 = vpop.f32.mrf.mxu1 }
  0xda   : > { %v754_v23 = vpop.f32.mrf.mxu2  ;;  %v879_v24 = vpop.f32.mrf.mxu3 }
  0xdb   : > { %v755_v25 = vadd.f32 %v4751_v39, %v754_v23  ;;  %v4818_v26 = vpop.f32.mrf.mxu0  ;;  %1318 = vmatmul.f32.gmra.mxu1 %v415_v22  ;;  %v629_v23 = vld [vmem:[%s6211_s2 + $0x350] sm:$0xff] }
  0xdc   : > { %1426 = vmatpush.msra.mxu2 %v629_v23 }
  0xdd   : > { %v4822_v29 = vadd.f32 %v879_v24, %v755_v25  ;;  %v420_v25 = vld [vmem:[%s4467_s18 + $0x4c] sm:$0xff] }
  0xde   : > { %1196 = vmatmul.f32.gmra.mxu0 %v380_v27 }
  0xdf   : > { %946 = vmatmul.f32.gmra.mxu2 %v342_v7  ;;  %1071 = vmatmul.f32.gmra.mxu3 %v344_v28 }
  0xe0   : > { %v4830_v32 = vpop.f32.mrf.mxu1 }
  0xe2   : > { %v757_v34 = vpop.f32.mrf.mxu2  ;;  %v882_v36 = vpop.f32.mrf.mxu3 }
  0xe3   : > { %v758_v37 = vadd.f32 %v4751_v39, %v757_v34  ;;  %v4834_v38 = vpop.f32.mrf.mxu0  ;;  %1321 = vmatmul.f32.gmra.mxu1 %v416_v33  ;;  %v385_v33 = vld [vmem:[%s4467_s18 + $0x53] sm:$0xff] }
  0xe4   : > { %v349_v34 = vld [vmem:[%s4467_s18 + $0x52] sm:$0xff] }
  0xe5   : > { %v4838_v43 = vadd.f32 %v882_v36, %v758_v37  ;;  %v645_v37 = vld [vmem:[%s6211_s2 + $0x3d0] sm:$0xff] }
  0xe6   : > { %1199 = vmatmul.f32.gmra.mxu0 %v381_v40  ;;  %1551 = vmatpush.msra.mxu3 %v645_v37 }
  0xe7   : > { %949 = vmatmul.f32.gmra.mxu2 %v343_v18  ;;  %1074 = vmatmul.f32.gmra.mxu3 %v345_v42  ;;  %v384_v18 = vld [vmem:[%s4467_s18 + $0x4b] sm:$0xff] }
  0xe8   : > { %v4843_v45 = vpop.f32.mrf.mxu1 }
  0xea   : > { %v760_v48 = vpop.f32.mrf.mxu2  ;;  %v885_v49 = vpop.f32.mrf.mxu3 }
  0xeb   : > { %v761_v51 = vadd.f32 %v4751_v39, %v760_v48  ;;  %v4847_v53 = vpop.f32.mrf.mxu0  ;;  %1324 = vmatmul.f32.gmra.mxu1 %v417_v47 }
  0xed   : > { %v4851_v56 = vadd.f32 %v885_v49, %v761_v51  ;;  %v386_v51 = vld [vmem:[%s4467_s18 + $0x5b] sm:$0xff] }
  0xee   : > { %1202 = vmatmul.f32.gmra.mxu0 %v382_v54  ;;  %v350_v54 = vld [vmem:[%s4467_s18 + $0x5a] sm:$0xff] }
  0xef   : > { %952 = vmatmul.f32.gmra.mxu2 %v344_v28  ;;  %1077 = vmatmul.f32.gmra.mxu3 %v346_v55 }
  0xf0   : > { %v4859_v60 = vpop.f32.mrf.mxu1 }
  0xf2   : > { %v763_v0 = vpop.f32.mrf.mxu2  ;;  %v888_v1 = vpop.f32.mrf.mxu3 }
  0xf3   : > { %v764_v2 = vadd.f32 %v4751_v39, %v763_v0  ;;  %v4863_v3 = vpop.f32.mrf.mxu0  ;;  %1327 = vmatmul.f32.gmra.mxu1 %v418_v62  ;;  %v422_v62 = vld [vmem:[%s4467_s18 + $0x5c] sm:$0xff] }
  0xf5   : > { %v4867_v7 = vadd.f32 %v888_v1, %v764_v2 }
  0xf6   : > { %1205 = vmatmul.f32.gmra.mxu0 %v383_v5 }
  0xf7   : > { %955 = vmatmul.f32.gmra.mxu2 %v345_v42  ;;  %1080 = vmatmul.f32.gmra.mxu3 %v347_v6  ;;  %v421_v42 = vld [vmem:[%s4467_s18 + $0x54] sm:$0xff] }
  0xf8   : > { %v4872_v10 = vpop.f32.mrf.mxu1 }
  0xfa   : > { %v766_v13 = vpop.f32.mrf.mxu2  ;;  %v891_v14 = vpop.f32.mrf.mxu3 }
  0xfb   : > { %v767_v15 = vadd.f32 %v4751_v39, %v766_v13  ;;  %v4876_v17 = vpop.f32.mrf.mxu0  ;;  %1330 = vmatmul.f32.gmra.mxu1 %v419_v12  ;;  %v628_v13 = vld [vmem:[%s6211_s2 + $0x348] sm:$0xff] }
  0xfc   : > { %1427 = vmatpush.msra.mxu2 %v628_v13 }
  0xfd   : > { %v4880_v22 = vadd.f32 %v891_v14, %v767_v15  ;;  %v644_v14 = vld [vmem:[%s6211_s2 + $0x3c8] sm:$0xff] }
  0xfe   : > { %1208 = vmatmul.f32.gmra.mxu0 %v384_v18  ;;  %v423_v18 = vld [vmem:[%s4467_s18 + $0x64] sm:$0xff]  ;;  %1552 = vmatpush.msra.mxu3 %v644_v14 }
  0xff   : > { %958 = vmatmul.f32.gmra.mxu2 %v346_v55  ;;  %1083 = vmatmul.f32.gmra.mxu3 %v348_v20 }
 0x100   : > { %v4885_v24 = vpop.f32.mrf.mxu1 }
 0x102   : > { %v769_v27 = vpop.f32.mrf.mxu2  ;;  %v894_v28 = vpop.f32.mrf.mxu3 }
 0x103   : > { %v770_v30 = vadd.f32 %v4751_v39, %v769_v27  ;;  %v4889_v31 = vpop.f32.mrf.mxu0  ;;  %1333 = vmatmul.f32.gmra.mxu1 %v420_v25 }
 0x105   : > { %v4893_v36 = vadd.f32 %v894_v28, %v770_v30  ;;  %v388_v28 = vld [vmem:[%s4467_s18 + $0x6b] sm:$0xff] }
 0x106   : > { %1211 = vmatmul.f32.gmra.mxu0 %v385_v33  ;;  %v352_v30 = vld [vmem:[%s4467_s18 + $0x6a] sm:$0xff] }
 0x107   : > { %6218 = vst [vmem:[#allocation9_spill] sm:$0xff] %v4893_v36  ;;  %961 = vmatmul.f32.gmra.mxu2 %v347_v6  ;;  %1086 = vmatmul.f32.gmra.mxu3 %v349_v34  ;;  %v387_v6 = vld [vmem:[%s4467_s18 + $0x63] sm:$0xff] }
 0x108   : > { %v4898_v40 = vpop.f32.mrf.mxu1  ;;  %v359_v36 = vld [vmem:[%s4467_s18 + $0xa2] sm:$0xff] }
 0x10a   : > { %v772_v44 = vpop.f32.mrf.mxu2  ;;  %v897_v47 = vpop.f32.mrf.mxu3 }
 0x10b   : > { %v773_v48 = vadd.f32 %v4751_v39, %v772_v44  ;;  %v4902_v49 = vpop.f32.mrf.mxu0  ;;  %1336 = vmatmul.f32.gmra.mxu1 %v421_v42  ;;  %v424_v42 = vld [vmem:[%s4467_s18 + $0x6c] sm:$0xff] }
 0x10d   : > { %v4906_v55 = vadd.f32 %v897_v47, %v773_v48 }
 0x10e   : > { %1214 = vmatmul.f32.gmra.mxu0 %v386_v51 }
 0x10f   : > { %6219 = vst [vmem:[#allocation10_spill] sm:$0xff] %v4906_v55  ;;  %964 = vmatmul.f32.gmra.mxu2 %v348_v20  ;;  %1089 = vmatmul.f32.gmra.mxu3 %v350_v54  ;;  %v394_v55 = vld [vmem:[%s4467_s18 + $0x9b] sm:$0xff] }
 0x110   : > { %v4911_v59 = vpop.f32.mrf.mxu1 }
 0x112   : > { %v775_v0 = vpop.f32.mrf.mxu2  ;;  %v900_v1 = vpop.f32.mrf.mxu3 }
 0x113   : > { %v776_v2 = vadd.f32 %v4751_v39, %v775_v0  ;;  %v4915_v5 = vpop.f32.mrf.mxu0  ;;  %1339 = vmatmul.f32.gmra.mxu1 %v422_v62  ;;  %v353_v62 = vld [vmem:[%s4467_s18 + $0x72] sm:$0xff] }
 0x115   : > { %v4919_v12 = vadd.f32 %v900_v1, %v776_v2  ;;  %v643_v1 = vld [vmem:[%s6211_s2 + $0x3c0] sm:$0xff] }
 0x116   : > { %1217 = vmatmul.f32.gmra.mxu0 %v387_v6  ;;  %v425_v6 = vld [vmem:[%s4467_s18 + $0x74] sm:$0xff]  ;;  %1553 = vmatpush.msra.mxu3 %v643_v1  ;;  %v391_v1 = vld [vmem:[%s4467_s18 + $0x83] sm:$0xff] }
 0x117   : > { %6220 = vst [vmem:[#allocation11_spill] sm:$0xff] %v4919_v12  ;;  %967 = vmatmul.f32.gmra.mxu2 %v349_v34  ;;  %1092 = vmatmul.f32.gmra.mxu3 %v351_v9  ;;  %v660_v34 = vld [vmem:[%s6211_s2 + $0x448] sm:$0xff] }
 0x118   : > { %v4927_v15 = vpop.f32.mrf.mxu1  ;;  %1677 = vmatpush.msra.mxu0 %v660_v34  ;;  %v659_v34 = vld [vmem:[%s6211_s2 + $0x440] sm:$0xff] }
 0x11a   : > { %v778_v20 = vpop.f32.mrf.mxu2  ;;  %v903_v23 = vpop.f32.mrf.mxu3  ;;  %1678 = vmatpush.msra.mxu0 %v659_v34 }
 0x11b   : > { %v779_v25 = vadd.f32 %v4751_v39, %v778_v20  ;;  %v4931_v27 = vpop.f32.mrf.mxu0  ;;  %1342 = vmatmul.f32.gmra.mxu1 %v423_v18 }
 0x11d   : > { %v4935_v33 = vadd.f32 %v903_v23, %v779_v25  ;;  %v390_v23 = vld [vmem:[%s4467_s18 + $0x7b] sm:$0xff] }
 0x11e   : > { %1220 = vmatmul.f32.gmra.mxu0 %v388_v28  ;;  %v2471_v28 = vld [vmem:[#allocation3 + $0x78] sm:$0xff] }
 0x11f   : > { %6221 = vst [vmem:[#allocation12_spill] sm:$0xff] %v4935_v33  ;;  %970 = vmatmul.f32.gmra.mxu2 %v350_v54  ;;  %1095 = vmatmul.f32.gmra.mxu3 %v352_v30  ;;  %v627_v54 = vld [vmem:[%s6211_s2 + $0x340] sm:$0xff]  ;;  %v429_v33 = vld [vmem:[%s4467_s18 + $0x94] sm:$0xff] }
 0x120   : > { %v4940_v37 = vpop.f32.mrf.mxu1  ;;  %1428 = vmatpush.msra.mxu2 %v627_v54  ;;  %2604 = vmatpush.msra.mxu1 %v2471_v28 }
 0x122   : > { %v781_v44 = vpop.f32.mrf.mxu2  ;;  %v906_v47 = vpop.f32.mrf.mxu3 }
 0x123   : > { %v782_v48 = vadd.f32 %v4751_v39, %v781_v44  ;;  %v4944_v51 = vpop.f32.mrf.mxu0  ;;  %1345 = vmatmul.f32.gmra.mxu1 %v424_v42  ;;  %v426_v44 = vld [vmem:[%s4467_s18 + $0x7c] sm:$0xff] }
 0x125   : > { %v4948_v0 = vadd.f32 %v906_v47, %v782_v48 }
 0x126   : > { %1223 = vmatmul.f32.gmra.mxu0 %v389_v58 }
 0x127   : > { %6222 = vst [vmem:[#allocation13_spill] sm:$0xff] %v4948_v0  ;;  %973 = vmatmul.f32.gmra.mxu2 %v351_v9  ;;  %1098 = vmatmul.f32.gmra.mxu3 %v353_v62  ;;  %v354_v9 = vld [vmem:[%s4467_s18 + $0x7a] sm:$0xff] }
 0x128   : > { %v4956_v2 = vpop.f32.mrf.mxu1 }
 0x12a   : > { %v784_v13 = vpop.f32.mrf.mxu2  ;;  %v909_v14 = vpop.f32.mrf.mxu3 }
 0x12b   : > { %v785_v18 = vadd.f32 %v4751_v39, %v784_v13  ;;  %v4960_v20 = vpop.f32.mrf.mxu0  ;;  %1348 = vmatmul.f32.gmra.mxu1 %v425_v6  ;;  %v626_v13 = vld [vmem:[%s6211_s2 + $0x338] sm:$0xff] }
 0x12c   : > { %1429 = vmatpush.msra.mxu2 %v626_v13  ;;  %v428_v13 = vld [vmem:[%s4467_s18 + $0x8c] sm:$0xff] }
 0x12d   : > { %v4964_v25 = vadd.f32 %v909_v14, %v785_v18  ;;  %v427_v18 = vld [vmem:[%s4467_s18 + $0x84] sm:$0xff] }
 0x12e   : > { %1226 = vmatmul.f32.gmra.mxu0 %v390_v23  ;;  %v642_v23 = vld [vmem:[%s6211_s2 + $0x3b8] sm:$0xff] }
 0x12f   : > { %6223 = vst [vmem:[#allocation14_spill] sm:$0xff] %v4964_v25  ;;  %976 = vmatmul.f32.gmra.mxu2 %v352_v30  ;;  %1101 = vmatmul.f32.gmra.mxu3 %v354_v9  ;;  %v355_v30 = vld [vmem:[%s4467_s18 + $0x82] sm:$0xff] }
 0x130   : > { %v4969_v42 = vpop.f32.mrf.mxu1  ;;  %1554 = vmatpush.msra.mxu3 %v642_v23  ;;  %v658_v23 = vld [vmem:[%s6211_s2 + $0x438] sm:$0xff] }
 0x131   : > { %1679 = vmatpush.msra.mxu0 %v658_v23  ;;  %v625_v23 = vld [vmem:[%s6211_s2 + $0x330] sm:$0xff] }
 0x132   : > { %v787_v47 = vpop.f32.mrf.mxu2  ;;  %v912_v48 = vpop.f32.mrf.mxu3  ;;  %1430 = vmatpush.msra.mxu2 %v625_v23 }
 0x133   : > { %v788_v58 = vadd.f32 %v4751_v39, %v787_v47  ;;  %v4973_v54 = vpop.f32.mrf.mxu0  ;;  %1351 = vmatmul.f32.gmra.mxu1 %v426_v44  ;;  %v392_v47 = vld [vmem:[%s4467_s18 + $0x8b] sm:$0xff] }
 0x135   : > { %v4977_v6 = vadd.f32 %v912_v48, %v788_v58  ;;  %v356_v48 = vld [vmem:[%s4467_s18 + $0x8a] sm:$0xff] }
 0x136   : > { %1229 = vmatmul.f32.gmra.mxu0 %v391_v1 }
 0x137   : > { %6224 = vst [vmem:[#allocation15_spill] sm:$0xff] %v4977_v6  ;;  %979 = vmatmul.f32.gmra.mxu2 %v353_v62  ;;  %1104 = vmatmul.f32.gmra.mxu3 %v355_v30  ;;  %v2470_v6 = vld [vmem:[#allocation3 + $0x70] sm:$0xff] }
 0x138   : > { %v4982_v14 = vpop.f32.mrf.mxu1  ;;  %2605 = vmatpush.msra.mxu1 %v2470_v6 }
 0x13a   : > { %v790_v28 = vpop.f32.mrf.mxu2  ;;  %v915_v34 = vpop.f32.mrf.mxu3 }
 0x13b   : > { %v791_v44 = vadd.f32 %v4751_v39, %v790_v28  ;;  %v4989_v62 = vpop.f32.mrf.mxu0  ;;  %1354 = vmatmul.f32.gmra.mxu1 %v427_v18 }
 0x13d   : > { %v4993_v58 = vadd.f32 %v915_v34, %v791_v44  ;;  %v393_v44 = vld [vmem:[%s4467_s18 + $0x93] sm:$0xff] }
 0x13e   : > { %1232 = vmatmul.f32.gmra.mxu0 %v392_v47  ;;  %v689_v47 = vadd.f32 %v4751_v39, %v4743_v35 }
 0x13f   : > { %6225 = vst [vmem:[#allocation16_spill] sm:$0xff] %v4993_v58  ;;  %982 = vmatmul.f32.gmra.mxu2 %v354_v9  ;;  %1107 = vmatmul.f32.gmra.mxu3 %v356_v48  ;;  %v357_v9 = vld [vmem:[%s4467_s18 + $0x92] sm:$0xff] }
 0x140   : > { %v4995_v1 = vpop.f32.mrf.mxu1  ;;  %v814_v6 = vadd.f32 %v4756_v41, %v689_v47  ;;  %v641_v41 = vld [vmem:[%s6211_s2 + $0x3b0] sm:$0xff] }
 0x141   : > { %1555 = vmatpush.msra.mxu3 %v641_v41  ;;  %v2469_v41 = vld [vmem:[#allocation3 + $0x68] sm:$0xff] }
 0x142   : > { %v793_v28 = vpop.f32.mrf.mxu2  ;;  %v918_v25 = vpop.f32.mrf.mxu3  ;;  %2606 = vmatpush.msra.mxu1 %v2469_v41 }
 0x143   : > { %v794_v18 = vadd.f32 %v4751_v39, %v793_v28  ;;  %v1188_v34 = vpop.f32.mrf.mxu0  ;;  %1357 = vmatmul.f32.gmra.mxu1 %v428_v13 }
 0x145   : > { %v5006_v58 = vadd.f32 %v918_v25, %v794_v18  ;;  %v358_v25 = vld [vmem:[%s4467_s18 + $0x9a] sm:$0xff] }
 0x146   : > { %1235 = vmatmul.f32.gmra.mxu0 %v393_v44 }
 0x147   : > { %6226 = vst [vmem:[#allocation17_spill] sm:$0xff] %v5006_v58  ;;  %985 = vmatmul.f32.gmra.mxu2 %v355_v30  ;;  %1110 = vmatmul.f32.gmra.mxu3 %v357_v9  ;;  %v692_v30 = vadd.f32 %v4751_v39, %v4760_v46  ;;  %v395_v58 = vld [vmem:[%s4467_s18 + $0xa3] sm:$0xff] }
 0x148   : > { %v1313_v0 = vpop.f32.mrf.mxu1 }
 0x14a   : > { %v938_v13 = vpop.f32.mrf.mxu2  ;;  %v1063_v28 = vpop.f32.mrf.mxu3 }
 0x14b   : > { %v939_v12 = vadd.f32 %v938_v13, %v814_v6  ;;  %v1191_v35 = vpop.f32.mrf.mxu0  ;;  %1360 = vmatmul.f32.gmra.mxu1 %v429_v33  ;;  %v430_v6 = vld [vmem:[%s4467_s18 + $0x9c] sm:$0xff]  ;;  %v817_v33 = vadd.f32 %v4770_v52, %v692_v30  ;;  %v657_v52 = vld [vmem:[%s6211_s2 + $0x430] sm:$0xff]  ;;  %v431_v30 = vld [vmem:[%s4467_s18 + $0xa4] sm:$0xff] }
 0x14c   : > { %1680 = vmatpush.msra.mxu0 %v657_v52 }
 0x14d   : > { %v1064_v18 = vadd.f32 %v1063_v28, %v939_v12 }
 0x14e   : > { %1238 = vmatmul.f32.gmra.mxu0 %v394_v55  ;;  %v695_v55 = vadd.f32 %v4751_v39, %v4774_v57 }
 0x14f   : > { %988 = vmatmul.f32.gmra.mxu2 %v356_v48  ;;  %1113 = vmatmul.f32.gmra.mxu3 %v358_v25  ;;  %v1189_v44 = vadd.f32 %v1188_v34, %v1064_v18 }
 0x150   : > { %v1316_v47 = vpop.f32.mrf.mxu1  ;;  %v820_v18 = vadd.f32 %v4784_v63, %v695_v55  ;;  %v640_v63 = vld [vmem:[%s6211_s2 + $0x3a8] sm:$0xff] }
 0x151   : > { %v5022_v23 = vadd.f32 %v1313_v0, %v1189_v44  ;;  %1556 = vmatpush.msra.mxu3 %v640_v63 }
 0x152   : > { %v941_v13 = vpop.f32.mrf.mxu2  ;;  %v1066_v46 = vpop.f32.mrf.mxu3 }
 0x153   : > { %v942_v12 = vadd.f32 %v941_v13, %v817_v33  ;;  %v1194_v28 = vpop.f32.mrf.mxu0  ;;  %1363 = vmatmul.f32.gmra.mxu1 %v430_v6 }
 0x155   : > { %v1067_v48 = vadd.f32 %v1066_v46, %v942_v12  ;;  %v396_v46 = vld [vmem:[%s4467_s18 + $0xab] sm:$0xff] }
 0x156   : > { %1241 = vmatmul.f32.gmra.mxu0 %v395_v58  ;;  %v360_v58 = vld [vmem:[%s4467_s18 + $0xaa] sm:$0xff] }
 0x157   : > { %991 = vmatmul.f32.gmra.mxu2 %v357_v9  ;;  %1116 = vmatmul.f32.gmra.mxu3 %v359_v36  ;;  %v1192_v0 = vadd.f32 %v1191_v35, %v1067_v48  ;;  %v698_v9 = vadd.f32 %v4751_v39, %v4788_v4  ;;  %v624_v35 = vld [vmem:[%s6211_s2 + $0x328] sm:$0xff] }
 0x158   : > { %v1319_v34 = vpop.f32.mrf.mxu1  ;;  %1431 = vmatpush.msra.mxu2 %v624_v35  ;;  %v432_v48 = vld [vmem:[%s4467_s18 + $0xac] sm:$0xff] }
 0x159   : > { %v5033_v44 = vadd.f32 %v1316_v47, %v1192_v0  ;;  %v823_v4 = vadd.f32 %v4801_v11, %v698_v9  ;;  %v656_v11 = vld [vmem:[%s6211_s2 + $0x428] sm:$0xff]  ;;  %v433_v9 = vld [vmem:[%s4467_s18 + $0xb4] sm:$0xff] }
 0x15a   : > { %v944_v57 = vpop.f32.mrf.mxu2  ;;  %v1069_v6 = vpop.f32.mrf.mxu3  ;;  %1681 = vmatpush.msra.mxu0 %v656_v11 }
 0x15b   : > { %v945_v33 = vadd.f32 %v944_v57, %v820_v18  ;;  %v1197_v13 = vpop.f32.mrf.mxu0  ;;  %1366 = vmatmul.f32.gmra.mxu1 %v431_v30  ;;  %v397_v57 = vld [vmem:[%s4467_s18 + $0xb3] sm:$0xff] }
 0x15d   : > { %v1070_v12 = vadd.f32 %v1069_v6, %v945_v33  ;;  %v361_v6 = vld [vmem:[%s4467_s18 + $0xb2] sm:$0xff] }
 0x15e   : > { %1244 = vmatmul.f32.gmra.mxu0 %v396_v46 }
 0x15f   : > { %994 = vmatmul.f32.gmra.mxu2 %v358_v25  ;;  %1119 = vmatmul.f32.gmra.mxu3 %v360_v58  ;;  %v1195_v47 = vadd.f32 %v1194_v28, %v1070_v12  ;;  %v701_v25 = vadd.f32 %v4751_v39, %v4805_v16  ;;  %v2468_v28 = vld [vmem:[#allocation3 + $0x60] sm:$0xff] }
 0x160   : > { %v1322_v55 = vpop.f32.mrf.mxu1  ;;  %2607 = vmatpush.msra.mxu1 %v2468_v28 }
 0x161   : > { %v5047_v41 = vadd.f32 %v1319_v34, %v1195_v47  ;;  %v826_v12 = vadd.f32 %v4814_v21, %v701_v25 }
 0x162   : > { %v947_v52 = vpop.f32.mrf.mxu2  ;;  %v1072_v0 = vpop.f32.mrf.mxu3 }
 0x163   : > { %v948_v30 = vadd.f32 %v947_v52, %v823_v4  ;;  %v1200_v18 = vpop.f32.mrf.mxu0  ;;  %1369 = vmatmul.f32.gmra.mxu1 %v432_v48  ;;  %v398_v4 = vld [vmem:[%s4467_s18 + $0xbb] sm:$0xff] }
 0x164   : > { %v362_v52 = vld [vmem:[%s4467_s18 + $0xba] sm:$0xff] }
 0x165   : > { %v1073_v33 = vadd.f32 %v1072_v0, %v948_v30 }
 0x166   : > { %1247 = vmatmul.f32.gmra.mxu0 %v397_v57  ;;  %v434_v57 = vld [vmem:[%s4467_s18 + $0xbc] sm:$0xff] }
 0x167   : > { %997 = vmatmul.f32.gmra.mxu2 %v359_v36  ;;  %1122 = vmatmul.f32.gmra.mxu3 %v361_v6  ;;  %v1198_v34 = vadd.f32 %v1197_v13, %v1073_v33  ;;  %v704_v36 = vadd.f32 %v4751_v39, %v4818_v26  ;;  %v623_v13 = vld [vmem:[%s6211_s2 + $0x320] sm:$0xff] }
 0x168   : > { %v1325_v46 = vpop.f32.mrf.mxu1  ;;  %1432 = vmatpush.msra.mxu2 %v623_v13 }
 0x169   : > { %v5058_v35 = vadd.f32 %v1322_v55, %v1198_v34  ;;  %v639_v55 = vld [vmem:[%s6211_s2 + $0x3a0] sm:$0xff]  ;;  %v829_v26 = vadd.f32 %v4830_v32, %v704_v36 }
 0x16a   : > { %v950_v16 = vpop.f32.mrf.mxu2  ;;  %v1075_v63 = vpop.f32.mrf.mxu3  ;;  %1557 = vmatpush.msra.mxu3 %v639_v55  ;;  %v400_v55 = vld [vmem:[%s4467_s18 + $0xcb] sm:$0xff] }
 0x16b   : > { %v951_v47 = vadd.f32 %v950_v16, %v826_v12  ;;  %v1203_v48 = vpop.f32.mrf.mxu0  ;;  %1372 = vmatmul.f32.gmra.mxu1 %v433_v9  ;;  %v399_v9 = vld [vmem:[%s4467_s18 + $0xc3] sm:$0xff]  ;;  %v2467_v16 = vld [vmem:[#allocation3 + $0x58] sm:$0xff] }
 0x16c   : > { %2608 = vmatpush.msra.mxu1 %v2467_v16  ;;  %v365_v16 = vld [vmem:[%s4467_s18 + $0xd2] sm:$0xff] }
 0x16d   : > { %v1076_v0 = vadd.f32 %v1075_v63, %v951_v47  ;;  %v435_v47 = vld [vmem:[%s4467_s18 + $0xc4] sm:$0xff] }
 0x16e   : > { %1250 = vmatmul.f32.gmra.mxu0 %v398_v4 }
 0x16f   : > { %1000 = vmatmul.f32.gmra.mxu2 %v360_v58  ;;  %1125 = vmatmul.f32.gmra.mxu3 %v362_v52  ;;  %v1201_v21 = vadd.f32 %v1200_v18, %v1076_v0  ;;  %v363_v58 = vld [vmem:[%s4467_s18 + $0xc2] sm:$0xff]  ;;  %v707_v18 = vadd.f32 %v4751_v39, %v4834_v38 }
 0x170   : > { %v1328_v30 = vpop.f32.mrf.mxu1 }
 0x171   : > { %v5072_v25 = vadd.f32 %v1325_v46, %v1201_v21  ;;  %v655_v46 = vld [vmem:[%s6211_s2 + $0x420] sm:$0xff]  ;;  %v832_v4 = vadd.f32 %v4843_v45, %v707_v18 }
 0x172   : > { %v953_v33 = vpop.f32.mrf.mxu2  ;;  %v1078_v28 = vpop.f32.mrf.mxu3  ;;  %1682 = vmatpush.msra.mxu0 %v655_v46 }
 0x173   : > { %v954_v11 = vadd.f32 %v953_v33, %v829_v26  ;;  %v1206_v34 = vpop.f32.mrf.mxu0  ;;  %1375 = vmatmul.f32.gmra.mxu1 %v434_v57  ;;  %v436_v33 = vld [vmem:[%s4467_s18 + $0xcc] sm:$0xff] }
 0x175   : > { %v1079_v12 = vadd.f32 %v1078_v28, %v954_v11 }
 0x176   : > { %1253 = vmatmul.f32.gmra.mxu0 %v399_v9 }
 0x177   : > { %1003 = vmatmul.f32.gmra.mxu2 %v361_v6  ;;  %1128 = vmatmul.f32.gmra.mxu3 %v363_v58  ;;  %v1204_v32 = vadd.f32 %v1203_v48, %v1079_v12  ;;  %v364_v6 = vld [vmem:[%s4467_s18 + $0xca] sm:$0xff]  ;;  %v710_v48 = vadd.f32 %v4751_v39, %v4847_v53  ;;  %v638_v53 = vld [vmem:[%s6211_s2 + $0x398] sm:$0xff] }
 0x178   : > { %v1331_v63 = vpop.f32.mrf.mxu1  ;;  %1558 = vmatpush.msra.mxu3 %v638_v53  ;;  %v401_v12 = vld [vmem:[%s4467_s18 + $0xd3] sm:$0xff]  ;;  %v1905_v53 = vld [vmem:[%s6210_s1 + $0x8] sm:$0xff] }
 0x179   : > { %v5083_v36 = vadd.f32 %v1328_v30, %v1204_v32  ;;  %v622_v30 = vld [vmem:[%s6211_s2 + $0x318] sm:$0xff]  ;;  %v835_v28 = vadd.f32 %v4859_v60, %v710_v48  ;;  %v713_v32 = vadd.f32 %v4751_v39, %v4863_v3  ;;  %v2466_v3 = vld [vmem:[#allocation3 + $0x50] sm:$0xff] }
 0x17a   : > { %v956_v38 = vpop.f32.mrf.mxu2  ;;  %v1081_v0 = vpop.f32.mrf.mxu3  ;;  %1433 = vmatpush.msra.mxu2 %v622_v30  ;;  %2609 = vmatpush.msra.mxu1 %v2466_v3  ;;  %v366_v30 = vld [vmem:[%s4467_s18 + $0xda] sm:$0xff] }
 0x17b   : > { %v957_v13 = vadd.f32 %v956_v38, %v832_v4  ;;  %v1209_v21 = vpop.f32.mrf.mxu0  ;;  %1378 = vmatmul.f32.gmra.mxu1 %v435_v47  ;;  %v437_v47 = vld [vmem:[%s4467_s18 + $0xd4] sm:$0xff]  ;;  %v4278_v4 = vmov 0   ;;  %v1904_v38 = vld [vmem:[%s6210_s1] sm:$0xff] }
 0x17c   : > { %4136 = vset.pattern.permute.xlu0 %v4278_v4  ;;  %4137 = vset.pattern.permute.xlu1 %v4278_v4 }
 0x17d   : > { %v1082_v57 = vadd.f32 %v1081_v0, %v957_v13  ;;  %v838_v0 = vadd.f32 %v4872_v10, %v713_v32  ;;  %1942 = vperm.xlu0 %4136, %v1904_v38   ;;  %4138 = vset.pattern.permute.xlu2 %v4278_v4  ;;  %v716_v10 = vadd.f32 %v4751_v39, %v4876_v17  ;;  %v621_v17 = vld [vmem:[%s6211_s2 + $0x310] sm:$0xff]  ;;  %v439_v38 = vld [vmem:[%s4467_s18 + $0xe4] sm:$0xff] }
 0x17e   : > { %1256 = vmatmul.f32.gmra.mxu0 %v400_v55  ;;  %1434 = vmatpush.msra.mxu2 %v621_v17 }
 0x17f   : > { %1006 = vmatmul.f32.gmra.mxu2 %v362_v52  ;;  %1131 = vmatmul.f32.gmra.mxu3 %v364_v6  ;;  %v1207_v45 = vadd.f32 %v1206_v34, %v1082_v57 }
 0x180   : > { %v1334_v26 = vpop.f32.mrf.mxu1 }
 0x181   : > { %v5094_v11 = vadd.f32 %v1331_v63, %v1207_v45  ;;  %v402_v45 = vld [vmem:[%s4467_s18 + $0xdb] sm:$0xff] }
 0x182   : > { %v959_v52 = vpop.f32.mrf.mxu2  ;;  %v1084_v9 = vpop.f32.mrf.mxu3 }
 0x183   : > { %v960_v34 = vadd.f32 %v959_v52, %v835_v28  ;;  %v1212_v18 = vpop.f32.mrf.mxu0  ;;  %1381 = vmatmul.f32.gmra.mxu1 %v436_v33  ;;  %v438_v28 = vld [vmem:[%s4467_s18 + $0xdc] sm:$0xff]  ;;  %v841_v52 = vadd.f32 %v4885_v24, %v716_v10  ;;  %v719_v24 = vadd.f32 %v4751_v39, %v4889_v31  ;;  %v1910_v39 = vld [vmem:[%s6210_s1 + $0x30] sm:$0xff] }
 0x184   : > { %v5149_v10 = vld [vmem:[%s6212_s3] ss:$0 sm:$0xff] }
 0x185   : > { %v1085_v46 = vadd.f32 %v1084_v9, %v960_v34  ;;  %1947 = vperm.xlu0 %4136, %v1905_v53   ;;  %v844_v31 = vadd.f32 %v4898_v40, %v719_v24  ;;  %v722_v40 = vadd.f32 %v5149_v10, %v4902_v49  ;;  %v1913_v49 = vld [vmem:[%s6210_s1 + $0x48] sm:$0xff]  ;;  %v369_v24 = vld [vmem:[%s4467_s18 + $0xf2] sm:$0xff] }
 0x186   : > { %1259 = vmatmul.f32.gmra.mxu0 %v401_v12 }
 0x187   : > { %1009 = vmatmul.f32.gmra.mxu2 %v363_v58  ;;  %1134 = vmatmul.f32.gmra.mxu3 %v365_v16  ;;  %v1210_v60 = vadd.f32 %v1209_v21, %v1085_v46  ;;  %v654_v58 = vld [vmem:[%s6211_s2 + $0x418] sm:$0xff]  ;;  %v403_v46 = vld [vmem:[%s4467_s18 + $0xe3] sm:$0xff]  ;;  %v847_v17 = vadd.f32 %v4911_v59, %v722_v40 }
 0x188   : > { %v1337_v63 = vpop.f32.mrf.mxu1  ;;  %1683 = vmatpush.msra.mxu0 %v654_v58  ;;  %v620_v59 = vld [vmem:[%s6211_s2 + $0x308] sm:$0xff]  ;;  %v370_v40 = vld [vmem:[%s4467_s18 + $0xfa] sm:$0xff] }
 0x189   : > { %v5108_v13 = vadd.f32 %v1334_v26, %v1210_v60  ;;  %v367_v60 = vld [vmem:[%s4467_s18 + $0xe2] sm:$0xff]  ;;  %1435 = vmatpush.msra.mxu2 %v620_v59 }
 0x18a   : > { %v962_v21 = vpop.f32.mrf.mxu2  ;;  %v1087_v55 = vpop.f32.mrf.mxu3  ;;  %v635_v59 = vld [vmem:[%s6211_s2 + $0x380] sm:$0xff] }
 0x18b   : > { %v963_v48 = vadd.f32 %v962_v21, %v838_v0  ;;  %v1215_v57 = vpop.f32.mrf.mxu0  ;;  %1384 = vmatmul.f32.gmra.mxu1 %v437_v47  ;;  %v637_v47 = vld [vmem:[%s6211_s2 + $0x390] sm:$0xff] }
 0x18c   : > { %1559 = vmatpush.msra.mxu3 %v637_v47  ;;  %v1906_v0 = vld [vmem:[%s6210_s1 + $0x10] sm:$0xff] }
 0x18d   : > { %v1088_v26 = vadd.f32 %v1087_v55, %v963_v48  ;;  %1952 = vperm.xlu1 %4137, %v1906_v0   ;;  %1972 = vperm.xlu0 %4136, %v1910_v39   ;;  %v404_v48 = vld [vmem:[%s4467_s18 + $0xeb] sm:$0xff]  ;;  %v441_v39 = vld [vmem:[%s4467_s18 + $0xf4] sm:$0xff] }
 0x18e   : > { %1262 = vmatmul.f32.gmra.mxu0 %v402_v45 }
 0x18f   : > { %1012 = vmatmul.f32.gmra.mxu2 %v364_v6  ;;  %1137 = vmatmul.f32.gmra.mxu3 %v366_v30  ;;  %v1213_v33 = vadd.f32 %v1212_v18, %v1088_v26 }
 0x190   : > { %v1340_v34 = vpop.f32.mrf.mxu1 }
 0x191   : > { %v5122_v9 = vadd.f32 %v1337_v63, %v1213_v33  ;;  %v2465_v33 = vld [vmem:[#allocation3 + $0x48] sm:$0xff] }
 0x192   : > { %v965_v12 = vpop.f32.mrf.mxu2  ;;  %v1090_v6 = vpop.f32.mrf.mxu3  ;;  %2610 = vmatpush.msra.mxu1 %v2465_v33 }
 0x193   : > { %v966_v18 = vadd.f32 %v965_v12, %v841_v52  ;;  %v1218_v32 = vpop.f32.mrf.mxu0  ;;  %1387 = vmatmul.f32.gmra.mxu1 %v438_v28  ;;  %v653_v28 = vld [vmem:[%s6211_s2 + $0x410] sm:$0xff] }
 0x194   : > { %v440_v52 = vld [vmem:[%s4467_s18 + $0xec] sm:$0xff]  ;;  %1684 = vmatpush.msra.mxu0 %v653_v28  ;;  %v2464_v28 = vld [vmem:[#allocation3 + $0x40] sm:$0xff] }
 0x195   : > { %v1091_v63 = vadd.f32 %v1090_v6, %v966_v18  ;;  %1987 = vperm.xlu0 %4136, %v1913_v49   ;;  %2611 = vmatpush.msra.mxu1 %v2464_v28 }
 0x196   : > { %1265 = vmatmul.f32.gmra.mxu0 %v403_v46  ;;  %v405_v46 = vld [vmem:[%s4467_s18 + $0xf3] sm:$0xff] }
 0x197   : > { %1015 = vmatmul.f32.gmra.mxu2 %v365_v16  ;;  %1140 = vmatmul.f32.gmra.mxu3 %v367_v60  ;;  %v1216_v4 = vadd.f32 %v1215_v57, %v1091_v63  ;;  %v368_v57 = vld [vmem:[%s4467_s18 + $0xea] sm:$0xff]  ;;  %v725_v63 = vadd.f32 %v5149_v10, %v4915_v5  ;;  %v1911_v5 = vld [vmem:[%s6210_s1 + $0x38] sm:$0xff] }
 0x198   : > { %v1343_v45 = vpop.f32.mrf.mxu1 }
 0x199   : > { %v5142_v3 = vadd.f32 %v1340_v34, %v1216_v4  ;;  %v1907_v34 = vld [vmem:[%s6210_s1 + $0x18] sm:$0xff]  ;;  %v636_v4 = vld [vmem:[%s6211_s2 + $0x388] sm:$0xff] }
 0x19a   : > { %v968_v58 = vpop.f32.mrf.mxu2  ;;  %v1093_v16 = vpop.f32.mrf.mxu3  ;;  %1957 = vperm.xlu1 %4137, %v1907_v34   ;;  %1560 = vmatpush.msra.mxu3 %v636_v4  ;;  %v1919_v34 = vld [vmem:[%s6210_s1 + $0x78] sm:$0xff]  ;;  %v443_v4 = vld [vmem:[%s4467_s18 + $0x104] sm:$0xff] }
 0x19b   : > { %v969_v21 = vadd.f32 %v968_v58, %v844_v31  ;;  %v1221_v55 = vpop.f32.mrf.mxu0  ;;  %1390 = vmatmul.f32.gmra.mxu1 %v439_v38  ;;  %v1916_v31 = vld [vmem:[%s6210_s1 + $0x60] sm:$0xff]  ;;  %v850_v58 = vadd.f32 %v4927_v15, %v725_v63  ;;  %v652_v15 = vld [vmem:[%s6211_s2 + $0x408] sm:$0xff] }
 0x19c   : > { %1685 = vmatpush.msra.mxu0 %v652_v15  ;;  %1561 = vmatpush.msra.mxu3 %v635_v59 }
 0x19d   : > { %v1094_v26 = vadd.f32 %v1093_v16, %v969_v21  ;;  %2002 = vperm.xlu0 %4136, %v1916_v31  }
 0x19e   : > { %1268 = vmatmul.f32.gmra.mxu0 %v404_v48 }
 0x19f   : > { %1018 = vmatmul.f32.gmra.mxu2 %v366_v30  ;;  %1143 = vmatmul.f32.gmra.mxu3 %v368_v57  ;;  %v1219_v53 = vadd.f32 %v1218_v32, %v1094_v26  ;;  %v728_v26 = vadd.f32 %v5149_v10, %v4931_v27  ;;  %v1914_v27 = vld [vmem:[%s6210_s1 + $0x50] sm:$0xff] }
 0x1a0   : > { %v1346_v38 = vpop.f32.mrf.mxu1 }
 0x1a1   : > { %v5164_v12 = vadd.f32 %v1343_v45, %v1219_v53  ;;  %v406_v45 = vld [vmem:[%s4467_s18 + $0xfb] sm:$0xff]  ;;  %v853_v49 = vadd.f32 %v4940_v37, %v728_v26 }
 0x1a2   : > { %v971_v30 = vpop.f32.mrf.mxu2  ;;  %v1096_v6 = vpop.f32.mrf.mxu3  ;;  %1977 = vperm.xlu1 %4137, %v1911_v5   ;;  %v651_v26 = vld [vmem:[%s6211_s2 + $0x400] sm:$0xff] }
 0x1a3   : > { %v972_v18 = vadd.f32 %v971_v30, %v847_v17  ;;  %v1224_v32 = vpop.f32.mrf.mxu0  ;;  %1393 = vmatmul.f32.gmra.mxu1 %v440_v52  ;;  %v442_v52 = vld [vmem:[%s4467_s18 + $0xfc] sm:$0xff]  ;;  %1686 = vmatpush.msra.mxu0 %v651_v26 }
 0x1a4   : > { %v375_v26 = vld [vmem:[%s4467_s18 + $0x122] sm:$0xff] }
 0x1a5   : > { %v1097_v47 = vadd.f32 %v1096_v6, %v972_v18  ;;  %2017 = vperm.xlu0 %4136, %v1919_v34   ;;  %v407_v18 = vld [vmem:[%s4467_s18 + $0x103] sm:$0xff] }
 0x1a6   : > { %1271 = vmatmul.f32.gmra.mxu0 %v405_v46  ;;  %v731_v46 = vadd.f32 %v5149_v10, %v4944_v51  ;;  %v1917_v51 = vld [vmem:[%s6210_s1 + $0x68] sm:$0xff] }
 0x1a7   : > { %1021 = vmatmul.f32.gmra.mxu2 %v367_v60  ;;  %1146 = vmatmul.f32.gmra.mxu3 %v369_v24  ;;  %v1222_v0 = vadd.f32 %v1221_v55, %v1097_v47  ;;  %v619_v47 = vld [vmem:[%s6211_s2 + $0x300] sm:$0xff] }
 0x1a8   : > { %1436 = vmatpush.msra.mxu2 %v619_v47 }
 0x1a9   : > { %v5184_v16 = vadd.f32 %v1346_v38, %v1222_v0  ;;  %v1922_v38 = vld [vmem:[%s6210_s1 + $0x90] sm:$0xff] }
 0x1aa   : > { %v974_v60 = vpop.f32.mrf.mxu2  ;;  %v1099_v21 = vpop.f32.mrf.mxu3  ;;  %1992 = vperm.xlu1 %4137, %v1914_v27  }
 0x1ab   : > { %v975_v55 = vadd.f32 %v974_v60, %v850_v58  ;;  %v1227_v48 = vpop.f32.mrf.mxu0  ;;  %1396 = vmatmul.f32.gmra.mxu1 %v441_v39  ;;  %v408_v58 = vld [vmem:[%s4467_s18 + $0x10b] sm:$0xff] }
 0x1ac   : > { %v372_v60 = vld [vmem:[%s4467_s18 + $0x10a] sm:$0xff] }
 0x1ad   : > { %v1100_v33 = vadd.f32 %v1099_v21, %v975_v55  ;;  %2032 = vperm.xlu0 %4136, %v1922_v38   ;;  %v734_v21 = vadd.f32 %v5149_v10, %v4960_v20  ;;  %v1908_v20 = vld [vmem:[%s6210_s1 + $0x20] sm:$0xff] }
 0x1ae   : > { %1274 = vmatmul.f32.gmra.mxu0 %v406_v45  ;;  %v444_v45 = vld [vmem:[%s4467_s18 + $0x10c] sm:$0xff]  ;;  %1962 = vperm.xlu2 %4138, %v1908_v20   ;;  %v374_v38 = vld [vmem:[%s4467_s18 + $0x11a] sm:$0xff] }
 0x1af   : > { %1024 = vmatmul.f32.gmra.mxu2 %v368_v57  ;;  %1149 = vmatmul.f32.gmra.mxu3 %v370_v40  ;;  %v5193_v53 = vadd.f32 %v1224_v32, %v1100_v33  ;;  %v371_v32 = vld [vmem:[%s4467_s18 + $0x102] sm:$0xff]  ;;  %v859_v28 = vadd.f32 %v4969_v42, %v734_v21 }
 0x1b0   : > { %v1920_v33 = vld [vmem:[%s6210_s1 + $0x80] sm:$0xff] }
 0x1b2   : > { %v977_v17 = vpop.f32.mrf.mxu2  ;;  %v1102_v57 = vpop.f32.mrf.mxu3  ;;  %2007 = vperm.xlu1 %4137, %v1917_v51   ;;  %v410_v51 = vld [vmem:[%s4467_s18 + $0x11b] sm:$0xff] }
 0x1b3   : > { %v978_v30 = vadd.f32 %v977_v17, %v853_v49  ;;  %v1230_v6 = vpop.f32.mrf.mxu0  ;;  %1399 = vmatmul.f32.gmra.mxu1 %v442_v52  ;;  %v409_v49 = vld [vmem:[%s4467_s18 + $0x113] sm:$0xff] }
 0x1b4   : > { %v373_v17 = vld [vmem:[%s4467_s18 + $0x112] sm:$0xff] }
 0x1b5   : > { %v1103_v63 = vadd.f32 %v1102_v57, %v978_v30  ;;  %v737_v57 = vadd.f32 %v5149_v10, %v4973_v54  ;;  %v1928_v54 = vld [vmem:[%s6210_s1 + $0xc0] sm:$0xff] }
 0x1b6   : > { %1277 = vmatmul.f32.gmra.mxu0 %v407_v18  ;;  %v1909_v18 = vld [vmem:[%s6210_s1 + $0x28] sm:$0xff] }
 0x1b7   : > { %1027 = vmatmul.f32.gmra.mxu2 %v369_v24  ;;  %1152 = vmatmul.f32.gmra.mxu3 %v371_v32  ;;  %v5210_v37 = vadd.f32 %v1227_v48, %v1103_v63  ;;  %v856_v24 = vadd.f32 %v4956_v2, %v731_v46  ;;  %v2463_v48 = vld [vmem:[#allocation3 + $0x38] sm:$0xff]  ;;  %v1923_v46 = vld [vmem:[%s6210_s1 + $0x98] sm:$0xff]  ;;  %v862_v63 = vadd.f32 %v4982_v14, %v737_v57 }
 0x1b8   : > { %2612 = vmatpush.msra.mxu1 %v2463_v48  ;;  %1967 = vperm.xlu2 %4138, %v1909_v18   ;;  %v376_v57 = vld [vmem:[%s4467_s18 + $0x12a] sm:$0xff] }
 0x1b9   : > { %v448_v18 = vld [vmem:[%s4467_s18 + $0x12c] sm:$0xff] }
 0x1ba   : > { %v980_v0 = vpop.f32.mrf.mxu2  ;;  %v1105_v39 = vpop.f32.mrf.mxu3  ;;  %2022 = vperm.xlu1 %4137, %v1920_v33   ;;  %v447_v33 = vld [vmem:[%s4467_s18 + $0x124] sm:$0xff] }
 0x1bb   : > { %v981_v5 = vadd.f32 %v980_v0, %v856_v24  ;;  %v1233_v31 = vpop.f32.mrf.mxu0  ;;  %1402 = vmatmul.f32.gmra.mxu1 %v443_v4  ;;  %v740_v24 = vadd.f32 %v5149_v10, %v4989_v62  ;;  %v1931_v62 = vld [vmem:[%s6210_s1 + $0xd8] sm:$0xff] }
 0x1bd   : > { %v1106_v55 = vadd.f32 %v1105_v39, %v981_v5  ;;  %v446_v39 = vld [vmem:[%s4467_s18 + $0x11c] sm:$0xff]  ;;  %v865_v10 = vadd.f32 %v4995_v1, %v740_v24 }
 0x1be   : > { %1280 = vmatmul.f32.gmra.mxu0 %v408_v58  ;;  %v1912_v5 = vld [vmem:[%s6210_s1 + $0x40] sm:$0xff]  ;;  %v2462_v58 = vld [vmem:[#allocation3 + $0x30] sm:$0xff] }
 0x1bf   : > { %1030 = vmatmul.f32.gmra.mxu2 %v370_v40  ;;  %1155 = vmatmul.f32.gmra.mxu3 %v372_v60  ;;  %v5227_v2 = vadd.f32 %v1230_v6, %v1106_v55  ;;  %v1925_v40 = vld [vmem:[%s6210_s1 + $0xa8] sm:$0xff]  ;;  %v445_v6 = vld [vmem:[%s4467_s18 + $0x114] sm:$0xff]  ;;  %v2461_v24 = vld [vmem:[#allocation3 + $0x28] sm:$0xff] }
 0x1c0   : > { %2047 = vperm.xlu0 %4136, %v1925_v40   ;;  %1982 = vperm.xlu2 %4138, %v1912_v5   ;;  %v1915_v40 = vld [vmem:[%s6210_s1 + $0x58] sm:$0xff] }
 0x1c1   : > { %2613 = vmatpush.msra.mxu1 %v2462_v58  ;;  %v1935_v5 = vld [vmem:[%s6210_s1 + $0xf8] sm:$0xff] }
 0x1c2   : > { %v983_v15 = vpop.f32.mrf.mxu2  ;;  %v1108_v52 = vpop.f32.mrf.mxu3  ;;  %2037 = vperm.xlu1 %4137, %v1923_v46   ;;  %v1918_v46 = vld [vmem:[%s6210_s1 + $0x70] sm:$0xff] }
 0x1c3   : > { %v984_v27 = vadd.f32 %v983_v15, %v859_v28  ;;  %v1236_v34 = vpop.f32.mrf.mxu0  ;;  %1405 = vmatmul.f32.gmra.mxu1 %v444_v45  ;;  %v411_v45 = vld [vmem:[%s4467_s18 + $0x123] sm:$0xff]  ;;  %v1934_v15 = vld [vmem:[%s6210_s1 + $0xf0] sm:$0xff] }
 0x1c4   : > { %v1929_v28 = vld [vmem:[%s6210_s1 + $0xc8] sm:$0xff]  ;;  %2614 = vmatpush.msra.mxu1 %v2461_v24 }
 0x1c5   : > { %v1109_v30 = vadd.f32 %v1108_v52, %v984_v27 }
 0x1c6   : > { %1283 = vmatmul.f32.gmra.mxu0 %v409_v49 }
 0x1c7   : > { %1033 = vmatmul.f32.gmra.mxu2 %v371_v32  ;;  %1158 = vmatmul.f32.gmra.mxu3 %v373_v17  ;;  %v5247_v42 = vadd.f32 %v1233_v31, %v1109_v30  ;;  %v1926_v31 = vld [vmem:[%s6210_s1 + $0xb0] sm:$0xff] }
 0x1c8   : > { %2062 = vperm.xlu0 %4136, %v1928_v54   ;;  %1997 = vperm.xlu2 %4138, %v1915_v40   ;;  %v1937_v54 = vld [vmem:[%s6210_s1 + $0x108] sm:$0xff] }
 0x1ca   : > { %v986_v32 = vpop.f32.mrf.mxu2  ;;  %v1111_v47 = vpop.f32.mrf.mxu3  ;;  %2052 = vperm.xlu1 %4137, %v1926_v31  }
 0x1cb   : > { %v987_v59 = vadd.f32 %v986_v32, %v862_v63  ;;  %v1239_v4 = vpop.f32.mrf.mxu0  ;;  %1408 = vmatmul.f32.gmra.mxu1 %v445_v6 }
 0x1cd   : > { %v1112_v0 = vadd.f32 %v1111_v47, %v987_v59 }
 0x1ce   : > { %1286 = vmatmul.f32.gmra.mxu0 %v410_v51  ;;  %v451_v51 = vld [vmem:[%s4467_s18 + $0x25] sm:$0xff] }
 0x1cf   : > { %1036 = vmatmul.f32.gmra.mxu2 %v372_v60  ;;  %1161 = vmatmul.f32.gmra.mxu3 %v374_v38  ;;  %v5264_v14 = vadd.f32 %v1236_v34, %v1112_v0  ;;  %v4142_v0 = vld [vmem:[%s4467_s18 + $0x24] sm:$0xff] }
 0x1d0   : > { %2077 = vperm.xlu0 %4136, %v1931_v62   ;;  %2012 = vperm.xlu2 %4138, %v1918_v46  }
 0x1d2   : > { %v989_v60 = vpop.f32.mrf.mxu2  ;;  %v1114_v21 = vpop.f32.mrf.mxu3  ;;  %2067 = vperm.xlu1 %4137, %v1929_v28  }
 0x1d3   : > { %v990_v55 = vadd.f32 %v989_v60, %v865_v10  ;;  %v1242_v48 = vpop.f32.mrf.mxu0  ;;  %1411 = vmatmul.f32.gmra.mxu1 %v446_v39  ;;  %v488_v60 = vld [vmem:[%s4467_s18 + $0x2e] sm:$0xff] }
 0x1d5   : > { %v1115_v20 = vadd.f32 %v1114_v21, %v990_v55  ;;  %v452_v21 = vld [vmem:[%s4467_s18 + $0x2d] sm:$0xff] }
 0x1d6   : > { %1289 = vmatmul.f32.gmra.mxu0 %v411_v45 }
 0x1d7   : > { %1039 = vmatmul.f32.gmra.mxu2 %v373_v17  ;;  %1164 = vmatmul.f32.gmra.mxu3 %v375_v26  ;;  %v5279_v1 = vadd.f32 %v1239_v4, %v1115_v20  ;;  %v412_v17 = vld [vmem:[%s4467_s18 + $0x12b] sm:$0xff]  ;;  %v1924_v26 = vld [vmem:[%s6210_s1 + $0xa0] sm:$0xff] }
 0x1d8   : > { %2092 = vperm.xlu0 %4136, %v1934_v15   ;;  %v487_v4 = vld [vmem:[%s4467_s18 + $0x26] sm:$0xff]  ;;  %v489_v15 = vld [vmem:[%s4467_s18 + $0x36] sm:$0xff] }
 0x1da   : > { %v992_v52 = vpop.f32.mrf.mxu2  ;;  %v1117_v27 = vpop.f32.mrf.mxu3 }
 0x1db   : > { %v993_v34 = vadd.f32 %v992_v52, %v4765_v50  ;;  %v1245_v49 = vpop.f32.mrf.mxu0  ;;  %1414 = vmatmul.f32.gmra.mxu1 %v447_v33  ;;  %v1932_v50 = vld [vmem:[%s6210_s1 + $0xe0] sm:$0xff]  ;;  %v453_v52 = vld [vmem:[%s4467_s18 + $0x35] sm:$0xff] }
 0x1dc   : > { %2082 = vperm.xlu1 %4137, %v1932_v50  }
 0x1dd   : > { %v1118_v30 = vadd.f32 %v1117_v27, %v993_v34  ;;  %v2460_v34 = vld [vmem:[#allocation3 + $0x20] sm:$0xff] }
 0x1de   : > { %1292 = vmatmul.f32.gmra.mxu0 %v412_v17  ;;  %2615 = vmatpush.msra.mxu1 %v2460_v34 }
 0x1df   : > { %1042 = vmatmul.f32.gmra.mxu2 %v374_v38  ;;  %1167 = vmatmul.f32.gmra.mxu3 %v376_v57  ;;  %v5294_v6 = vadd.f32 %v1242_v48, %v1118_v30  ;;  %v4143_v48 = vld [vmem:[%s4467_s18 + $0x2c] sm:$0xff]  ;;  %v1927_v57 = vld [vmem:[%s6210_s1 + $0xb8] sm:$0xff] }
 0x1e0   : > { %2107 = vperm.xlu0 %4136, %v1937_v54   ;;  %v490_v54 = vld [vmem:[%s4467_s18 + $0x3e] sm:$0xff] }
 0x1e2   : > { %v995_v63 = vpop.f32.mrf.mxu2  ;;  %v1120_v32 = vpop.f32.mrf.mxu3 }
 0x1e3   : > { %v996_v47 = vadd.f32 %v995_v63, %v4779_v61  ;;  %v1248_v59 = vpop.f32.mrf.mxu0  ;;  %1417 = vmatmul.f32.gmra.mxu1 %v448_v18  ;;  %v1921_v61 = vld [vmem:[%s6210_s1 + $0x88] sm:$0xff]  ;;  %v454_v63 = vld [vmem:[%s4467_s18 + $0x3d] sm:$0xff] }
 0x1e4   : > { %2027 = vperm.xlu2 %4138, %v1921_v61   ;;  %2097 = vperm.xlu1 %4137, %v1935_v5   ;;  %v491_v61 = vld [vmem:[%s4467_s18 + $0x46] sm:$0xff] }
 0x1e5   : > { %v1121_v38 = vadd.f32 %v1120_v32, %v996_v47  ;;  %v4145_v47 = vld [vmem:[%s4467_s18 + $0x3c] sm:$0xff]  ;;  %v455_v5 = vld [vmem:[%s4467_s18 + $0x45] sm:$0xff] }
 0x1e6   : > { %1687 = vmatmul.f32.vlgmr.msra.gmra.mxu0 %v487_v4  ;;  %v1930_v4 = vld [vmem:[%s6210_s1 + $0xd0] sm:$0xff] }
 0x1e7   : > { %1437 = vmatmul.f32.vlgmr.msra.gmra.mxu2 %v4142_v0  ;;  %1562 = vmatmul.f32.vlgmr.msra.gmra.mxu3 %v451_v51  ;;  %v5310_v39 = vadd.f32 %v1245_v49, %v1121_v38  ;;  %v4144_v49 = vld [vmem:[%s4467_s18 + $0x34] sm:$0xff] }
 0x1ea   : > { %v998_v31 = vpop.f32.mrf.mxu2  ;;  %v1123_v62 = vpop.f32.mrf.mxu3 }
 0x1eb   : > { %v999_v10 = vadd.f32 %v998_v31, %v4793_v8  ;;  %v1251_v58 = vpop.f32.mrf.mxu0  ;;  %v1938_v8 = vld [vmem:[%s6210_s1 + $0x110] sm:$0xff] }
 0x1ec   : > { %2042 = vperm.xlu2 %4138, %v1924_v26   ;;  %2112 = vperm.xlu1 %4137, %v1938_v8   ;;  %v492_v26 = vld [vmem:[%s4467_s18 + $0x4e] sm:$0xff] }
 0x1ed   : > { %v1124_v55 = vadd.f32 %v1123_v62, %v999_v10  ;;  %v2459_v62 = vld [vmem:[#allocation3 + $0x18] sm:$0xff]  ;;  %v4146_v10 = vld [vmem:[%s4467_s18 + $0x44] sm:$0xff] }
 0x1ee   : > { %1690 = vmatmul.f32.gmra.mxu0 %v488_v60  ;;  %2616 = vmatpush.msra.mxu1 %v2459_v62  ;;  %v1933_v60 = vld [vmem:[%s6210_s1 + $0xe8] sm:$0xff] }
 0x1ef   : > { %1440 = vmatmul.f32.gmra.mxu2 %v4143_v48  ;;  %1565 = vmatmul.f32.gmra.mxu3 %v452_v21  ;;  %v5322_v45 = vadd.f32 %v1248_v59, %v1124_v55  ;;  %v456_v8 = vld [vmem:[%s4467_s18 + $0x4d] sm:$0xff] }
 0x1f2   : > { %v1001_v20 = vpop.f32.mrf.mxu2  ;;  %v1126_v33 = vpop.f32.mrf.mxu3 }
 0x1f3   : > { %v1002_v40 = vadd.f32 %v1001_v20, %v4809_v19  ;;  %v1254_v28 = vpop.f32.mrf.mxu0  ;;  %v5339_v19 = vpop.f32.mrf.mxu1 }
 0x1f4   : > { %2057 = vperm.xlu2 %4138, %v1927_v57   ;;  %v457_v57 = vld [vmem:[%s4467_s18 + $0x55] sm:$0xff] }
 0x1f5   : > { %v1127_v27 = vadd.f32 %v1126_v33, %v1002_v40  ;;  %v4147_v40 = vld [vmem:[%s4467_s18 + $0x4c] sm:$0xff] }
 0x1f6   : > { %1693 = vmatmul.f32.gmra.mxu0 %v489_v15  ;;  %v1936_v15 = vld [vmem:[%s6210_s1 + $0x100] sm:$0xff] }
 0x1f7   : > { %1443 = vmatmul.f32.gmra.mxu2 %v4144_v49  ;;  %1568 = vmatmul.f32.gmra.mxu3 %v453_v52  ;;  %v5334_v17 = vadd.f32 %v1251_v58, %v1127_v27  ;;  %v493_v49 = vld [vmem:[%s4467_s18 + $0x56] sm:$0xff] }
 0x1fa   : > { %v1004_v30 = vpop.f32.mrf.mxu2  ;;  %v1129_v18 = vpop.f32.mrf.mxu3 }
 0x1fb   : > { %v1005_v46 = vadd.f32 %v1004_v30, %v4822_v29  ;;  %v1257_v50 = vpop.f32.mrf.mxu0  ;;  %v5350_v38 = vpop.f32.mrf.mxu1 }
 0x1fc   : > { %2072 = vperm.xlu2 %4138, %v1930_v4  }
 0x1fd   : > { %v1130_v32 = vadd.f32 %v1129_v18, %v1005_v46  ;;  %v4148_v46 = vld [vmem:[%s4467_s18 + $0x54] sm:$0xff] }
 0x1fe   : > { %1696 = vmatmul.f32.gmra.mxu0 %v490_v54  ;;  %v1939_v54 = vld [vmem:[%s6210_s1 + $0x118] sm:$0xff] }
 0x1ff   : > { %1446 = vmatmul.f32.gmra.mxu2 %v4145_v47  ;;  %1571 = vmatmul.f32.gmra.mxu3 %v454_v63  ;;  %v5345_v59 = vadd.f32 %v1254_v28, %v1130_v32 }
 0x202   : > { %v1007_v51 = vpop.f32.mrf.mxu2  ;;  %v1132_v29 = vpop.f32.mrf.mxu3 }
 0x203   : > { %v1008_v24 = vadd.f32 %v1007_v51, %v4838_v43  ;;  %v1260_v0 = vpop.f32.mrf.mxu0  ;;  %v5364_v20 = vpop.f32.mrf.mxu1  ;;  %v494_v51 = vld [vmem:[%s4467_s18 + $0x5e] sm:$0xff] }
 0x204   : > { %2087 = vperm.xlu2 %4138, %v1933_v60  }
 0x205   : > { %v1133_v31 = vadd.f32 %v1132_v29, %v1008_v24  ;;  %v458_v29 = vld [vmem:[%s4467_s18 + $0x5d] sm:$0xff] }
 0x206   : > { %1699 = vmatmul.f32.gmra.mxu0 %v491_v61 }
 0x207   : > { %1449 = vmatmul.f32.gmra.mxu2 %v4146_v10  ;;  %1574 = vmatmul.f32.gmra.mxu3 %v455_v5  ;;  %v5356_v58 = vadd.f32 %v1257_v50, %v1133_v31  ;;  %v6227_v10 = vld [vmem:[#allocation9_spill] sm:$0xff] }
 0x20a   : > { %v1010_v43 = vpop.f32.mrf.mxu2  ;;  %v1135_v21 = vpop.f32.mrf.mxu3 }
 0x20b   : > { %v1011_v55 = vadd.f32 %v1010_v43, %v4851_v56  ;;  %v1263_v48 = vpop.f32.mrf.mxu0  ;;  %v5375_v18 = vpop.f32.mrf.mxu1  ;;  %v495_v43 = vld [vmem:[%s4467_s18 + $0x66] sm:$0xff] }
 0x20c   : > { %2102 = vperm.xlu2 %4138, %v1936_v15   ;;  %v6228_v15 = vld [vmem:[#allocation10_spill] sm:$0xff] }
 0x20d   : > { %v1136_v33 = vadd.f32 %v1135_v21, %v1011_v55  ;;  %v459_v21 = vld [vmem:[%s4467_s18 + $0x65] sm:$0xff] }
 0x20e   : > { %1702 = vmatmul.f32.gmra.mxu0 %v492_v26 }
 0x20f   : > { %1452 = vmatmul.f32.gmra.mxu2 %v4147_v40  ;;  %1577 = vmatmul.f32.gmra.mxu3 %v456_v8  ;;  %v5367_v28 = vadd.f32 %v1260_v0, %v1136_v33  ;;  %v4149_v0 = vld [vmem:[%s4467_s18 + $0x5c] sm:$0xff] }
 0x212   : > { %v1013_v56 = vpop.f32.mrf.mxu2  ;;  %v1138_v52 = vpop.f32.mrf.mxu3 }
 0x213   : > { %v1014_v27 = vadd.f32 %v1013_v56, %v4867_v7  ;;  %v1266_v34 = vpop.f32.mrf.mxu0  ;;  %v2458_v7 = vld [vmem:[#allocation3 + $0x10] sm:$0xff]  ;;  %v5389_v5 = vpop.f32.mrf.mxu1 }
 0x214   : > { %2117 = vperm.xlu2 %4138, %v1939_v54   ;;  %2617 = vmatpush.msra.mxu1 %v2458_v7 }
 0x215   : > { %v1139_v30 = vadd.f32 %v1138_v52, %v1014_v27  ;;  %v496_v27 = vld [vmem:[%s4467_s18 + $0x6e] sm:$0xff] }
 0x216   : > { %1705 = vmatmul.f32.gmra.mxu0 %v493_v49 }
 0x217   : > { %1455 = vmatmul.f32.gmra.mxu2 %v4148_v46  ;;  %1580 = vmatmul.f32.gmra.mxu3 %v457_v57  ;;  %v5378_v50 = vadd.f32 %v1263_v48, %v1139_v30  ;;  %v4150_v48 = vld [vmem:[%s4467_s18 + $0x64] sm:$0xff]  ;;  %v4151_v30 = vld [vmem:[%s4467_s18 + $0x6c] sm:$0xff] }
 0x218   : > { %v2457_v57 = vld [vmem:[#allocation3 + $0x8] sm:$0xff] }
 0x219   : > { %2618 = vmatpush.msra.mxu1 %v2457_v57 }
 0x21a   : > { %v1016_v63 = vpop.f32.mrf.mxu2  ;;  %v1141_v32 = vpop.f32.mrf.mxu3 }
 0x21b   : > { %v1017_v47 = vadd.f32 %v1016_v63, %v4880_v22  ;;  %v1269_v4 = vpop.f32.mrf.mxu0  ;;  %v5397_v40 = vpop.f32.mrf.mxu1  ;;  %v6229_v63 = vld [vmem:[#allocation11_spill] sm:$0xff] }
 0x21d   : > { %v1142_v24 = vadd.f32 %v1141_v32, %v1017_v47 }
 0x21e   : > { %1708 = vmatmul.f32.gmra.mxu0 %v494_v51  ;;  %v461_v51 = vld [vmem:[%s4467_s18 + $0x75] sm:$0xff] }
 0x21f   : > { %1458 = vmatmul.f32.gmra.mxu2 %v4149_v0  ;;  %1583 = vmatmul.f32.gmra.mxu3 %v458_v29  ;;  %v5387_v61 = vadd.f32 %v1266_v34, %v1142_v24  ;;  %v460_v34 = vld [vmem:[%s4467_s18 + $0x6d] sm:$0xff] }
 0x220   : > { %v4152_v0 = vld [vmem:[%s4467_s18 + $0x74] sm:$0xff] }
 0x222   : > { %v1019_v31 = vpop.f32.mrf.mxu2  ;;  %v1144_v62 = vpop.f32.mrf.mxu3 }
 0x223   : > { %v1020_v60 = vadd.f32 %v1019_v31, %v6227_v10  ;;  %v1272_v22 = vpop.f32.mrf.mxu0  ;;  %v5408_v29 = vpop.f32.mrf.mxu1 }
 0x225   : > { %v1145_v55 = vadd.f32 %v1144_v62, %v1020_v60  ;;  %v6230_v60 = vld [vmem:[#allocation12_spill] sm:$0xff] }
 0x226   : > { %1711 = vmatmul.f32.gmra.mxu0 %v495_v43 }
 0x227   : > { %1461 = vmatmul.f32.gmra.mxu2 %v4150_v48  ;;  %1586 = vmatmul.f32.gmra.mxu3 %v459_v21  ;;  %v5395_v26 = vadd.f32 %v1269_v4, %v1145_v55  ;;  %v497_v4 = vld [vmem:[%s4467_s18 + $0x76] sm:$0xff]  ;;  %v498_v21 = vld [vmem:[%s4467_s18 + $0x7e] sm:$0xff] }
 0x228   : > { %v462_v55 = vld [vmem:[%s4467_s18 + $0x7d] sm:$0xff] }
 0x22a   : > { %v1022_v8 = vpop.f32.mrf.mxu2  ;;  %v1147_v33 = vpop.f32.mrf.mxu3 }
 0x22b   : > { %v1023_v56 = vadd.f32 %v1022_v8, %v6228_v15  ;;  %v1275_v52 = vpop.f32.mrf.mxu0  ;;  %v2456_v8 = vld [vmem:[#allocation3] sm:$0xff] }
 0x22c   : > { %2619 = vmatpush.msra.mxu1 %v2456_v8  ;;  %v4153_v15 = vld [vmem:[%s4467_s18 + $0x7c] sm:$0xff]  ;;  %v4155_v8 = vld [vmem:[%s4467_s18 + $0x8c] sm:$0xff] }
 0x22d   : > { %v1148_v49 = vadd.f32 %v1147_v33, %v1023_v56  ;;  %v5416_v33 = vpop.f32.mrf.mxu1 }
 0x22e   : > { %1714 = vmatmul.f32.gmra.mxu0 %v496_v27 }
 0x22f   : > { %1464 = vmatmul.f32.gmra.mxu2 %v4151_v30  ;;  %1589 = vmatmul.f32.gmra.mxu3 %v460_v34  ;;  %v5403_v46 = vadd.f32 %v1272_v22, %v1148_v49  ;;  %v6231_v34 = vld [vmem:[#allocation13_spill] sm:$0xff]  ;;  %v499_v30 = vld [vmem:[%s4467_s18 + $0x86] sm:$0xff] }
 0x232   : > { %v1025_v54 = vpop.f32.mrf.mxu2  ;;  %v1150_v7 = vpop.f32.mrf.mxu3 }
 0x233   : > { %v1026_v32 = vadd.f32 %v1025_v54, %v6229_v63  ;;  %v1278_v47 = vpop.f32.mrf.mxu0  ;;  %v463_v54 = vld [vmem:[%s4467_s18 + $0x85] sm:$0xff]  ;;  %v2487_v63 = vld [vmem:[#allocation3 + $0xf8] sm:$0xff] }
 0x234   : > { %2729 = vmatpush.msrb.mxu2 %v2487_v63 }
 0x235   : > { %v1151_v24 = vadd.f32 %v1150_v7, %v1026_v32  ;;  %v2503_v32 = vld [vmem:[#allocation3 + $0x178] sm:$0xff] }
 0x236   : > { %1717 = vmatmul.f32.gmra.mxu0 %v497_v4  ;;  %v4154_v4 = vld [vmem:[%s4467_s18 + $0x84] sm:$0xff]  ;;  %2854 = vmatpush.msrb.mxu3 %v2503_v32  ;;  %v2535_v32 = vld [vmem:[#allocation3 + $0x278] sm:$0xff] }
 0x237   : > { %1467 = vmatmul.f32.gmra.mxu2 %v4152_v0  ;;  %1592 = vmatmul.f32.gmra.mxu3 %v461_v51  ;;  %v5411_v31 = vadd.f32 %v1275_v52, %v1151_v24  ;;  %v5427_v51 = vpop.f32.mrf.mxu1 }
 0x238   : > { %3104 = vmatpush.msrb.mxu1 %v2535_v32 }
 0x23a   : > { %v1028_v62 = vpop.f32.mrf.mxu2  ;;  %v1153_v10 = vpop.f32.mrf.mxu3 }
 0x23b   : > { %v1029_v22 = vadd.f32 %v1028_v62, %v6230_v60  ;;  %v1281_v43 = vpop.f32.mrf.mxu0  ;;  %v6232_v62 = vld [vmem:[#allocation14_spill] sm:$0xff] }
 0x23d   : > { %v1154_v48 = vadd.f32 %v1153_v10, %v1029_v22  ;;  %v500_v22 = vld [vmem:[%s4467_s18 + $0x8e] sm:$0xff] }
 0x23e   : > { %1720 = vmatmul.f32.gmra.mxu0 %v498_v21  ;;  %v464_v21 = vld [vmem:[%s4467_s18 + $0x8d] sm:$0xff] }
 0x23f   : > { %1470 = vmatmul.f32.gmra.mxu2 %v4153_v15  ;;  %1595 = vmatmul.f32.gmra.mxu3 %v462_v55  ;;  %v5419_v56 = vadd.f32 %v1278_v47, %v1154_v48  ;;  %v4279_v48 = vmov 0.0  }
 0x240   : > { %2156 = vst [vmem:[#allocation2] sm:$0xff] %v4279_v48  ;;  %2620 = vmatmul.f32.vlgmr.msra.gmra.mxu1 %v4279_v48 }
 0x241   : > { %2157 = vst [vmem:[#allocation2 + $0x8] sm:$0xff] %v4279_v48 }
 0x242   : > { %v1031_v52 = vpop.f32.mrf.mxu2  ;;  %v1156_v27 = vpop.f32.mrf.mxu3  ;;  %2158 = vst [vmem:[#allocation2 + $0x10] sm:$0x7] %v4279_v48 }
 0x243   : > { %v1032_v49 = vadd.f32 %v1031_v52, %v6231_v34  ;;  %v1284_v57 = vpop.f32.mrf.mxu0  ;;  %v6233_v34 = vld [vmem:[#allocation15_spill] sm:$0xff]  ;;  %2195 = vst [vmem:[#allocation2 + $0x133] sm:$0xff] %v4279_v48 }
 0x244   : > { %2196 = vst [vmem:[#allocation2 + $0x13b] sm:$0xff] %v4279_v48 }
 0x245   : > { %v1157_v7 = vadd.f32 %v1156_v27, %v1032_v49  ;;  %v5435_v27 = vpop.f32.mrf.mxu1  ;;  %2197 = vst [vmem:[#allocation2 + $0x143] sm:$0xff] %v4279_v48 }
 0x246   : > { %1723 = vmatmul.f32.gmra.mxu0 %v499_v30 }
 0x247   : > { %1473 = vmatmul.f32.gmra.mxu2 %v4154_v4  ;;  %1598 = vmatmul.f32.gmra.mxu3 %v463_v54  ;;  %v5425_v47 = vadd.f32 %v1281_v43, %v1157_v7  ;;  %v501_v54 = vld [vmem:[%s4467_s18 + $0x96] sm:$0xff] }
 0x248   : > { %v465_v7 = vld [vmem:[%s4467_s18 + $0x95] sm:$0xff]  ;;  %2623 = vmatmul.f32.gmra.mxu1 %v4279_v48 }
 0x249   : > { %v4156_v4 = vld [vmem:[%s4467_s18 + $0x94] sm:$0xff] }
 0x24a   : > { %v1034_v24 = vpop.f32.mrf.mxu2  ;;  %v1159_v0 = vpop.f32.mrf.mxu3 }
 0x24b   : > { %v1035_v10 = vadd.f32 %v1034_v24, %v6232_v62  ;;  %v1287_v60 = vpop.f32.mrf.mxu0 }
 0x24d   : > { %v1160_v55 = vadd.f32 %v1159_v0, %v1035_v10  ;;  %v6234_v10 = vld [vmem:[#allocation16_spill] sm:$0xff] }
 0x24e   : > { %1726 = vmatmul.f32.gmra.mxu0 %v500_v22 }
 0x24f   : > { %1476 = vmatmul.f32.gmra.mxu2 %v4155_v8  ;;  %1601 = vmatmul.f32.gmra.mxu3 %v464_v21  ;;  %v5433_v43 = vadd.f32 %v1284_v57, %v1160_v55  ;;  %v2519_v57 = vld [vmem:[#allocation3 + $0x1f8] sm:$0xff]  ;;  %v502_v55 = vld [vmem:[%s4467_s18 + $0x9e] sm:$0xff] }
 0x250   : > { %2979 = vmatpush.msrb.mxu0 %v2519_v57  ;;  %v466_v8 = vld [vmem:[%s4467_s18 + $0x9d] sm:$0xff] }
 0x252   : > { %v1037_v15 = vpop.f32.mrf.mxu2  ;;  %v1162_v52 = vpop.f32.mrf.mxu3 }
 0x253   : > { %v1038_v49 = vadd.f32 %v1037_v15, %v6233_v34  ;;  %v1290_v30 = vpop.f32.mrf.mxu0  ;;  %v5446_v15 = vpop.f32.mrf.mxu1  ;;  %v2502_v34 = vld [vmem:[#allocation3 + $0x170] sm:$0xff] }
 0x254   : > { %2855 = vmatpush.msrb.mxu3 %v2502_v34 }
 0x255   : > { %v1163_v63 = vadd.f32 %v1162_v52, %v1038_v49  ;;  %v2486_v52 = vld [vmem:[#allocation3 + $0xf0] sm:$0xff]  ;;  %v4157_v49 = vld [vmem:[%s4467_s18 + $0x9c] sm:$0xff] }
 0x256   : > { %1729 = vmatmul.f32.gmra.mxu0 %v501_v54  ;;  %2730 = vmatpush.msrb.mxu2 %v2486_v52 }
 0x257   : > { %1479 = vmatmul.f32.gmra.mxu2 %v4156_v4  ;;  %1604 = vmatmul.f32.gmra.mxu3 %v465_v7  ;;  %v5441_v24 = vadd.f32 %v1287_v60, %v1163_v63  ;;  %v6236_v63 = vld [vmem:[#allocation17_spill] sm:$0xff]  ;;  %v503_v4 = vld [vmem:[%s4467_s18 + $0xa6] sm:$0xff] }
 0x25a   : > { %v1040_v0 = vpop.f32.mrf.mxu2  ;;  %v1165_v62 = vpop.f32.mrf.mxu3 }
 0x25b   : > { %v1041_v22 = vadd.f32 %v1040_v0, %v6234_v10  ;;  %v1293_v21 = vpop.f32.mrf.mxu0  ;;  %v467_v0 = vld [vmem:[%s4467_s18 + $0xa5] sm:$0xff] }
 0x25c   : > { %v2518_v10 = vld [vmem:[#allocation3 + $0x1f0] sm:$0xff] }
 0x25d   : > { %v1166_v48 = vadd.f32 %v1165_v62, %v1041_v22  ;;  %v2534_v22 = vld [vmem:[#allocation3 + $0x270] sm:$0xff]  ;;  %2980 = vmatpush.msrb.mxu0 %v2518_v10 }
 0x25e   : > { %1732 = vmatmul.f32.gmra.mxu0 %v502_v55  ;;  %v5454_v55 = vpop.f32.mrf.mxu1  ;;  %3105 = vmatpush.msrb.mxu1 %v2534_v22 }
 0x25f   : > { %1482 = vmatmul.f32.gmra.mxu2 %v4157_v49  ;;  %1607 = vmatmul.f32.gmra.mxu3 %v466_v8  ;;  %v5449_v60 = vadd.f32 %v1290_v30, %v1166_v48  ;;  %v4158_v8 = vld [vmem:[%s4467_s18 + $0xa4] sm:$0xff] }
 0x261   : > { %6235 = vst [vmem:[#allocation9_spill] sm:$0xff] %v5449_v60  ;;  %v1943_v60 = vpop.permute.xlu0 %1942 }
 0x262   : > { %v1043_v54 = vpop.f32.mrf.mxu2  ;;  %v1168_v7 = vpop.f32.mrf.mxu3 }
 0x263   : > { %v1044_v57 = vadd.f32 %v1043_v54, %v6236_v63  ;;  %v1688_v32 = vpop.f32.mrf.mxu0  ;;  %v504_v54 = vld [vmem:[%s4467_s18 + $0xae] sm:$0xff] }
 0x265   : > { %v1169_v62 = vadd.f32 %v1168_v7, %v1044_v57  ;;  %v468_v7 = vld [vmem:[%s4467_s18 + $0xad] sm:$0xff]  ;;  %v2485_v57 = vld [vmem:[#allocation3 + $0xe8] sm:$0xff] }
 0x266   : > { %1735 = vmatmul.f32.gmra.mxu0 %v503_v4  ;;  %v2501_v4 = vld [vmem:[#allocation3 + $0x168] sm:$0xff]  ;;  %2731 = vmatpush.msrb.mxu2 %v2485_v57 }
 0x267   : > { %1485 = vmatmul.f32.gmra.mxu2 %v4158_v8  ;;  %1610 = vmatmul.f32.gmra.mxu3 %v467_v0  ;;  %v5457_v30 = vadd.f32 %v1293_v21, %v1169_v62  ;;  %v4159_v0 = vld [vmem:[%s4467_s18 + $0xac] sm:$0xff]  ;;  %v5463_v21 = vpop.f32.mrf.mxu1 }
 0x268   : > { %2856 = vmatpush.msrb.mxu3 %v2501_v4  ;;  %v4160_v4 = vld [vmem:[%s4467_s18 + $0xb4] sm:$0xff] }
 0x269   : > { %6237 = vst [vmem:[#allocation10_spill] sm:$0xff] %v5457_v30  ;;  %v4161_v30 = vld [vmem:[%s4467_s18 + $0xbc] sm:$0xff] }
 0x26a   : > { %v1438_v48 = vpop.f32.mrf.mxu2  ;;  %v1563_v52 = vpop.f32.mrf.mxu3 }
 0x26b   : > { %v1439_v34 = vadd.f32 %v1438_v48, %v5022_v23  ;;  %v1691_v49 = vpop.f32.mrf.mxu0 }
 0x26d   : > { %v1564_v63 = vadd.f32 %v1563_v52, %v1439_v34  ;;  %v505_v34 = vld [vmem:[%s4467_s18 + $0xb6] sm:$0xff] }
 0x26e   : > { %1738 = vmatmul.f32.gmra.mxu0 %v504_v54 }
 0x26f   : > { %v1689_v8 = vadd.f32 %v1688_v32, %v1564_v63  ;;  %1488 = vmatmul.f32.gmra.mxu2 %v4159_v0  ;;  %1613 = vmatmul.f32.gmra.mxu3 %v468_v7  ;;  %v469_v32 = vld [vmem:[%s4467_s18 + $0xb5] sm:$0xff]  ;;  %v2517_v7 = vld [vmem:[#allocation3 + $0x1e8] sm:$0xff]  ;;  %v1948_v0 = vpop.permute.xlu0 %1947 }
 0x270   : > { %2981 = vmatpush.msrb.mxu0 %v2517_v7  ;;  %v2484_v7 = vld [vmem:[#allocation3 + $0xe0] sm:$0xff] }
 0x271   : > { %vm1796_vm0 = vcmp.ge.f32.partialorder %v1689_v8, 0.0  ;;  %v1832_v23 = vmul.f32 0.1, %v1689_v8  ;;  %2732 = vmatpush.msrb.mxu2 %v2484_v7 }
 0x272   : > { %v1441_v62 = vpop.f32.mrf.mxu2  ;;  %v1566_v10 = vpop.f32.mrf.mxu3 }
 0x273   : > { %v1868_v22 = vsel %vm1796_vm0, %v1689_v8, %v1832_v23  ;;  %v1442_v48 = vadd.f32 %v1441_v62, %v5033_v44  ;;  %v1694_v52 = vpop.f32.mrf.mxu0  ;;  %v5469_v62 = vpop.f32.mrf.mxu1 }
 0x274   : > { %v2120_v54 = vmul.f32 %v1943_v60, %v1868_v22 }
 0x275   : > { %v1567_v63 = vadd.f32 %v1566_v10, %v1442_v48  ;;  %v506_v48 = vld [vmem:[%s4467_s18 + $0xbe] sm:$0xff] }
 0x276   : > { %2159 = vst [vmem:[#allocation2 + $0x13] sm:$0xff] %v2120_v54  ;;  %1741 = vmatmul.f32.gmra.mxu0 %v505_v34 }
 0x277   : > { %v1692_v57 = vadd.f32 %v1691_v49, %v1567_v63  ;;  %1491 = vmatmul.f32.gmra.mxu2 %v4160_v4  ;;  %1616 = vmatmul.f32.gmra.mxu3 %v469_v32  ;;  %v470_v49 = vld [vmem:[%s4467_s18 + $0xbd] sm:$0xff] }
 0x278   : > { %v2533_v32 = vld [vmem:[#allocation3 + $0x268] sm:$0xff] }
 0x279   : > { %vm1797_vm1 = vcmp.ge.f32.partialorder %v1692_v57, 0.0  ;;  %v1833_v8 = vmul.f32 0.1, %v1692_v57  ;;  %3106 = vmatpush.msrb.mxu1 %v2533_v32  ;;  %v4162_v32 = vld [vmem:[%s4467_s18 + $0xc4] sm:$0xff] }
 0x27a   : > { %v1444_v23 = vpop.f32.mrf.mxu2  ;;  %v1569_v44 = vpop.f32.mrf.mxu3 }
 0x27b   : > { %v1869_v60 = vsel %vm1797_vm1, %v1692_v57, %v1833_v8  ;;  %v1445_v10 = vadd.f32 %v1444_v23, %v5047_v41  ;;  %v1697_v22 = vpop.f32.mrf.mxu0  ;;  %v1953_v41 = vpop.permute.xlu1 %1952 }
 0x27c   : > { %v2121_v34 = vmul.f32 %v1948_v0, %v1869_v60 }
 0x27d   : > { %v1570_v54 = vadd.f32 %v1569_v44, %v1445_v10  ;;  %v2202_v63 = vld [vmem:[#allocation2 + $0x10] sm:$0xff]  ;;  %v507_v10 = vld [vmem:[%s4467_s18 + $0xc6] sm:$0xff] }
 0x27e   : > { %2160 = vst [vmem:[#allocation2 + $0x1b] sm:$0xff] %v2121_v34  ;;  %2626 = vmatmul.f32.gmra.mxu1 %v2202_v63  ;;  %1744 = vmatmul.f32.gmra.mxu0 %v506_v48  ;;  %v471_v34 = vld [vmem:[%s4467_s18 + $0xc5] sm:$0xff] }
 0x27f   : > { %v1695_v4 = vadd.f32 %v1694_v52, %v1570_v54  ;;  %1494 = vmatmul.f32.gmra.mxu2 %v4161_v30  ;;  %1619 = vmatmul.f32.gmra.mxu3 %v470_v49  ;;  %v5478_v52 = vpop.f32.mrf.mxu1  ;;  %v2500_v49 = vld [vmem:[#allocation3 + $0x160] sm:$0xff] }
 0x280   : > { %2857 = vmatpush.msrb.mxu3 %v2500_v49 }
 0x281   : > { %vm1798_vm2 = vcmp.ge.f32.partialorder %v1695_v4, 0.0  ;;  %v1834_v57 = vmul.f32 0.1, %v1695_v4 }
 0x282   : > { %v1447_v0 = vpop.f32.mrf.mxu2  ;;  %v1572_v8 = vpop.f32.mrf.mxu3 }
 0x283   : > { %v1870_v23 = vsel %vm1798_vm2, %v1695_v4, %v1834_v57  ;;  %v1448_v44 = vadd.f32 %v1447_v0, %v5058_v35  ;;  %v1700_v60 = vpop.f32.mrf.mxu0 }
 0x284   : > { %v2122_v48 = vmul.f32 %v1953_v41, %v1870_v23  ;;  %v1958_v41 = vpop.permute.xlu1 %1957  ;;  %v508_v23 = vld [vmem:[%s4467_s18 + $0xce] sm:$0xff] }
 0x285   : > { %v1573_v54 = vadd.f32 %v1572_v8, %v1448_v44  ;;  %v2203_v30 = vld [vmem:[#allocation2 + $0x18] sm:$0xff] }
 0x286   : > { %2161 = vst [vmem:[#allocation2 + $0x23] sm:$0xff] %v2122_v48  ;;  %2629 = vmatmul.f32.gmra.mxu1 %v2203_v30  ;;  %1747 = vmatmul.f32.gmra.mxu0 %v507_v10  ;;  %v472_v10 = vld [vmem:[%s4467_s18 + $0xcd] sm:$0xff] }
 0x287   : > { %v1698_v63 = vadd.f32 %v1697_v22, %v1573_v54  ;;  %1497 = vmatmul.f32.gmra.mxu2 %v4162_v32  ;;  %1622 = vmatmul.f32.gmra.mxu3 %v471_v34  ;;  %v2516_v22 = vld [vmem:[#allocation3 + $0x1e0] sm:$0xff]  ;;  %v5484_v54 = vpop.f32.mrf.mxu1  ;;  %v4163_v32 = vld [vmem:[%s4467_s18 + $0xcc] sm:$0xff] }
 0x288   : > { %v2532_v34 = vld [vmem:[#allocation3 + $0x260] sm:$0xff]  ;;  %2982 = vmatpush.msrb.mxu0 %v2516_v22 }
 0x289   : > { %vm1799_vm3 = vcmp.ge.f32.partialorder %v1698_v63, 0.0  ;;  %v1835_v35 = vmul.f32 0.1, %v1698_v63  ;;  %3107 = vmatpush.msrb.mxu1 %v2532_v34  ;;  %v4164_v34 = vld [vmem:[%s4467_s18 + $0xd4] sm:$0xff] }
 0x28a   : > { %v1450_v7 = vpop.f32.mrf.mxu2  ;;  %v1575_v4 = vpop.f32.mrf.mxu3 }
 0x28b   : > { %v1871_v57 = vsel %vm1799_vm3, %v1698_v63, %v1835_v35  ;;  %v1451_v0 = vadd.f32 %v1450_v7, %v5072_v25  ;;  %v1703_v8 = vpop.f32.mrf.mxu0  ;;  %v1963_v25 = vpop.permute.xlu2 %1962 }
 0x28c   : > { %v2123_v44 = vmul.f32 %v1958_v41, %v1871_v57 }
 0x28d   : > { %v1576_v48 = vadd.f32 %v1575_v4, %v1451_v0  ;;  %v2204_v30 = vld [vmem:[#allocation2 + $0x20] sm:$0xff]  ;;  %v509_v0 = vld [vmem:[%s4467_s18 + $0xd6] sm:$0xff] }
 0x28e   : > { %2162 = vst [vmem:[#allocation2 + $0x2b] sm:$0xff] %v2123_v44  ;;  %2632 = vmatmul.f32.gmra.mxu1 %v2204_v30  ;;  %1750 = vmatmul.f32.gmra.mxu0 %v508_v23  ;;  %v473_v44 = vld [vmem:[%s4467_s18 + $0xd5] sm:$0xff] }
 0x28f   : > { %v1701_v49 = vadd.f32 %v1700_v60, %v1576_v48  ;;  %1500 = vmatmul.f32.gmra.mxu2 %v4163_v32  ;;  %1625 = vmatmul.f32.gmra.mxu3 %v472_v10  ;;  %v2483_v10 = vld [vmem:[#allocation3 + $0xd8] sm:$0xff] }
 0x290   : > { %v2499_v30 = vld [vmem:[#allocation3 + $0x158] sm:$0xff]  ;;  %2733 = vmatpush.msrb.mxu2 %v2483_v10 }
 0x291   : > { %vm1800_vm4 = vcmp.ge.f32.partialorder %v1701_v49, 0.0  ;;  %v1836_v63 = vmul.f32 0.1, %v1701_v49  ;;  %2858 = vmatpush.msrb.mxu3 %v2499_v30  ;;  %v4165_v30 = vld [vmem:[%s4467_s18 + $0xdc] sm:$0xff] }
 0x292   : > { %v1453_v35 = vpop.f32.mrf.mxu2  ;;  %v1578_v7 = vpop.f32.mrf.mxu3 }
 0x293   : > { %v1872_v4 = vsel %vm1800_vm4, %v1701_v49, %v1836_v63  ;;  %v1454_v41 = vadd.f32 %v1453_v35, %v5083_v36  ;;  %v1706_v57 = vpop.f32.mrf.mxu0  ;;  %v5491_v36 = vpop.f32.mrf.mxu1 }
 0x294   : > { %v2124_v23 = vmul.f32 %v1963_v25, %v1872_v4  ;;  %v1968_v63 = vpop.permute.xlu2 %1967 }
 0x295   : > { %v1579_v60 = vadd.f32 %v1578_v7, %v1454_v41  ;;  %v2205_v48 = vld [vmem:[#allocation2 + $0x28] sm:$0xff]  ;;  %v510_v41 = vld [vmem:[%s4467_s18 + $0xde] sm:$0xff] }
 0x296   : > { %2163 = vst [vmem:[#allocation2 + $0x33] sm:$0xff] %v2124_v23  ;;  %2635 = vmatmul.f32.gmra.mxu1 %v2205_v48  ;;  %1753 = vmatmul.f32.gmra.mxu0 %v509_v0  ;;  %v474_v0 = vld [vmem:[%s4467_s18 + $0xdd] sm:$0xff]  ;;  %v2531_v48 = vld [vmem:[#allocation3 + $0x258] sm:$0xff] }
 0x297   : > { %v1704_v22 = vadd.f32 %v1703_v8, %v1579_v60  ;;  %1503 = vmatmul.f32.gmra.mxu2 %v4164_v34  ;;  %1628 = vmatmul.f32.gmra.mxu3 %v473_v44  ;;  %v2515_v44 = vld [vmem:[#allocation3 + $0x1d8] sm:$0xff] }
 0x298   : > { %2983 = vmatpush.msrb.mxu0 %v2515_v44  ;;  %3108 = vmatpush.msrb.mxu1 %v2531_v48  ;;  %v4166_v48 = vld [vmem:[%s4467_s18 + $0xe4] sm:$0xff] }
 0x299   : > { %vm1801_vm5 = vcmp.ge.f32.partialorder %v1704_v22, 0.0  ;;  %v1837_v49 = vmul.f32 0.1, %v1704_v22 }
 0x29a   : > { %v1456_v32 = vpop.f32.mrf.mxu2  ;;  %v1581_v25 = vpop.f32.mrf.mxu3 }
 0x29b   : > { %v1873_v35 = vsel %vm1801_vm5, %v1704_v22, %v1837_v49  ;;  %v1457_v7 = vadd.f32 %v1456_v32, %v5094_v11  ;;  %v1709_v4 = vpop.f32.mrf.mxu0  ;;  %v1973_v11 = vpop.permute.xlu0 %1972 }
 0x29c   : > { %v2125_v8 = vmul.f32 %v1968_v63, %v1873_v35  ;;  %v5497_v32 = vpop.f32.mrf.mxu1 }
 0x29d   : > { %v1582_v23 = vadd.f32 %v1581_v25, %v1457_v7  ;;  %v2206_v60 = vld [vmem:[#allocation2 + $0x30] sm:$0xff]  ;;  %v511_v7 = vld [vmem:[%s4467_s18 + $0xe6] sm:$0xff] }
 0x29e   : > { %2164 = vst [vmem:[#allocation2 + $0x3b] sm:$0xff] %v2125_v8  ;;  %2638 = vmatmul.f32.gmra.mxu1 %v2206_v60  ;;  %1756 = vmatmul.f32.gmra.mxu0 %v510_v41  ;;  %v475_v41 = vld [vmem:[%s4467_s18 + $0xe5] sm:$0xff] }
 0x29f   : > { %v1707_v10 = vadd.f32 %v1706_v57, %v1582_v23  ;;  %1506 = vmatmul.f32.gmra.mxu2 %v4165_v30  ;;  %1631 = vmatmul.f32.gmra.mxu3 %v474_v0  ;;  %v2482_v0 = vld [vmem:[#allocation3 + $0xd0] sm:$0xff] }
 0x2a0   : > { %v2498_v60 = vld [vmem:[#allocation3 + $0x150] sm:$0xff]  ;;  %2734 = vmatpush.msrb.mxu2 %v2482_v0 }
 0x2a1   : > { %vm1802_vm6 = vcmp.ge.f32.partialorder %v1707_v10, 0.0  ;;  %v1838_v22 = vmul.f32 0.1, %v1707_v10  ;;  %2859 = vmatpush.msrb.mxu3 %v2498_v60  ;;  %v4167_v60 = vld [vmem:[%s4467_s18 + $0xec] sm:$0xff] }
 0x2a2   : > { %v1459_v34 = vpop.f32.mrf.mxu2  ;;  %v1584_v49 = vpop.f32.mrf.mxu3 }
 0x2a3   : > { %v1874_v25 = vsel %vm1802_vm6, %v1707_v10, %v1838_v22  ;;  %v1460_v63 = vadd.f32 %v1459_v34, %v5108_v13  ;;  %v1712_v35 = vpop.f32.mrf.mxu0 }
 0x2a4   : > { %v2126_v57 = vmul.f32 %v1973_v11, %v1874_v25  ;;  %v1978_v11 = vpop.permute.xlu1 %1977  ;;  %v512_v25 = vld [vmem:[%s4467_s18 + $0xee] sm:$0xff] }
 0x2a5   : > { %v1585_v8 = vadd.f32 %v1584_v49, %v1460_v63  ;;  %v2207_v23 = vld [vmem:[#allocation2 + $0x38] sm:$0xff] }
 0x2a6   : > { %2165 = vst [vmem:[#allocation2 + $0x43] sm:$0xff] %v2126_v57  ;;  %2641 = vmatmul.f32.gmra.mxu1 %v2207_v23  ;;  %1759 = vmatmul.f32.gmra.mxu0 %v511_v7  ;;  %v476_v7 = vld [vmem:[%s4467_s18 + $0xed] sm:$0xff] }
 0x2a7   : > { %v1710_v44 = vadd.f32 %v1709_v4, %v1585_v8  ;;  %1509 = vmatmul.f32.gmra.mxu2 %v4166_v48  ;;  %1634 = vmatmul.f32.gmra.mxu3 %v475_v41  ;;  %v5506_v4 = vpop.f32.mrf.mxu1  ;;  %v2514_v41 = vld [vmem:[#allocation3 + $0x1d0] sm:$0xff] }
 0x2a8   : > { %v2530_v23 = vld [vmem:[#allocation3 + $0x250] sm:$0xff]  ;;  %2984 = vmatpush.msrb.mxu0 %v2514_v41 }
 0x2a9   : > { %vm1803_vm7 = vcmp.ge.f32.partialorder %v1710_v44, 0.0  ;;  %v1839_v13 = vmul.f32 0.1, %v1710_v44  ;;  %3109 = vmatpush.msrb.mxu1 %v2530_v23  ;;  %v4168_v23 = vld [vmem:[%s4467_s18 + $0xf4] sm:$0xff] }
 0x2aa   : > { %v1462_v10 = vpop.f32.mrf.mxu2  ;;  %v1587_v30 = vpop.f32.mrf.mxu3 }
 0x2ab   : > { %v1875_v22 = vsel %vm1803_vm7, %v1710_v44, %v1839_v13  ;;  %v1463_v34 = vadd.f32 %v1462_v10, %v5122_v9  ;;  %v1715_v49 = vpop.f32.mrf.mxu0  ;;  %v1983_v13 = vpop.permute.xlu2 %1982 }
 0x2ac   : > { %v2127_v63 = vmul.f32 %v1978_v11, %v1875_v22  ;;  %v513_v22 = vld [vmem:[%s4467_s18 + $0xf6] sm:$0xff] }
 0x2ad   : > { %v1588_v57 = vadd.f32 %v1587_v30, %v1463_v34  ;;  %v2208_v8 = vld [vmem:[#allocation2 + $0x40] sm:$0xff] }
 0x2ae   : > { %2166 = vst [vmem:[#allocation2 + $0x4b] sm:$0xff] %v2127_v63  ;;  %2644 = vmatmul.f32.gmra.mxu1 %v2208_v8  ;;  %1762 = vmatmul.f32.gmra.mxu0 %v512_v25  ;;  %v477_v25 = vld [vmem:[%s4467_s18 + $0xf5] sm:$0xff] }
 0x2af   : > { %v1713_v0 = vadd.f32 %v1712_v35, %v1588_v57  ;;  %1512 = vmatmul.f32.gmra.mxu2 %v4167_v60  ;;  %1637 = vmatmul.f32.gmra.mxu3 %v476_v7  ;;  %v2481_v7 = vld [vmem:[#allocation3 + $0xc8] sm:$0xff]  ;;  %v5512_v8 = vpop.f32.mrf.mxu1 }
 0x2b0   : > { %v2497_v57 = vld [vmem:[#allocation3 + $0x148] sm:$0xff]  ;;  %2735 = vmatpush.msrb.mxu2 %v2481_v7 }
 0x2b1   : > { %vm1804_vm8 = vcmp.ge.f32.partialorder %v1713_v0, 0.0  ;;  %v1840_v9 = vmul.f32 0.1, %v1713_v0  ;;  %2860 = vmatpush.msrb.mxu3 %v2497_v57 }
 0x2b2   : > { %v1465_v44 = vpop.f32.mrf.mxu2  ;;  %v1590_v48 = vpop.f32.mrf.mxu3 }
 0x2b3   : > { %v1876_v10 = vsel %vm1804_vm8, %v1713_v0, %v1840_v9  ;;  %v1466_v30 = vadd.f32 %v1465_v44, %v5142_v3  ;;  %v1718_v11 = vpop.f32.mrf.mxu0  ;;  %v1988_v9 = vpop.permute.xlu0 %1987 }
 0x2b4   : > { %v2128_v34 = vmul.f32 %v1983_v13, %v1876_v10  ;;  %v514_v10 = vld [vmem:[%s4467_s18 + $0xfe] sm:$0xff] }
 0x2b5   : > { %v1591_v35 = vadd.f32 %v1590_v48, %v1466_v30  ;;  %v2209_v63 = vld [vmem:[#allocation2 + $0x48] sm:$0xff] }
 0x2b6   : > { %2167 = vst [vmem:[#allocation2 + $0x53] sm:$0xff] %v2128_v34  ;;  %2647 = vmatmul.f32.gmra.mxu1 %v2209_v63  ;;  %1765 = vmatmul.f32.gmra.mxu0 %v513_v22  ;;  %v478_v22 = vld [vmem:[%s4467_s18 + $0xfd] sm:$0xff] }
 0x2b7   : > { %v1716_v41 = vadd.f32 %v1715_v49, %v1591_v35  ;;  %1515 = vmatmul.f32.gmra.mxu2 %v4168_v23  ;;  %1640 = vmatmul.f32.gmra.mxu3 %v477_v25  ;;  %v2513_v25 = vld [vmem:[#allocation3 + $0x1c8] sm:$0xff]  ;;  %v5519_v7 = vpop.f32.mrf.mxu1  ;;  %v1993_v23 = vpop.permute.xlu1 %1992 }
 0x2b8   : > { %v4169_v63 = vld [vmem:[%s4467_s18 + $0xfc] sm:$0xff]  ;;  %2985 = vmatpush.msrb.mxu0 %v2513_v25  ;;  %v1998_v25 = vpop.permute.xlu2 %1997 }
 0x2b9   : > { %vm1805_vm9 = vcmp.ge.f32.partialorder %v1716_v41, 0.0  ;;  %v1841_v3 = vmul.f32 0.1, %v1716_v41 }
 0x2ba   : > { %v1468_v0 = vpop.f32.mrf.mxu2  ;;  %v1593_v60 = vpop.f32.mrf.mxu3 }
 0x2bb   : > { %v1877_v44 = vsel %vm1805_vm9, %v1716_v41, %v1841_v3  ;;  %v1469_v48 = vadd.f32 %v1468_v0, %v5164_v12  ;;  %v1721_v13 = vpop.f32.mrf.mxu0 }
 0x2bc   : > { %v2129_v30 = vmul.f32 %v1988_v9, %v1877_v44  ;;  %v515_v9 = vld [vmem:[%s4467_s18 + $0x106] sm:$0xff] }
 0x2bd   : > { %v1594_v49 = vadd.f32 %v1593_v60, %v1469_v48  ;;  %v2210_v34 = vld [vmem:[#allocation2 + $0x50] sm:$0xff] }
 0x2be   : > { %2168 = vst [vmem:[#allocation2 + $0x5b] sm:$0xff] %v2129_v30  ;;  %2650 = vmatmul.f32.gmra.mxu1 %v2210_v34  ;;  %1768 = vmatmul.f32.gmra.mxu0 %v514_v10  ;;  %v2529_v30 = vld [vmem:[#allocation3 + $0x248] sm:$0xff] }
 0x2bf   : > { %v1719_v35 = vadd.f32 %v1718_v11, %v1594_v49  ;;  %1518 = vmatmul.f32.gmra.mxu2 %v4169_v63  ;;  %1643 = vmatmul.f32.gmra.mxu3 %v478_v22  ;;  %v479_v11 = vld [vmem:[%s4467_s18 + $0x105] sm:$0xff]  ;;  %v2480_v22 = vld [vmem:[#allocation3 + $0xc0] sm:$0xff] }
 0x2c0   : > { %v4170_v34 = vld [vmem:[%s4467_s18 + $0x104] sm:$0xff]  ;;  %3110 = vmatpush.msrb.mxu1 %v2529_v30  ;;  %2736 = vmatpush.msrb.mxu2 %v2480_v22 }
 0x2c1   : > { %vm1806_vm10 = vcmp.ge.f32.partialorder %v1719_v35, 0.0  ;;  %v1842_v12 = vmul.f32 0.1, %v1719_v35 }
 0x2c2   : > { %v1471_v57 = vpop.f32.mrf.mxu2  ;;  %v1596_v41 = vpop.f32.mrf.mxu3 }
 0x2c3   : > { %v1878_v3 = vsel %vm1806_vm10, %v1719_v35, %v1842_v12  ;;  %v1472_v0 = vadd.f32 %v1471_v57, %v5184_v16  ;;  %v1724_v60 = vpop.f32.mrf.mxu0  ;;  %v1350_v16 = vadd.f32 %v5339_v19, %v5193_v53  ;;  %v5527_v57 = vpop.f32.mrf.mxu1  ;;  %v2496_v53 = vld [vmem:[#allocation3 + $0x140] sm:$0xff] }
 0x2c4   : > { %v2130_v44 = vmul.f32 %v1993_v23, %v1878_v3  ;;  %v516_v3 = vld [vmem:[%s4467_s18 + $0x10e] sm:$0xff]  ;;  %2861 = vmatpush.msrb.mxu3 %v2496_v53 }
 0x2c5   : > { %v1597_v48 = vadd.f32 %v1596_v41, %v1472_v0  ;;  %v2211_v10 = vld [vmem:[#allocation2 + $0x58] sm:$0xff]  ;;  %v2511_v53 = vld [vmem:[#allocation3 + $0x1b8] sm:$0xff] }
 0x2c6   : > { %2169 = vst [vmem:[#allocation2 + $0x63] sm:$0xff] %v2130_v44  ;;  %2653 = vmatmul.f32.gmra.mxu1 %v2211_v10  ;;  %1771 = vmatmul.f32.gmra.mxu0 %v515_v9  ;;  %v480_v9 = vld [vmem:[%s4467_s18 + $0x10d] sm:$0xff]  ;;  %v1353_v10 = vadd.f32 %v5350_v38, %v5210_v37  ;;  %v2528_v37 = vld [vmem:[#allocation3 + $0x240] sm:$0xff] }
 0x2c7   : > { %v1722_v49 = vadd.f32 %v1721_v13, %v1597_v48  ;;  %1521 = vmatmul.f32.gmra.mxu2 %v4170_v34  ;;  %1646 = vmatmul.f32.gmra.mxu3 %v479_v11  ;;  %v4171_v48 = vld [vmem:[%s4467_s18 + $0x10c] sm:$0xff]  ;;  %v2003_v34 = vpop.permute.xlu0 %2002 }
 0x2c8   : > { %3111 = vmatpush.msrb.mxu1 %v2528_v37  ;;  %v2509_v37 = vld [vmem:[#allocation3 + $0x1a8] sm:$0xff] }
 0x2c9   : > { %vm1807_vm11 = vcmp.ge.f32.partialorder %v1722_v49, 0.0  ;;  %v1843_v35 = vmul.f32 0.1, %v1722_v49 }
 0x2ca   : > { %v1474_v63 = vpop.f32.mrf.mxu2  ;;  %v1599_v12 = vpop.f32.mrf.mxu3 }
 0x2cb   : > { %v1879_v41 = vsel %vm1807_vm11, %v1722_v49, %v1843_v35  ;;  %v1475_v13 = vadd.f32 %v1474_v63, %v1350_v16  ;;  %v1727_v23 = vpop.f32.mrf.mxu0  ;;  %v517_v63 = vld [vmem:[%s4467_s18 + $0x116] sm:$0xff] }
 0x2cc   : > { %v2131_v0 = vmul.f32 %v1998_v25, %v1879_v41  ;;  %v5536_v41 = vpop.f32.mrf.mxu1 }
 0x2cd   : > { %v1600_v44 = vadd.f32 %v1599_v12, %v1475_v13  ;;  %v2212_v11 = vld [vmem:[#allocation2 + $0x60] sm:$0xff] }
 0x2ce   : > { %2170 = vst [vmem:[#allocation2 + $0x6b] sm:$0xff] %v2131_v0  ;;  %2656 = vmatmul.f32.gmra.mxu1 %v2212_v11  ;;  %1774 = vmatmul.f32.gmra.mxu0 %v516_v3  ;;  %v2512_v0 = vld [vmem:[#allocation3 + $0x1c0] sm:$0xff]  ;;  %v2495_v11 = vld [vmem:[#allocation3 + $0x138] sm:$0xff] }
 0x2cf   : > { %v1725_v19 = vadd.f32 %v1724_v60, %v1600_v44  ;;  %1524 = vmatmul.f32.gmra.mxu2 %v4171_v48  ;;  %1649 = vmatmul.f32.gmra.mxu3 %v480_v9  ;;  %v481_v60 = vld [vmem:[%s4467_s18 + $0x115] sm:$0xff] }
 0x2d0   : > { %v4172_v9 = vld [vmem:[%s4467_s18 + $0x114] sm:$0xff]  ;;  %2986 = vmatpush.msrb.mxu0 %v2512_v0  ;;  %2862 = vmatpush.msrb.mxu3 %v2495_v11 }
 0x2d1   : > { %vm1808_vm12 = vcmp.ge.f32.partialorder %v1725_v19, 0.0  ;;  %v1844_v30 = vmul.f32 0.1, %v1725_v19  ;;  %v2479_v44 = vld [vmem:[#allocation3 + $0xb8] sm:$0xff] }
 0x2d2   : > { %v1477_v22 = vpop.f32.mrf.mxu2  ;;  %v1602_v49 = vpop.f32.mrf.mxu3  ;;  %2737 = vmatpush.msrb.mxu2 %v2479_v44  ;;  %2987 = vmatpush.msrb.mxu0 %v2511_v53  ;;  %v4173_v53 = vld [vmem:[%s4467_s18 + $0x11c] sm:$0xff] }
 0x2d3   : > { %v1880_v16 = vsel %vm1808_vm12, %v1725_v19, %v1844_v30  ;;  %v1478_v25 = vadd.f32 %v1477_v22, %v1353_v10  ;;  %v1730_v35 = vpop.f32.mrf.mxu0  ;;  %v1356_v19 = vadd.f32 %v5364_v20, %v5227_v2  ;;  %v2478_v10 = vld [vmem:[#allocation3 + $0xb0] sm:$0xff]  ;;  %v2493_v2 = vld [vmem:[#allocation3 + $0x128] sm:$0xff] }
 0x2d4   : > { %v2132_v12 = vmul.f32 %v2003_v34, %v1880_v16  ;;  %v2494_v30 = vld [vmem:[#allocation3 + $0x130] sm:$0xff]  ;;  %v2008_v34 = vpop.permute.xlu1 %2007  ;;  %2738 = vmatpush.msrb.mxu2 %v2478_v10  ;;  %v5543_v44 = vpop.f32.mrf.mxu1  ;;  %v2491_v10 = vld [vmem:[#allocation3 + $0x118] sm:$0xff] }
 0x2d5   : > { %v1603_v13 = vadd.f32 %v1602_v49, %v1478_v25  ;;  %v2213_v3 = vld [vmem:[#allocation2 + $0x68] sm:$0xff]  ;;  %2863 = vmatpush.msrb.mxu3 %v2494_v30  ;;  %v1359_v30 = vadd.f32 %v5375_v18, %v5247_v42 }
 0x2d6   : > { %2171 = vst [vmem:[#allocation2 + $0x73] sm:$0xff] %v2132_v12  ;;  %2659 = vmatmul.f32.gmra.mxu1 %v2213_v3  ;;  %1777 = vmatmul.f32.gmra.mxu0 %v517_v63  ;;  %v518_v12 = vld [vmem:[%s4467_s18 + $0x11e] sm:$0xff] }
 0x2d7   : > { %v1728_v38 = vadd.f32 %v1727_v23, %v1603_v13  ;;  %1527 = vmatmul.f32.gmra.mxu2 %v4172_v9  ;;  %1652 = vmatmul.f32.gmra.mxu3 %v481_v60  ;;  %v2510_v23 = vld [vmem:[#allocation3 + $0x1b0] sm:$0xff]  ;;  %v2477_v60 = vld [vmem:[#allocation3 + $0xa8] sm:$0xff]  ;;  %v2476_v9 = vld [vmem:[#allocation3 + $0xa0] sm:$0xff] }
 0x2d8   : > { %v482_v13 = vld [vmem:[%s4467_s18 + $0x11d] sm:$0xff]  ;;  %2988 = vmatpush.msrb.mxu0 %v2510_v23  ;;  %2739 = vmatpush.msrb.mxu2 %v2477_v60  ;;  %v483_v42 = vld [vmem:[%s4467_s18 + $0x125] sm:$0xff] }
 0x2d9   : > { %vm1809_vm13 = vcmp.ge.f32.partialorder %v1728_v38, 0.0  ;;  %v1845_v48 = vmul.f32 0.1, %v1728_v38  ;;  %2864 = vmatpush.msrb.mxu3 %v2493_v2 }
 0x2da   : > { %v1480_v22 = vpop.f32.mrf.mxu2  ;;  %v1605_v49 = vpop.f32.mrf.mxu3  ;;  %2989 = vmatpush.msrb.mxu0 %v2509_v37  ;;  %2740 = vmatpush.msrb.mxu2 %v2476_v9  ;;  %v2527_v37 = vld [vmem:[#allocation3 + $0x238] sm:$0xff]  ;;  %v2473_v9 = vld [vmem:[#allocation3 + $0x88] sm:$0xff] }
 0x2db   : > { %v1881_v16 = vsel %vm1809_vm13, %v1728_v38, %v1845_v48  ;;  %v1481_v25 = vadd.f32 %v1480_v22, %v1356_v19  ;;  %v1733_v63 = vpop.f32.mrf.mxu0  ;;  %v2492_v38 = vld [vmem:[#allocation3 + $0x120] sm:$0xff]  ;;  %v2475_v48 = vld [vmem:[#allocation3 + $0x98] sm:$0xff]  ;;  %3112 = vmatpush.msrb.mxu1 %v2527_v37 }
 0x2dc   : > { %v2133_v20 = vmul.f32 %v2008_v34, %v1881_v16  ;;  %v2508_v19 = vld [vmem:[#allocation3 + $0x1a0] sm:$0xff]  ;;  %2865 = vmatpush.msrb.mxu3 %v2492_v38  ;;  %v2507_v22 = vld [vmem:[#allocation3 + $0x198] sm:$0xff]  ;;  %2741 = vmatpush.msrb.mxu2 %v2475_v48  ;;  %v2490_v16 = vld [vmem:[#allocation3 + $0x110] sm:$0xff] }
 0x2dd   : > { %v1606_v3 = vadd.f32 %v1605_v49, %v1481_v25  ;;  %v2214_v0 = vld [vmem:[#allocation2 + $0x70] sm:$0xff]  ;;  %v2474_v49 = vld [vmem:[#allocation3 + $0x90] sm:$0xff]  ;;  %2990 = vmatpush.msrb.mxu0 %v2508_v19  ;;  %v2013_v25 = vpop.permute.xlu2 %2012  ;;  %v2489_v38 = vld [vmem:[#allocation3 + $0x108] sm:$0xff]  ;;  %v5551_v19 = vpop.f32.mrf.mxu1 }
 0x2de   : > { %2172 = vst [vmem:[#allocation2 + $0x7b] sm:$0xff] %v2133_v20  ;;  %2662 = vmatmul.f32.gmra.mxu1 %v2214_v0  ;;  %1780 = vmatmul.f32.gmra.mxu0 %v518_v12  ;;  %v519_v20 = vld [vmem:[%s4467_s18 + $0x126] sm:$0xff] }
 0x2df   : > { %v1731_v11 = vadd.f32 %v1730_v35, %v1606_v3  ;;  %1530 = vmatmul.f32.gmra.mxu2 %v4173_v53  ;;  %1655 = vmatmul.f32.gmra.mxu3 %v482_v13  ;;  %v2506_v0 = vld [vmem:[#allocation3 + $0x190] sm:$0xff]  ;;  %v2505_v48 = vld [vmem:[#allocation3 + $0x188] sm:$0xff] }
 0x2e0   : > { %2866 = vmatpush.msrb.mxu3 %v2491_v10  ;;  %2991 = vmatpush.msrb.mxu0 %v2507_v22  ;;  %v4174_v53 = vld [vmem:[%s4467_s18 + $0x124] sm:$0xff]  ;;  %v2472_v10 = vld [vmem:[#allocation3 + $0x80] sm:$0xff] }
 0x2e1   : > { %vm1810_vm14 = vcmp.ge.f32.partialorder %v1731_v11, 0.0  ;;  %v1846_v23 = vmul.f32 0.1, %v1731_v11  ;;  %2742 = vmatpush.msrb.mxu2 %v2474_v49 }
 0x2e2   : > { %v1483_v34 = vpop.f32.mrf.mxu2  ;;  %v1608_v35 = vpop.f32.mrf.mxu3  ;;  %2867 = vmatpush.msrb.mxu3 %v2490_v16  ;;  %2992 = vmatpush.msrb.mxu0 %v2506_v0 }
 0x2e3   : > { %v1882_v12 = vsel %vm1810_vm14, %v1731_v11, %v1846_v23  ;;  %v1484_v60 = vadd.f32 %v1483_v34, %v1359_v30  ;;  %v1736_v2 = vpop.f32.mrf.mxu0  ;;  %v2488_v30 = vld [vmem:[#allocation3 + $0x100] sm:$0xff]  ;;  %v1362_v23 = vadd.f32 %v5389_v5, %v5264_v14  ;;  %2743 = vmatpush.msrb.mxu2 %v2473_v9 }
 0x2e4   : > { %v2134_v13 = vmul.f32 %v2013_v25, %v1882_v12  ;;  %2868 = vmatpush.msrb.mxu3 %v2489_v38  ;;  %2993 = vmatpush.msrb.mxu0 %v2505_v48 }
 0x2e5   : > { %v1609_v18 = vadd.f32 %v1608_v35, %v1484_v60  ;;  %v2215_v3 = vld [vmem:[#allocation2 + $0x78] sm:$0xff]  ;;  %v2018_v35 = vpop.permute.xlu0 %2017  ;;  %v520_v60 = vld [vmem:[%s4467_s18 + $0x12e] sm:$0xff]  ;;  %2744 = vmatpush.msrb.mxu2 %v2472_v10  ;;  %v5560_v37 = vpop.f32.mrf.mxu1 }
 0x2e6   : > { %2173 = vst [vmem:[#allocation2 + $0x83] sm:$0xff] %v2134_v13  ;;  %2665 = vmatmul.f32.gmra.mxu1 %v2215_v3  ;;  %1783 = vmatmul.f32.gmra.mxu0 %v519_v20  ;;  %v484_v13 = vld [vmem:[%s4467_s18 + $0x12d] sm:$0xff]  ;;  %v1365_v3 = vadd.f32 %v5397_v40, %v5279_v1 }
 0x2e7   : > { %v1734_v11 = vadd.f32 %v1733_v63, %v1609_v18  ;;  %1533 = vmatmul.f32.gmra.mxu2 %v4174_v53  ;;  %1658 = vmatmul.f32.gmra.mxu3 %v483_v42  ;;  %v2504_v63 = vld [vmem:[#allocation3 + $0x180] sm:$0xff]  ;;  %v4175_v18 = vld [vmem:[%s4467_s18 + $0x12c] sm:$0xff] }
 0x2e8   : > { %2869 = vmatpush.msrb.mxu3 %v2488_v30  ;;  %2994 = vmatpush.msrb.mxu0 %v2504_v63  ;;  %v521_v30 = vld [vmem:[%s4467_s18 + $0x136] sm:$0xff]  ;;  %v2526_v1 = vld [vmem:[#allocation3 + $0x230] sm:$0xff] }
 0x2e9   : > { %vm1811_vm15 = vcmp.ge.f32.partialorder %v1734_v11, 0.0  ;;  %v1847_v22 = vmul.f32 0.1, %v1734_v11  ;;  %3113 = vmatpush.msrb.mxu1 %v2526_v1  ;;  %v2272_v1 = vld [vmem:[#allocation2 + $0x2] sm:$0xff] }
 0x2ea   : > { %v1486_v49 = vpop.f32.mrf.mxu2  ;;  %v1611_v34 = vpop.f32.mrf.mxu3 }
 0x2eb   : > { %v1883_v16 = vsel %vm1811_vm15, %v1734_v11, %v1847_v22  ;;  %v1487_v25 = vadd.f32 %v1486_v49, %v1362_v23  ;;  %v1739_v12 = vpop.f32.mrf.mxu0  ;;  %v2023_v11 = vpop.permute.xlu1 %2022  ;;  %v449_v23 = vld [vmem:[%s4467_s18 + $0x134] sm:$0xff] }
 0x2ec   : > { %v2135_v20 = vmul.f32 %v2018_v35, %v1883_v16  ;;  %v485_v22 = vld [vmem:[%s4467_s18 + $0x135] sm:$0xff]  ;;  %v2028_v35 = vpop.permute.xlu2 %2027 }
 0x2ed   : > { %v1612_v14 = vadd.f32 %v1611_v34, %v1487_v25  ;;  %v2216_v5 = vld [vmem:[#allocation2 + $0x80] sm:$0xff]  ;;  %v1368_v34 = vadd.f32 %v5408_v29, %v5294_v6  ;;  %v1371_v29 = vadd.f32 %v5416_v33, %v5310_v39  ;;  %v1374_v33 = vadd.f32 %v5427_v51, %v5322_v45 }
 0x2ee   : > { %2174 = vst [vmem:[#allocation2 + $0x8b] sm:$0xff] %v2135_v20  ;;  %2668 = vmatmul.f32.gmra.mxu1 %v2216_v5  ;;  %1786 = vmatmul.f32.gmra.mxu0 %v520_v60  ;;  %v2525_v45 = vld [vmem:[#allocation3 + $0x228] sm:$0xff] }
 0x2ef   : > { %v1737_v42 = vadd.f32 %v1736_v2, %v1612_v14  ;;  %1536 = vmatmul.f32.gmra.mxu2 %v4175_v18  ;;  %1661 = vmatmul.f32.gmra.mxu3 %v484_v13  ;;  %v450_v18 = vld [vmem:[%s4467_s18 + $0x13c] sm:$0xff] }
 0x2f0   : > { %3114 = vmatpush.msrb.mxu1 %v2525_v45 }
 0x2f1   : > { %vm1812_vm0 = vcmp.ge.f32.partialorder %v1737_v42, 0.0  ;;  %v1848_v0 = vmul.f32 0.1, %v1737_v42 }
 0x2f2   : > { %v1489_v9 = vpop.f32.mrf.mxu2  ;;  %v1614_v38 = vpop.f32.mrf.mxu3 }
 0x2f3   : > { %v1884_v53 = vsel %vm1812_vm0, %v1737_v42, %v1848_v0  ;;  %v1490_v48 = vadd.f32 %v1489_v9, %v1365_v3  ;;  %v1742_v10 = vpop.f32.mrf.mxu0  ;;  %v522_v42 = vld [vmem:[%s4467_s18 + $0x13e] sm:$0xff] }
 0x2f4   : > { %v2136_v2 = vmul.f32 %v2023_v11, %v1884_v53  ;;  %v486_v3 = vld [vmem:[%s4467_s18 + $0x13d] sm:$0xff] }
 0x2f5   : > { %v1615_v63 = vadd.f32 %v1614_v38, %v1490_v48  ;;  %v2217_v49 = vld [vmem:[#allocation2 + $0x88] sm:$0xff]  ;;  %v2033_v38 = vpop.permute.xlu0 %2032 }
 0x2f6   : > { %2175 = vst [vmem:[#allocation2 + $0x93] sm:$0xff] %v2136_v2  ;;  %2671 = vmatmul.f32.gmra.mxu1 %v2217_v49  ;;  %1789 = vmatmul.f32.gmra.mxu0 %v521_v30  ;;  %v2236_v49 = vld [vmem:[#allocation2 + $0x1] sm:$0xff] }
 0x2f7   : > { %v1740_v40 = vadd.f32 %v1739_v12, %v1615_v63  ;;  %1539 = vmatmul.f32.gmra.mxu2 %v449_v23  ;;  %1664 = vmatmul.f32.gmra.mxu3 %v485_v22 }
 0x2f9   : > { %vm1813_vm1 = vcmp.ge.f32.partialorder %v1740_v40, 0.0  ;;  %v1849_v16 = vmul.f32 0.1, %v1740_v40 }
 0x2fa   : > { %v1492_v25 = vpop.f32.mrf.mxu2  ;;  %v1617_v60 = vpop.f32.mrf.mxu3 }
 0x2fb   : > { %v1885_v20 = vsel %vm1813_vm1, %v1740_v40, %v1849_v16  ;;  %v1493_v13 = vadd.f32 %v1492_v25, %v1368_v34  ;;  %v5567_v14 = vpop.f32.mrf.mxu1  ;;  %v1745_v5 = vpop.f32.mrf.mxu0  ;;  %v2274_v34 = vld [vmem:[#allocation2 + $0x12] sm:$0xff] }
 0x2fc   : > { %v2137_v12 = vmul.f32 %v2028_v35, %v1885_v20  ;;  %v2038_v35 = vpop.permute.xlu1 %2037 }
 0x2fd   : > { %v1618_v0 = vadd.f32 %v1617_v60, %v1493_v13  ;;  %v2218_v9 = vld [vmem:[#allocation2 + $0x90] sm:$0xff] }
 0x2fe   : > { %2176 = vst [vmem:[#allocation2 + $0x9b] sm:$0xff] %v2137_v12  ;;  %2674 = vmatmul.f32.gmra.mxu1 %v2218_v9  ;;  %1792 = vmatmul.f32.gmra.mxu0 %v522_v42 }
 0x2ff   : > { %v1743_v6 = vadd.f32 %v1742_v10, %v1618_v0  ;;  %1542 = vmatmul.f32.gmra.mxu2 %v450_v18  ;;  %1667 = vmatmul.f32.gmra.mxu3 %v486_v3  ;;  %v2237_v3 = vld [vmem:[#allocation2 + $0x9] sm:$0xff] }
 0x300   : > { %v2273_v0 = vld [vmem:[#allocation2 + $0xa] sm:$0xff] }
 0x301   : > { %vm1814_vm2 = vcmp.ge.f32.partialorder %v1743_v6, 0.0  ;;  %v1850_v11 = vmul.f32 0.1, %v1743_v6 }
 0x302   : > { %v1495_v53 = vpop.f32.mrf.mxu2  ;;  %v1620_v48 = vpop.f32.mrf.mxu3 }
 0x303   : > { %v1886_v30 = vsel %vm1814_vm2, %v1743_v6, %v1850_v11  ;;  %v1496_v2 = vadd.f32 %v1495_v53, %v1371_v29  ;;  %v5574_v23 = vpop.f32.mrf.mxu1  ;;  %v1748_v22 = vpop.f32.mrf.mxu0  ;;  %v2275_v6 = vld [vmem:[#allocation2 + $0x1a] sm:$0xff]  ;;  %v1377_v29 = vadd.f32 %v5435_v27, %v5334_v17  ;;  %v1380_v17 = vadd.f32 %v5446_v15, %v5345_v59 }
 0x304   : > { %v2138_v63 = vmul.f32 %v2033_v38, %v1886_v30  ;;  %v2043_v38 = vpop.permute.xlu2 %2042  ;;  %v2048_v27 = vpop.permute.xlu0 %2047  ;;  %v1383_v15 = vadd.f32 %v5454_v55, %v5356_v58  ;;  %v1386_v58 = vadd.f32 %v5463_v21, %v5367_v28  ;;  %v1389_v21 = vadd.f32 %v5469_v62, %v5378_v50 }
 0x305   : > { %v1621_v40 = vadd.f32 %v1620_v48, %v1496_v2  ;;  %v2219_v10 = vld [vmem:[#allocation2 + $0x98] sm:$0xff]  ;;  %v2053_v45 = vpop.permute.xlu1 %2052  ;;  %v1392_v50 = vadd.f32 %v5478_v52, %v5387_v61  ;;  %v1395_v52 = vadd.f32 %v5484_v54, %v5395_v26  ;;  %v1398_v26 = vadd.f32 %v5491_v36, %v5403_v46 }
 0x306   : > { %2177 = vst [vmem:[#allocation2 + $0xa3] sm:$0xff] %v2138_v63  ;;  %2677 = vmatmul.f32.gmra.mxu1 %v2219_v10  ;;  %2995 = vmatmul.f32.vlgmr.msrb.gmra.mxu0 %v2274_v34  ;;  %v1401_v46 = vadd.f32 %v5497_v32, %v5411_v31  ;;  %v1404_v32 = vadd.f32 %v5506_v4, %v5419_v56 }
 0x307   : > { %v1746_v39 = vadd.f32 %v1745_v5, %v1621_v40  ;;  %2745 = vmatmul.f32.vlgmr.msrb.gmra.mxu2 %v2236_v49  ;;  %2870 = vmatmul.f32.vlgmr.msrb.gmra.mxu3 %v2272_v1  ;;  %v1407_v56 = vadd.f32 %v5512_v8, %v5425_v47  ;;  %v1410_v8 = vadd.f32 %v5519_v7, %v5433_v43  ;;  %v2567_v43 = vld [vmem:[#allocation3 + $0x378] sm:$0xff] }
 0x308   : > { %v2583_v7 = vld [vmem:[#allocation3 + $0x3f8] sm:$0xff]  ;;  %3354 = vmatpush.msra.mxu3 %v2567_v43 }
 0x309   : > { %vm1815_vm3 = vcmp.ge.f32.partialorder %v1746_v39, 0.0  ;;  %v1851_v16 = vmul.f32 0.1, %v1746_v39  ;;  %3479 = vmatpush.msra.mxu0 %v2583_v7 }
 0x30a   : > { %v1498_v25 = vpop.f32.mrf.mxu2  ;;  %v1623_v60 = vpop.f32.mrf.mxu3 }
 0x30b   : > { %v1887_v20 = vsel %vm1815_vm3, %v1746_v39, %v1851_v16  ;;  %v1499_v13 = vadd.f32 %v1498_v25, %v1374_v33  ;;  %v5578_v42 = vpop.f32.mrf.mxu1  ;;  %v1751_v12 = vpop.f32.mrf.mxu0  ;;  %v2238_v39 = vld [vmem:[#allocation2 + $0x11] sm:$0xff] }
 0x30c   : > { %v2139_v18 = vmul.f32 %v2038_v35, %v1887_v20  ;;  %v2058_v55 = vpop.permute.xlu2 %2057 }
 0x30d   : > { %v1624_v9 = vadd.f32 %v1623_v60, %v1499_v13  ;;  %v2220_v5 = vld [vmem:[#allocation2 + $0xa0] sm:$0xff]  ;;  %v2068_v62 = vpop.permute.xlu1 %2067 }
 0x30e   : > { %2178 = vst [vmem:[#allocation2 + $0xab] sm:$0xff] %v2139_v18  ;;  %2680 = vmatmul.f32.gmra.mxu1 %v2220_v5  ;;  %2998 = vmatmul.f32.gmra.mxu0 %v2275_v6  ;;  %v2277_v5 = vld [vmem:[#allocation2 + $0x2a] sm:$0xff] }
 0x30f   : > { %v1749_v51 = vadd.f32 %v1748_v22, %v1624_v9  ;;  %2748 = vmatmul.f32.gmra.mxu2 %v2237_v3  ;;  %2873 = vmatmul.f32.gmra.mxu3 %v2273_v0  ;;  %v2276_v22 = vld [vmem:[#allocation2 + $0x22] sm:$0xff] }
 0x311   : > { %vm1816_vm4 = vcmp.ge.f32.partialorder %v1749_v51, 0.0  ;;  %v1852_v11 = vmul.f32 0.1, %v1749_v51 }
 0x312   : > { %v1501_v53 = vpop.f32.mrf.mxu2  ;;  %v1626_v48 = vpop.f32.mrf.mxu3 }
 0x313   : > { %v1888_v30 = vsel %vm1816_vm4, %v1749_v51, %v1852_v11  ;;  %v1502_v2 = vadd.f32 %v1501_v53, %v1377_v29  ;;  %v5582_v63 = vpop.f32.mrf.mxu1  ;;  %v1754_v49 = vpop.f32.mrf.mxu0 }
 0x314   : > { %v2140_v1 = vmul.f32 %v2043_v38, %v1888_v30 }
 0x315   : > { %v1627_v40 = vadd.f32 %v1626_v48, %v1502_v2  ;;  %v2221_v10 = vld [vmem:[#allocation2 + $0xa8] sm:$0xff]  ;;  %v2083_v36 = vpop.permute.xlu1 %2082 }
 0x316   : > { %2179 = vst [vmem:[#allocation2 + $0xb3] sm:$0xff] %v2140_v1  ;;  %2683 = vmatmul.f32.gmra.mxu1 %v2221_v10  ;;  %3001 = vmatmul.f32.gmra.mxu0 %v2276_v22 }
 0x317   : > { %v1752_v33 = vadd.f32 %v1751_v12, %v1627_v40  ;;  %2751 = vmatmul.f32.gmra.mxu2 %v2238_v39  ;;  %2876 = vmatmul.f32.gmra.mxu3 %v2274_v34  ;;  %v2239_v34 = vld [vmem:[#allocation2 + $0x19] sm:$0xff] }
 0x318   : > { %v2524_v12 = vld [vmem:[#allocation3 + $0x220] sm:$0xff] }
 0x319   : > { %vm1817_vm5 = vcmp.ge.f32.partialorder %v1752_v33, 0.0  ;;  %v1853_v35 = vmul.f32 0.1, %v1752_v33  ;;  %3115 = vmatpush.msrb.mxu1 %v2524_v12 }
 0x31a   : > { %v1504_v16 = vpop.f32.mrf.mxu2  ;;  %v1629_v25 = vpop.f32.mrf.mxu3 }
 0x31b   : > { %v1889_v60 = vsel %vm1817_vm5, %v1752_v33, %v1853_v35  ;;  %v1505_v20 = vadd.f32 %v1504_v16, %v1380_v17  ;;  %v5586_v13 = vpop.f32.mrf.mxu1  ;;  %v1757_v18 = vpop.f32.mrf.mxu0 }
 0x31c   : > { %v2141_v3 = vmul.f32 %v2048_v27, %v1889_v60 }
 0x31d   : > { %v1630_v0 = vadd.f32 %v1629_v25, %v1505_v20  ;;  %v2222_v9 = vld [vmem:[#allocation2 + $0xb0] sm:$0xff] }
 0x31e   : > { %2180 = vst [vmem:[#allocation2 + $0xbb] sm:$0xff] %v2141_v3  ;;  %2686 = vmatmul.f32.gmra.mxu1 %v2222_v9  ;;  %3004 = vmatmul.f32.gmra.mxu0 %v2277_v5  ;;  %v2063_v9 = vpop.permute.xlu0 %2062 }
 0x31f   : > { %v1755_v59 = vadd.f32 %v1754_v49, %v1630_v0  ;;  %2754 = vmatmul.f32.gmra.mxu2 %v2239_v34  ;;  %2879 = vmatmul.f32.gmra.mxu3 %v2275_v6  ;;  %v2278_v49 = vld [vmem:[#allocation2 + $0x32] sm:$0xff]  ;;  %v2240_v6 = vld [vmem:[#allocation2 + $0x21] sm:$0xff] }
 0x320   : > { %v2279_v0 = vld [vmem:[#allocation2 + $0x3a] sm:$0xff] }
 0x321   : > { %vm1818_vm6 = vcmp.ge.f32.partialorder %v1755_v59, 0.0  ;;  %v1854_v51 = vmul.f32 0.1, %v1755_v59 }
 0x322   : > { %v1507_v29 = vpop.f32.mrf.mxu2  ;;  %v1632_v38 = vpop.f32.mrf.mxu3 }
 0x323   : > { %v1890_v11 = vsel %vm1818_vm6, %v1755_v59, %v1854_v51  ;;  %v1508_v53 = vadd.f32 %v1507_v29, %v1383_v15  ;;  %v5590_v48 = vpop.f32.mrf.mxu1  ;;  %v1760_v30 = vpop.f32.mrf.mxu0 }
 0x324   : > { %v2142_v2 = vmul.f32 %v2053_v45, %v1890_v11 }
 0x325   : > { %v1633_v1 = vadd.f32 %v1632_v38, %v1508_v53  ;;  %v2223_v40 = vld [vmem:[#allocation2 + $0xb8] sm:$0xff] }
 0x326   : > { %2181 = vst [vmem:[#allocation2 + $0xc3] sm:$0xff] %v2142_v2  ;;  %2689 = vmatmul.f32.gmra.mxu1 %v2223_v40  ;;  %3007 = vmatmul.f32.gmra.mxu0 %v2278_v49  ;;  %v2078_v54 = vpop.permute.xlu0 %2077 }
 0x327   : > { %v1758_v10 = vadd.f32 %v1757_v18, %v1633_v1  ;;  %2757 = vmatmul.f32.gmra.mxu2 %v2240_v6  ;;  %2882 = vmatmul.f32.gmra.mxu3 %v2276_v22  ;;  %v2241_v22 = vld [vmem:[#allocation2 + $0x29] sm:$0xff] }
 0x328   : > { %v2523_v18 = vld [vmem:[#allocation3 + $0x218] sm:$0xff] }
 0x329   : > { %vm1819_vm7 = vcmp.ge.f32.partialorder %v1758_v10, 0.0  ;;  %v1855_v39 = vmul.f32 0.1, %v1758_v10  ;;  %3116 = vmatpush.msrb.mxu1 %v2523_v18 }
 0x32a   : > { %v1510_v33 = vpop.f32.mrf.mxu2  ;;  %v1635_v17 = vpop.f32.mrf.mxu3 }
 0x32b   : > { %v1891_v27 = vsel %vm1819_vm7, %v1758_v10, %v1855_v39  ;;  %v1511_v35 = vadd.f32 %v1510_v33, %v1386_v58  ;;  %v5594_v16 = vpop.f32.mrf.mxu1  ;;  %v1763_v25 = vpop.f32.mrf.mxu0 }
 0x32c   : > { %v2143_v60 = vmul.f32 %v2058_v55, %v1891_v27 }
 0x32d   : > { %v1636_v20 = vadd.f32 %v1635_v17, %v1511_v35  ;;  %v2224_v3 = vld [vmem:[#allocation2 + $0xc0] sm:$0xff]  ;;  %v2281_v35 = vld [vmem:[#allocation2 + $0x4a] sm:$0xff] }
 0x32e   : > { %2182 = vst [vmem:[#allocation2 + $0xcb] sm:$0xff] %v2143_v60  ;;  %2692 = vmatmul.f32.gmra.mxu1 %v2224_v3  ;;  %3010 = vmatmul.f32.gmra.mxu0 %v2279_v0  ;;  %v2073_v60 = vpop.permute.xlu2 %2072  ;;  %v2093_v4 = vpop.permute.xlu0 %2092 }
 0x32f   : > { %v1761_v28 = vadd.f32 %v1760_v30, %v1636_v20  ;;  %2760 = vmatmul.f32.gmra.mxu2 %v2241_v22  ;;  %2885 = vmatmul.f32.gmra.mxu3 %v2277_v5  ;;  %v2280_v30 = vld [vmem:[#allocation2 + $0x42] sm:$0xff]  ;;  %v2242_v5 = vld [vmem:[#allocation2 + $0x31] sm:$0xff] }
 0x331   : > { %vm1820_vm8 = vcmp.ge.f32.partialorder %v1761_v28, 0.0  ;;  %v1856_v34 = vmul.f32 0.1, %v1761_v28 }
 0x332   : > { %v1513_v12 = vpop.f32.mrf.mxu2  ;;  %v1638_v59 = vpop.f32.mrf.mxu3 }
 0x333   : > { %v1892_v15 = vsel %vm1820_vm8, %v1761_v28, %v1856_v34  ;;  %v1514_v45 = vadd.f32 %v1513_v12, %v1389_v21  ;;  %v5598_v51 = vpop.f32.mrf.mxu1  ;;  %v1766_v29 = vpop.f32.mrf.mxu0 }
 0x334   : > { %v2144_v38 = vmul.f32 %v2063_v9, %v1892_v15  ;;  %v2282_v15 = vld [vmem:[#allocation2 + $0x52] sm:$0xff] }
 0x335   : > { %v1639_v11 = vadd.f32 %v1638_v59, %v1514_v45  ;;  %v2225_v53 = vld [vmem:[#allocation2 + $0xc8] sm:$0xff] }
 0x336   : > { %2183 = vst [vmem:[#allocation2 + $0xd3] sm:$0xff] %v2144_v38  ;;  %2695 = vmatmul.f32.gmra.mxu1 %v2225_v53  ;;  %3013 = vmatmul.f32.gmra.mxu0 %v2280_v30 }
 0x337   : > { %v1764_v2 = vadd.f32 %v1763_v25, %v1639_v11  ;;  %2763 = vmatmul.f32.gmra.mxu2 %v2242_v5  ;;  %2888 = vmatmul.f32.gmra.mxu3 %v2278_v49  ;;  %v2243_v49 = vld [vmem:[#allocation2 + $0x39] sm:$0xff]  ;;  %v2522_v25 = vld [vmem:[#allocation3 + $0x210] sm:$0xff] }
 0x338   : > { %3117 = vmatpush.msrb.mxu1 %v2522_v25 }
 0x339   : > { %vm1821_vm9 = vcmp.ge.f32.partialorder %v1764_v2, 0.0  ;;  %v1857_v1 = vmul.f32 0.1, %v1764_v2 }
 0x33a   : > { %v1516_v40 = vpop.f32.mrf.mxu2  ;;  %v1641_v6 = vpop.f32.mrf.mxu3 }
 0x33b   : > { %v1893_v10 = vsel %vm1821_vm9, %v1764_v2, %v1857_v1  ;;  %v1517_v58 = vadd.f32 %v1516_v40, %v1392_v50  ;;  %v5602_v55 = vpop.f32.mrf.mxu1  ;;  %v1769_v39 = vpop.f32.mrf.mxu0 }
 0x33c   : > { %v2145_v33 = vmul.f32 %v2068_v62, %v1893_v10 }
 0x33d   : > { %v1642_v17 = vadd.f32 %v1641_v6, %v1517_v58  ;;  %v2226_v27 = vld [vmem:[#allocation2 + $0xd0] sm:$0xff]  ;;  %v2283_v6 = vld [vmem:[#allocation2 + $0x5a] sm:$0xff] }
 0x33e   : > { %2184 = vst [vmem:[#allocation2 + $0xdb] sm:$0xff] %v2145_v33  ;;  %2698 = vmatmul.f32.gmra.mxu1 %v2226_v27  ;;  %3016 = vmatmul.f32.gmra.mxu0 %v2281_v35 }
 0x33f   : > { %v1767_v61 = vadd.f32 %v1766_v29, %v1642_v17  ;;  %2766 = vmatmul.f32.gmra.mxu2 %v2243_v49  ;;  %2891 = vmatmul.f32.gmra.mxu3 %v2279_v0  ;;  %v2244_v0 = vld [vmem:[#allocation2 + $0x41] sm:$0xff] }
 0x341   : > { %vm1822_vm10 = vcmp.ge.f32.partialorder %v1767_v61, 0.0  ;;  %v1858_v20 = vmul.f32 0.1, %v1767_v61 }
 0x342   : > { %v1519_v3 = vpop.f32.mrf.mxu2  ;;  %v1644_v22 = vpop.f32.mrf.mxu3 }
 0x343   : > { %v1894_v18 = vsel %vm1822_vm10, %v1767_v61, %v1858_v20  ;;  %v1520_v28 = vadd.f32 %v1519_v3, %v1395_v52  ;;  %v5606_v21 = vpop.f32.mrf.mxu1  ;;  %v1772_v9 = vpop.f32.mrf.mxu0  ;;  %v2284_v20 = vld [vmem:[#allocation2 + $0x62] sm:$0xff] }
 0x344   : > { %v2146_v34 = vmul.f32 %v2073_v60, %v1894_v18  ;;  %v2521_v3 = vld [vmem:[#allocation3 + $0x208] sm:$0xff] }
 0x345   : > { %v1645_v12 = vadd.f32 %v1644_v22, %v1520_v28  ;;  %v2227_v59 = vld [vmem:[#allocation2 + $0xd8] sm:$0xff]  ;;  %3118 = vmatpush.msrb.mxu1 %v2521_v3  ;;  %v2088_v22 = vpop.permute.xlu2 %2087 }
 0x346   : > { %2185 = vst [vmem:[#allocation2 + $0xe3] sm:$0xff] %v2146_v34  ;;  %2701 = vmatmul.f32.gmra.mxu1 %v2227_v59  ;;  %3019 = vmatmul.f32.gmra.mxu0 %v2282_v15 }
 0x347   : > { %v1770_v45 = vadd.f32 %v1769_v39, %v1645_v12  ;;  %2769 = vmatmul.f32.gmra.mxu2 %v2244_v0  ;;  %2894 = vmatmul.f32.gmra.mxu3 %v2280_v30  ;;  %v2245_v30 = vld [vmem:[#allocation2 + $0x49] sm:$0xff] }
 0x349   : > { %vm1823_vm11 = vcmp.ge.f32.partialorder %v1770_v45, 0.0  ;;  %v1859_v29 = vmul.f32 0.1, %v1770_v45 }
 0x34a   : > { %v1522_v38 = vpop.f32.mrf.mxu2  ;;  %v1647_v11 = vpop.f32.mrf.mxu3 }
 0x34b   : > { %v1895_v53 = vsel %vm1823_vm11, %v1770_v45, %v1859_v29  ;;  %v1523_v5 = vadd.f32 %v1522_v38, %v1398_v26  ;;  %v5610_v2 = vpop.f32.mrf.mxu1  ;;  %v1775_v50 = vpop.f32.mrf.mxu0  ;;  %v2285_v29 = vld [vmem:[#allocation2 + $0x6a] sm:$0xff] }
 0x34c   : > { %v2147_v62 = vmul.f32 %v2078_v54, %v1895_v53 }
 0x34d   : > { %v1648_v1 = vadd.f32 %v1647_v11, %v1523_v5  ;;  %v2228_v40 = vld [vmem:[#allocation2 + $0xe0] sm:$0xff] }
 0x34e   : > { %2186 = vst [vmem:[#allocation2 + $0xeb] sm:$0xff] %v2147_v62  ;;  %2704 = vmatmul.f32.gmra.mxu1 %v2228_v40  ;;  %3022 = vmatmul.f32.gmra.mxu0 %v2283_v6 }
 0x34f   : > { %v1773_v10 = vadd.f32 %v1772_v9, %v1648_v1  ;;  %2772 = vmatmul.f32.gmra.mxu2 %v2245_v30  ;;  %2897 = vmatmul.f32.gmra.mxu3 %v2281_v35  ;;  %v2246_v35 = vld [vmem:[#allocation2 + $0x51] sm:$0xff] }
 0x351   : > { %vm1824_vm12 = vcmp.ge.f32.partialorder %v1773_v10, 0.0  ;;  %v1860_v58 = vmul.f32 0.1, %v1773_v10 }
 0x352   : > { %v1525_v39 = vpop.f32.mrf.mxu2  ;;  %v1650_v33 = vpop.f32.mrf.mxu3 }
 0x353   : > { %v1896_v17 = vsel %vm1824_vm12, %v1773_v10, %v1860_v58  ;;  %v1526_v27 = vadd.f32 %v1525_v39, %v1401_v46  ;;  %v5614_v49 = vpop.f32.mrf.mxu1  ;;  %v1778_v25 = vpop.f32.mrf.mxu0  ;;  %v2520_v58 = vld [vmem:[#allocation3 + $0x200] sm:$0xff] }
 0x354   : > { %v2148_v61 = vmul.f32 %v2083_v36, %v1896_v17  ;;  %v2286_v36 = vld [vmem:[#allocation2 + $0x72] sm:$0xff]  ;;  %3119 = vmatpush.msrb.mxu1 %v2520_v58  ;;  %v2098_v39 = vpop.permute.xlu1 %2097 }
 0x355   : > { %v1651_v52 = vadd.f32 %v1650_v33, %v1526_v27  ;;  %v2229_v60 = vld [vmem:[#allocation2 + $0xe8] sm:$0xff] }
 0x356   : > { %2187 = vst [vmem:[#allocation2 + $0xf3] sm:$0xff] %v2148_v61  ;;  %2707 = vmatmul.f32.gmra.mxu1 %v2229_v60  ;;  %3025 = vmatmul.f32.gmra.mxu0 %v2284_v20 }
 0x357   : > { %v1776_v31 = vadd.f32 %v1775_v50, %v1651_v52  ;;  %2775 = vmatmul.f32.gmra.mxu2 %v2246_v35  ;;  %2900 = vmatmul.f32.gmra.mxu3 %v2282_v15  ;;  %v2247_v15 = vld [vmem:[#allocation2 + $0x59] sm:$0xff] }
 0x359   : > { %vm1825_vm13 = vcmp.ge.f32.partialorder %v1776_v31, 0.0  ;;  %v1861_v18 = vmul.f32 0.1, %v1776_v31 }
 0x35a   : > { %v1528_v28 = vpop.f32.mrf.mxu2  ;;  %v1653_v9 = vpop.f32.mrf.mxu3 }
 0x35b   : > { %v1897_v34 = vsel %vm1825_vm13, %v1776_v31, %v1861_v18  ;;  %v1529_v12 = vadd.f32 %v1528_v28, %v1404_v32  ;;  %v5618_v59 = vpop.f32.mrf.mxu1  ;;  %v1781_v0 = vpop.f32.mrf.mxu0  ;;  %v2249_v32 = vld [vmem:[#allocation2 + $0x69] sm:$0xff] }
 0x35c   : > { %v2149_v45 = vmul.f32 %v2088_v22, %v1897_v34  ;;  %v2287_v22 = vld [vmem:[#allocation2 + $0x7a] sm:$0xff]  ;;  %v2599_v28 = vld [vmem:[#allocation3 + $0x478] sm:$0xff]  ;;  %v2103_v34 = vpop.permute.xlu2 %2102 }
 0x35d   : > { %v1654_v26 = vadd.f32 %v1653_v9, %v1529_v12  ;;  %v2230_v54 = vld [vmem:[#allocation2 + $0xf0] sm:$0xff]  ;;  %v1413_v9 = vadd.f32 %v5527_v57, %v5441_v24  ;;  %3604 = vmatpush.msra.mxu1 %v2599_v28  ;;  %v2566_v57 = vld [vmem:[#allocation3 + $0x370] sm:$0xff] }
 0x35e   : > { %2188 = vst [vmem:[#allocation2 + $0xfb] sm:$0xff] %v2149_v45  ;;  %2710 = vmatmul.f32.gmra.mxu1 %v2230_v54  ;;  %3028 = vmatmul.f32.gmra.mxu0 %v2285_v29  ;;  %v2250_v24 = vld [vmem:[#allocation2 + $0x71] sm:$0xff] }
 0x35f   : > { %v1779_v38 = vadd.f32 %v1778_v25, %v1654_v26  ;;  %2778 = vmatmul.f32.gmra.mxu2 %v2247_v15  ;;  %2903 = vmatmul.f32.gmra.mxu3 %v2283_v6  ;;  %v2248_v6 = vld [vmem:[#allocation2 + $0x61] sm:$0xff] }
 0x360   : > { %3355 = vmatpush.msra.mxu3 %v2566_v57 }
 0x361   : > { %vm1826_vm14 = vcmp.ge.f32.partialorder %v1779_v38, 0.0  ;;  %v1862_v11 = vmul.f32 0.1, %v1779_v38 }
 0x362   : > { %v1531_v53 = vpop.f32.mrf.mxu2  ;;  %v1656_v5 = vpop.f32.mrf.mxu3 }
 0x363   : > { %v1898_v50 = vsel %vm1826_vm14, %v1779_v38, %v1862_v11  ;;  %v1532_v62 = vadd.f32 %v1531_v53, %v1407_v56  ;;  %v5622_v1 = vpop.f32.mrf.mxu1  ;;  %v1784_v40 = vpop.f32.mrf.mxu0  ;;  %v2288_v11 = vld [vmem:[#allocation2 + $0x82] sm:$0xff] }
 0x364   : > { %v2150_v30 = vmul.f32 %v2093_v4, %v1898_v50  ;;  %v2550_v53 = vld [vmem:[#allocation3 + $0x2f0] sm:$0xff]  ;;  %v6238_v50 = vld [vmem:[#allocation9_spill] sm:$0xff] }
 0x365   : > { %v1657_v10 = vadd.f32 %v1656_v5, %v1532_v62  ;;  %v2231_v46 = vld [vmem:[#allocation2 + $0xf8] sm:$0xff]  ;;  %v1416_v62 = vadd.f32 %v5536_v41, %v6238_v50 }
 0x366   : > { %2189 = vst [vmem:[#allocation2 + $0x103] sm:$0xff] %v2150_v30  ;;  %2713 = vmatmul.f32.gmra.mxu1 %v2231_v46  ;;  %3031 = vmatmul.f32.gmra.mxu0 %v2286_v36 }
 0x367   : > { %v1782_v47 = vadd.f32 %v1781_v0, %v1657_v10  ;;  %2781 = vmatmul.f32.gmra.mxu2 %v2248_v6  ;;  %2906 = vmatmul.f32.gmra.mxu3 %v2284_v20  ;;  %v2551_v20 = vld [vmem:[#allocation3 + $0x2f8] sm:$0xff] }
 0x368   : > { %3229 = vmatpush.msra.mxu2 %v2551_v20 }
 0x369   : > { %vm1827_vm15 = vcmp.ge.f32.partialorder %v1782_v47, 0.0  ;;  %v1863_v33 = vmul.f32 0.1, %v1782_v47 }
 0x36a   : > { %v1534_v17 = vpop.f32.mrf.mxu2  ;;  %v1659_v27 = vpop.f32.mrf.mxu3  ;;  %3230 = vmatpush.msra.mxu2 %v2550_v53 }
 0x36b   : > { %v1899_v25 = vsel %vm1827_vm15, %v1782_v47, %v1863_v33  ;;  %v1535_v61 = vadd.f32 %v1534_v17, %v1410_v8  ;;  %v5626_v52 = vpop.f32.mrf.mxu1  ;;  %v1787_v60 = vpop.f32.mrf.mxu0 }
 0x36c   : > { %v2151_v35 = vmul.f32 %v2098_v39, %v1899_v25  ;;  %v2582_v25 = vld [vmem:[#allocation3 + $0x3f0] sm:$0xff] }
 0x36d   : > { %v1660_v3 = vadd.f32 %v1659_v27, %v1535_v61  ;;  %v2232_v31 = vld [vmem:[#allocation2 + $0x100] sm:$0xff]  ;;  %v2289_v27 = vld [vmem:[#allocation2 + $0x8a] sm:$0xff]  ;;  %3480 = vmatpush.msra.mxu0 %v2582_v25 }
 0x36e   : > { %2190 = vst [vmem:[#allocation2 + $0x10b] sm:$0xff] %v2151_v35  ;;  %2716 = vmatmul.f32.gmra.mxu1 %v2232_v31  ;;  %3034 = vmatmul.f32.gmra.mxu0 %v2287_v22  ;;  %v2598_v61 = vld [vmem:[#allocation3 + $0x470] sm:$0xff]  ;;  %v2311_v25 = vld [vmem:[#allocation2 + $0x1b] sm:$0xff] }
 0x36f   : > { %v1785_v18 = vadd.f32 %v1784_v40, %v1660_v3  ;;  %2784 = vmatmul.f32.gmra.mxu2 %v2249_v32  ;;  %2909 = vmatmul.f32.gmra.mxu3 %v2285_v29  ;;  %v2108_v40 = vpop.permute.xlu0 %2107  ;;  %v2113_v3 = vpop.permute.xlu1 %2112 }
 0x370   : > { %3605 = vmatpush.msra.mxu1 %v2598_v61  ;;  %v2597_v61 = vld [vmem:[#allocation3 + $0x468] sm:$0xff] }
 0x371   : > { %vm1828_vm0 = vcmp.ge.f32.partialorder %v1785_v18, 0.0  ;;  %v1864_v12 = vmul.f32 0.1, %v1785_v18 }
 0x372   : > { %v1537_v0 = vpop.f32.mrf.mxu2  ;;  %v1662_v45 = vpop.f32.mrf.mxu3  ;;  %3606 = vmatpush.msra.mxu1 %v2597_v61 }
 0x373   : > { %v1900_v26 = vsel %vm1828_vm0, %v1785_v18, %v1864_v12  ;;  %v1538_v54 = vadd.f32 %v1537_v0, %v1413_v9  ;;  %v5630_v15 = vpop.f32.mrf.mxu1  ;;  %v1790_v38 = vpop.f32.mrf.mxu0  ;;  %v2290_v0 = vld [vmem:[#allocation2 + $0x92] sm:$0xff] }
 0x374   : > { %v2152_v56 = vmul.f32 %v2103_v34, %v1900_v26 }
 0x375   : > { %v1663_v29 = vadd.f32 %v1662_v45, %v1538_v54  ;;  %v2233_v4 = vld [vmem:[#allocation2 + $0x108] sm:$0xff]  ;;  %v2549_v45 = vld [vmem:[#allocation3 + $0x2e8] sm:$0xff] }
 0x376   : > { %2191 = vst [vmem:[#allocation2 + $0x113] sm:$0xff] %v2152_v56  ;;  %2719 = vmatmul.f32.gmra.mxu1 %v2233_v4  ;;  %3037 = vmatmul.f32.gmra.mxu0 %v2288_v11  ;;  %v2565_v54 = vld [vmem:[#allocation3 + $0x368] sm:$0xff] }
 0x377   : > { %v1788_v5 = vadd.f32 %v1787_v60, %v1663_v29  ;;  %2787 = vmatmul.f32.gmra.mxu2 %v2250_v24  ;;  %2912 = vmatmul.f32.gmra.mxu3 %v2286_v36  ;;  %v2251_v36 = vld [vmem:[#allocation2 + $0x79] sm:$0xff] }
 0x378   : > { %v6239_v60 = vld [vmem:[#allocation10_spill] sm:$0xff]  ;;  %3231 = vmatpush.msra.mxu2 %v2549_v45  ;;  %3356 = vmatpush.msra.mxu3 %v2565_v54 }
 0x379   : > { %vm1829_vm1 = vcmp.ge.f32.partialorder %v1788_v5, 0.0  ;;  %v1865_v30 = vmul.f32 0.1, %v1788_v5  ;;  %v1419_v35 = vadd.f32 %v5543_v44, %v6239_v60  ;;  %v2252_v44 = vld [vmem:[#allocation2 + $0x81] sm:$0xff]  ;;  %v2254_v60 = vld [vmem:[#allocation2 + $0x91] sm:$0xff] }
 0x37a   : > { %v1540_v10 = vpop.f32.mrf.mxu2  ;;  %v1665_v46 = vpop.f32.mrf.mxu3 }
 0x37b   : > { %v1901_v6 = vsel %vm1829_vm1, %v1788_v5, %v1865_v30  ;;  %v1541_v58 = vadd.f32 %v1540_v10, %v1416_v62  ;;  %v5634_v47 = vpop.f32.mrf.mxu1  ;;  %v1793_v8 = vpop.f32.mrf.mxu0  ;;  %v2310_v30 = vld [vmem:[#allocation2 + $0x13] sm:$0xff]  ;;  %v2253_v10 = vld [vmem:[#allocation2 + $0x89] sm:$0xff] }
 0x37c   : > { %v2153_v39 = vmul.f32 %v2108_v40, %v1901_v6 }
 0x37d   : > { %v1666_v33 = vadd.f32 %v1665_v46, %v1541_v58  ;;  %v2234_v17 = vld [vmem:[#allocation2 + $0x110] sm:$0xff] }
 0x37e   : > { %2192 = vst [vmem:[#allocation2 + $0x11b] sm:$0xff] %v2153_v39  ;;  %2722 = vmatmul.f32.gmra.mxu1 %v2234_v17  ;;  %3040 = vmatmul.f32.gmra.mxu0 %v2289_v27 }
 0x37f   : > { %v1791_v41 = vadd.f32 %v1790_v38, %v1666_v33  ;;  %2790 = vmatmul.f32.gmra.mxu2 %v2251_v36  ;;  %2915 = vmatmul.f32.gmra.mxu3 %v2287_v22  ;;  %v5643_v22 = vld [vmem:[%s6214_s5] ss:$0 sm:$0xff]  ;;  %v2118_v38 = vpop.permute.xlu2 %2117 }
 0x380   : > { %v2622_v56 = vadd.f32 %v5643_v22, %v5551_v19  ;;  %v2581_v19 = vld [vmem:[#allocation3 + $0x3e8] sm:$0xff]  ;;  %v2625_v6 = vadd.f32 %v5643_v22, %v5560_v37  ;;  %v2628_v37 = vadd.f32 %v5643_v22, %v5567_v14  ;;  %v2631_v14 = vadd.f32 %v5643_v22, %v5574_v23 }
 0x381   : > { %vm1830_vm2 = vcmp.ge.f32.partialorder %v1791_v41, 0.0  ;;  %v1866_v31 = vmul.f32 0.1, %v1791_v41  ;;  %3481 = vmatpush.msra.mxu0 %v2581_v19  ;;  %v2634_v23 = vadd.f32 %v5643_v22, %v5578_v42  ;;  %v2314_v19 = vld [vmem:[#allocation2 + $0x33] sm:$0xff]  ;;  %v2637_v42 = vadd.f32 %v5643_v22, %v5582_v63 }
 0x382   : > { %v1543_v32 = vpop.f32.mrf.mxu2  ;;  %v1668_v20 = vpop.f32.mrf.mxu3  ;;  %v2640_v63 = vadd.f32 %v5643_v22, %v5586_v13  ;;  %v2643_v13 = vadd.f32 %v5643_v22, %v5590_v48  ;;  %v2646_v48 = vadd.f32 %v5643_v22, %v5594_v16  ;;  %v2649_v16 = vadd.f32 %v5643_v22, %v5598_v51 }
 0x383   : > { %v1902_v43 = vsel %vm1830_vm2, %v1791_v41, %v1866_v31  ;;  %v1544_v7 = vadd.f32 %v1543_v32, %v1419_v35  ;;  %v5638_v18 = vpop.f32.mrf.mxu1  ;;  %v2996_v28 = vpop.f32.mrf.mxu0  ;;  %v2292_v41 = vld [vmem:[#allocation2 + $0xa2] sm:$0xff]  ;;  %v2652_v51 = vadd.f32 %v5643_v22, %v5602_v55  ;;  %v2655_v55 = vadd.f32 %v5643_v22, %v5606_v21 }
 0x384   : > { %v2154_v9 = vmul.f32 %v2113_v3, %v1902_v43  ;;  %v2658_v21 = vadd.f32 %v5643_v22, %v5610_v2  ;;  %v2661_v2 = vadd.f32 %v5643_v22, %v5614_v49 }
 0x385   : > { %v1669_v34 = vadd.f32 %v1668_v20, %v1544_v7  ;;  %v2235_v12 = vld [vmem:[#allocation2 + $0x118] sm:$0xff] }
 0x386   : > { %2193 = vst [vmem:[#allocation2 + $0x123] sm:$0xff] %v2154_v9  ;;  %2725 = vmatmul.f32.gmra.mxu1 %v2235_v12  ;;  %3043 = vmatmul.f32.gmra.mxu0 %v2290_v0  ;;  %v2293_v9 = vld [vmem:[#allocation2 + $0xaa] sm:$0xff]  ;;  %v2255_v12 = vld [vmem:[#allocation2 + $0x99] sm:$0xff] }
 0x387   : > { %v1794_v26 = vadd.f32 %v1793_v8, %v1669_v34  ;;  %2793 = vmatmul.f32.gmra.mxu2 %v2252_v44  ;;  %2918 = vmatmul.f32.gmra.mxu3 %v2288_v11  ;;  %v2291_v11 = vld [vmem:[#allocation2 + $0x9a] sm:$0xff] }
 0x388   : > { %v2564_v34 = vld [vmem:[#allocation3 + $0x360] sm:$0xff] }
 0x389   : > { %vm1831_vm3 = vcmp.ge.f32.partialorder %v1794_v26, 0.0  ;;  %v1867_v29 = vmul.f32 0.1, %v1794_v26  ;;  %3357 = vmatpush.msra.mxu3 %v2564_v34 }
 0x38a   : > { %v2746_v4 = vpop.f32.mrf.mxu2  ;;  %v2871_v53 = vpop.f32.mrf.mxu3 }
 0x38b   : > { %v1903_v24 = vsel %vm1831_vm3, %v1794_v26, %v1867_v29  ;;  %v2747_v57 = vadd.f32 %v2746_v4, %v2622_v56  ;;  %v5647_v5 = vpop.f32.mrf.mxu1  ;;  %v2999_v50 = vpop.f32.mrf.mxu0  ;;  %v2313_v56 = vld [vmem:[#allocation2 + $0x2b] sm:$0xff] }
 0x38c   : > { %v2155_v62 = vmul.f32 %v2118_v38, %v1903_v24  ;;  %v2294_v4 = vld [vmem:[#allocation2 + $0xb2] sm:$0xff] }
 0x38d   : > { %v2872_v40 = vadd.f32 %v2871_v53, %v2747_v57  ;;  %v2580_v53 = vld [vmem:[#allocation3 + $0x3e0] sm:$0xff]  ;;  %v2256_v57 = vld [vmem:[#allocation2 + $0xa1] sm:$0xff] }
 0x38e   : > { %2194 = vst [vmem:[#allocation2 + $0x12b] sm:$0xff] %v2155_v62  ;;  %3120 = vmatmul.f32.vlgmr.msrb.gmra.mxu1 %v2310_v30  ;;  %3046 = vmatmul.f32.gmra.mxu0 %v2291_v11  ;;  %v2596_v24 = vld [vmem:[#allocation3 + $0x460] sm:$0xff] }
 0x38f   : > { %2796 = vmatmul.f32.gmra.mxu2 %v2253_v10  ;;  %2921 = vmatmul.f32.gmra.mxu3 %v2289_v27  ;;  %v5649_v46 = vadd.f32 %v2996_v28, %v2872_v40  ;;  %v2548_v27 = vld [vmem:[#allocation3 + $0x2e0] sm:$0xff]  ;;  %v2312_v28 = vld [vmem:[#allocation2 + $0x23] sm:$0xff] }
 0x390   : > { %3232 = vmatpush.msra.mxu2 %v2548_v27  ;;  %3482 = vmatpush.msra.mxu0 %v2580_v53 }
 0x391   : > { %3607 = vmatpush.msra.mxu1 %v2596_v24 }
 0x392   : > { %v2749_v58 = vpop.f32.mrf.mxu2  ;;  %v2874_v8 = vpop.f32.mrf.mxu3 }
 0x393   : > { %v2750_v39 = vadd.f32 %v2749_v58, %v2625_v6  ;;  %v5653_v33 = vpop.f32.mrf.mxu1  ;;  %v3002_v17 = vpop.f32.mrf.mxu0  ;;  %v2295_v58 = vld [vmem:[#allocation2 + $0xba] sm:$0xff] }
 0x395   : > { %v2875_v36 = vadd.f32 %v2874_v8, %v2750_v39  ;;  %v2547_v8 = vld [vmem:[#allocation3 + $0x2d8] sm:$0xff] }
 0x396   : > { %3123 = vmatmul.f32.gmra.mxu1 %v2311_v25  ;;  %3049 = vmatmul.f32.gmra.mxu0 %v2292_v41  ;;  %v2563_v39 = vld [vmem:[#allocation3 + $0x358] sm:$0xff] }
 0x397   : > { %2799 = vmatmul.f32.gmra.mxu2 %v2254_v60  ;;  %2924 = vmatmul.f32.gmra.mxu3 %v2290_v0  ;;  %v5655_v35 = vadd.f32 %v2999_v50, %v2875_v36 }
 0x398   : > { %3233 = vmatpush.msra.mxu2 %v2547_v8  ;;  %3358 = vmatpush.msra.mxu3 %v2563_v39  ;;  %v2594_v8 = vld [vmem:[#allocation3 + $0x450] sm:$0xff] }
 0x39a   : > { %v2752_v3 = vpop.f32.mrf.mxu2  ;;  %v2877_v31 = vpop.f32.mrf.mxu3 }
 0x39b   : > { %v2753_v32 = vadd.f32 %v2752_v3, %v2628_v37  ;;  %v5659_v20 = vpop.f32.mrf.mxu1  ;;  %v3005_v43 = vpop.f32.mrf.mxu0  ;;  %v2315_v3 = vld [vmem:[#allocation2 + $0x3b] sm:$0xff] }
 0x39d   : > { %v2878_v7 = vadd.f32 %v2877_v31, %v2753_v32  ;;  %v2296_v31 = vld [vmem:[#allocation2 + $0xc2] sm:$0xff]  ;;  %v2579_v32 = vld [vmem:[#allocation3 + $0x3d8] sm:$0xff] }
 0x39e   : > { %3126 = vmatmul.f32.gmra.mxu1 %v2312_v28  ;;  %3052 = vmatmul.f32.gmra.mxu0 %v2293_v9 }
 0x39f   : > { %2802 = vmatmul.f32.gmra.mxu2 %v2255_v12  ;;  %2927 = vmatmul.f32.gmra.mxu3 %v2291_v11  ;;  %v5661_v0 = vadd.f32 %v3002_v17, %v2878_v7  ;;  %v2257_v17 = vld [vmem:[#allocation2 + $0xa9] sm:$0xff] }
 0x3a0   : > { %v2595_v7 = vld [vmem:[#allocation3 + $0x458] sm:$0xff]  ;;  %3483 = vmatpush.msra.mxu0 %v2579_v32 }
 0x3a1   : > { %3608 = vmatpush.msra.mxu1 %v2595_v7  ;;  %v2261_v32 = vld [vmem:[#allocation2 + $0xc9] sm:$0xff] }
 0x3a2   : > { %v2755_v44 = vpop.f32.mrf.mxu2  ;;  %v2880_v45 = vpop.f32.mrf.mxu3 }
 0x3a3   : > { %v2756_v26 = vadd.f32 %v2755_v44, %v2631_v14  ;;  %v5665_v54 = vpop.f32.mrf.mxu1  ;;  %v3008_v38 = vpop.f32.mrf.mxu0  ;;  %3609 = vmatpush.msra.mxu1 %v2594_v8  ;;  %v2263_v8 = vld [vmem:[#allocation2 + $0xd9] sm:$0xff] }
 0x3a5   : > { %v2881_v29 = vadd.f32 %v2880_v45, %v2756_v26  ;;  %v2316_v26 = vld [vmem:[#allocation2 + $0x43] sm:$0xff] }
 0x3a6   : > { %3129 = vmatmul.f32.gmra.mxu1 %v2313_v56  ;;  %3055 = vmatmul.f32.gmra.mxu0 %v2294_v4  ;;  %v2546_v56 = vld [vmem:[#allocation3 + $0x2d0] sm:$0xff] }
 0x3a7   : > { %2805 = vmatmul.f32.gmra.mxu2 %v2256_v57  ;;  %2930 = vmatmul.f32.gmra.mxu3 %v2292_v41  ;;  %v5667_v50 = vadd.f32 %v3005_v43, %v2881_v29  ;;  %v2258_v43 = vld [vmem:[#allocation2 + $0xb1] sm:$0xff]  ;;  %v2259_v29 = vld [vmem:[#allocation2 + $0xb9] sm:$0xff] }
 0x3a8   : > { %3234 = vmatpush.msra.mxu2 %v2546_v56  ;;  %v2300_v56 = vld [vmem:[#allocation2 + $0xe2] sm:$0xff] }
 0x3aa   : > { %v2758_v62 = vpop.f32.mrf.mxu2  ;;  %v2883_v40 = vpop.f32.mrf.mxu3 }
 0x3ab   : > { %v2759_v30 = vadd.f32 %v2758_v62, %v2634_v23  ;;  %v5671_v11 = vpop.f32.mrf.mxu1  ;;  %v3011_v10 = vpop.f32.mrf.mxu0 }
 0x3ad   : > { %v2884_v6 = vadd.f32 %v2883_v40, %v2759_v30 }
 0x3ae   : > { %3132 = vmatmul.f32.gmra.mxu1 %v2314_v19  ;;  %3058 = vmatmul.f32.gmra.mxu0 %v2295_v58  ;;  %v2298_v19 = vld [vmem:[#allocation2 + $0xd2] sm:$0xff] }
 0x3af   : > { %2808 = vmatmul.f32.gmra.mxu2 %v2257_v17  ;;  %2933 = vmatmul.f32.gmra.mxu3 %v2293_v9  ;;  %v5673_v36 = vadd.f32 %v3008_v38, %v2884_v6  ;;  %v2297_v38 = vld [vmem:[#allocation2 + $0xca] sm:$0xff]  ;;  %v2260_v6 = vld [vmem:[#allocation2 + $0xc1] sm:$0xff] }
 0x3b2   : > { %v2761_v25 = vpop.f32.mrf.mxu2  ;;  %v2886_v41 = vpop.f32.mrf.mxu3 }
 0x3b3   : > { %v2762_v61 = vadd.f32 %v2761_v25, %v2637_v42  ;;  %v5677_v60 = vpop.f32.mrf.mxu1  ;;  %v3014_v27 = vpop.f32.mrf.mxu0 }
 0x3b5   : > { %v2887_v37 = vadd.f32 %v2886_v41, %v2762_v61 }
 0x3b6   : > { %3135 = vmatmul.f32.gmra.mxu1 %v2315_v3  ;;  %3061 = vmatmul.f32.gmra.mxu0 %v2296_v31  ;;  %v2299_v3 = vld [vmem:[#allocation2 + $0xda] sm:$0xff] }
 0x3b7   : > { %2811 = vmatmul.f32.gmra.mxu2 %v2258_v43  ;;  %2936 = vmatmul.f32.gmra.mxu3 %v2294_v4  ;;  %v5679_v28 = vadd.f32 %v3011_v10, %v2887_v37  ;;  %v2562_v4 = vld [vmem:[#allocation3 + $0x350] sm:$0xff]  ;;  %v2318_v37 = vld [vmem:[#allocation2 + $0x53] sm:$0xff]  ;;  %v2561_v43 = vld [vmem:[#allocation3 + $0x348] sm:$0xff] }
 0x3b8   : > { %3359 = vmatpush.msra.mxu3 %v2562_v4  ;;  %v2317_v10 = vld [vmem:[#allocation2 + $0x4b] sm:$0xff] }
 0x3ba   : > { %v2764_v9 = vpop.f32.mrf.mxu2  ;;  %v2889_v34 = vpop.f32.mrf.mxu3  ;;  %3360 = vmatpush.msra.mxu3 %v2561_v43  ;;  %v2560_v43 = vld [vmem:[#allocation3 + $0x340] sm:$0xff] }
 0x3bb   : > { %v2765_v12 = vadd.f32 %v2764_v9, %v2640_v63  ;;  %v5683_v14 = vpop.f32.mrf.mxu1  ;;  %v3017_v44 = vpop.f32.mrf.mxu0 }
 0x3bc   : > { %3361 = vmatpush.msra.mxu3 %v2560_v43 }
 0x3bd   : > { %v2890_v45 = vadd.f32 %v2889_v34, %v2765_v12 }
 0x3be   : > { %3138 = vmatmul.f32.gmra.mxu1 %v2316_v26  ;;  %3064 = vmatmul.f32.gmra.mxu0 %v2297_v38  ;;  %v2319_v26 = vld [vmem:[#allocation2 + $0x5b] sm:$0xff] }
 0x3bf   : > { %2814 = vmatmul.f32.gmra.mxu2 %v2259_v29  ;;  %2939 = vmatmul.f32.gmra.mxu3 %v2295_v58  ;;  %v5685_v53 = vadd.f32 %v3014_v27, %v2890_v45  ;;  %v2578_v58 = vld [vmem:[#allocation3 + $0x3d0] sm:$0xff]  ;;  %v2262_v29 = vld [vmem:[#allocation2 + $0xd1] sm:$0xff] }
 0x3c0   : > { %3484 = vmatpush.msra.mxu0 %v2578_v58  ;;  %v2593_v58 = vld [vmem:[#allocation3 + $0x448] sm:$0xff] }
 0x3c1   : > { %3610 = vmatpush.msra.mxu1 %v2593_v58 }
 0x3c2   : > { %v2767_v24 = vpop.f32.mrf.mxu2  ;;  %v2892_v57 = vpop.f32.mrf.mxu3 }
 0x3c3   : > { %v2768_v23 = vadd.f32 %v2767_v24, %v2643_v13  ;;  %v5689_v62 = vpop.f32.mrf.mxu1  ;;  %v3020_v40 = vpop.f32.mrf.mxu0 }
 0x3c5   : > { %v2893_v30 = vadd.f32 %v2892_v57, %v2768_v23 }
 0x3c6   : > { %3141 = vmatmul.f32.gmra.mxu1 %v2317_v10  ;;  %3067 = vmatmul.f32.gmra.mxu0 %v2298_v19  ;;  %v2320_v10 = vld [vmem:[#allocation2 + $0x63] sm:$0xff] }
 0x3c7   : > { %2817 = vmatmul.f32.gmra.mxu2 %v2260_v6  ;;  %2942 = vmatmul.f32.gmra.mxu3 %v2296_v31  ;;  %v5691_v39 = vadd.f32 %v3017_v44, %v2893_v30  ;;  %v2545_v31 = vld [vmem:[#allocation3 + $0x2c8] sm:$0xff]  ;;  %v2301_v6 = vld [vmem:[#allocation2 + $0xea] sm:$0xff] }
 0x3c8   : > { %3235 = vmatpush.msra.mxu2 %v2545_v31  ;;  %v2302_v31 = vld [vmem:[#allocation2 + $0xf2] sm:$0xff] }
 0x3ca   : > { %v2770_v17 = vpop.f32.mrf.mxu2  ;;  %v2895_v42 = vpop.f32.mrf.mxu3 }
 0x3cb   : > { %v2771_v25 = vadd.f32 %v2770_v17, %v2646_v48  ;;  %v5695_v41 = vpop.f32.mrf.mxu1  ;;  %v3023_v61 = vpop.f32.mrf.mxu0 }
 0x3cd   : > { %v2896_v27 = vadd.f32 %v2895_v42, %v2771_v25 }
 0x3ce   : > { %3144 = vmatmul.f32.gmra.mxu1 %v2318_v37  ;;  %3070 = vmatmul.f32.gmra.mxu0 %v2299_v3 }
 0x3cf   : > { %2820 = vmatmul.f32.gmra.mxu2 %v2261_v32  ;;  %2945 = vmatmul.f32.gmra.mxu3 %v2297_v38  ;;  %v5697_v7 = vadd.f32 %v3020_v40, %v2896_v27  ;;  %v2577_v38 = vld [vmem:[#allocation3 + $0x3c8] sm:$0xff]  ;;  %v2321_v32 = vld [vmem:[#allocation2 + $0x6b] sm:$0xff] }
 0x3d0   : > { %3485 = vmatpush.msra.mxu0 %v2577_v38  ;;  %v2303_v38 = vld [vmem:[#allocation2 + $0xfa] sm:$0xff] }
 0x3d2   : > { %v2773_v63 = vpop.f32.mrf.mxu2  ;;  %v2898_v9 = vpop.f32.mrf.mxu3 }
 0x3d3   : > { %v2774_v34 = vadd.f32 %v2773_v63, %v2649_v16  ;;  %v5701_v12 = vpop.f32.mrf.mxu1  ;;  %v3026_v44 = vpop.f32.mrf.mxu0 }
 0x3d5   : > { %v2899_v45 = vadd.f32 %v2898_v9, %v2774_v34 }
 0x3d6   : > { %3147 = vmatmul.f32.gmra.mxu1 %v2319_v26  ;;  %3073 = vmatmul.f32.gmra.mxu0 %v2300_v56  ;;  %v2322_v26 = vld [vmem:[#allocation2 + $0x73] sm:$0xff] }
 0x3d7   : > { %2823 = vmatmul.f32.gmra.mxu2 %v2262_v29  ;;  %2948 = vmatmul.f32.gmra.mxu3 %v2298_v19  ;;  %v5703_v4 = vadd.f32 %v3023_v61, %v2899_v45  ;;  %v2544_v19 = vld [vmem:[#allocation3 + $0x2c0] sm:$0xff] }
 0x3d8   : > { %3236 = vmatpush.msra.mxu2 %v2544_v19 }
 0x3da   : > { %v2776_v13 = vpop.f32.mrf.mxu2  ;;  %v2901_v24 = vpop.f32.mrf.mxu3 }
 0x3db   : > { %v2777_v57 = vadd.f32 %v2776_v13, %v2652_v51  ;;  %v5707_v23 = vpop.f32.mrf.mxu1  ;;  %v3029_v40 = vpop.f32.mrf.mxu0  ;;  %v2576_v51 = vld [vmem:[#allocation3 + $0x3c0] sm:$0xff] }
 0x3dc   : > { %v2592_v13 = vld [vmem:[#allocation3 + $0x440] sm:$0xff]  ;;  %3486 = vmatpush.msra.mxu0 %v2576_v51  ;;  %v2557_v51 = vld [vmem:[#allocation3 + $0x328] sm:$0xff] }
 0x3dd   : > { %v2902_v30 = vadd.f32 %v2901_v24, %v2777_v57  ;;  %v2265_v24 = vld [vmem:[#allocation2 + $0xe9] sm:$0xff]  ;;  %3611 = vmatpush.msra.mxu1 %v2592_v13 }
 0x3de   : > { %3150 = vmatmul.f32.gmra.mxu1 %v2320_v10  ;;  %3076 = vmatmul.f32.gmra.mxu0 %v2301_v6 }
 0x3df   : > { %2826 = vmatmul.f32.gmra.mxu2 %v2263_v8  ;;  %2951 = vmatmul.f32.gmra.mxu3 %v2299_v3  ;;  %v5709_v48 = vadd.f32 %v3026_v44, %v2902_v30  ;;  %v2264_v3 = vld [vmem:[#allocation2 + $0xe1] sm:$0xff] }
 0x3e0   : > { %v2323_v8 = vld [vmem:[#allocation2 + $0x7b] sm:$0xff] }
 0x3e2   : > { %v2779_v17 = vpop.f32.mrf.mxu2  ;;  %v2904_v42 = vpop.f32.mrf.mxu3 }
 0x3e3   : > { %v2780_v25 = vadd.f32 %v2779_v17, %v2655_v55  ;;  %v5713_v61 = vpop.f32.mrf.mxu1  ;;  %v3032_v27 = vpop.f32.mrf.mxu0  ;;  %v5727_v55 = vld [vmem:[#allocation2 + $0x102] sm:$0xff]  ;;  %v2543_v17 = vld [vmem:[#allocation3 + $0x2b8] sm:$0xff] }
 0x3e4   : > { %3237 = vmatpush.msra.mxu2 %v2543_v17 }
 0x3e5   : > { %v2905_v37 = vadd.f32 %v2904_v42, %v2780_v25  ;;  %v2559_v42 = vld [vmem:[#allocation3 + $0x338] sm:$0xff] }
 0x3e6   : > { %3153 = vmatmul.f32.gmra.mxu1 %v2321_v32  ;;  %3079 = vmatmul.f32.gmra.mxu0 %v2302_v31  ;;  %v2575_v25 = vld [vmem:[#allocation3 + $0x3b8] sm:$0xff] }
 0x3e7   : > { %2829 = vmatmul.f32.gmra.mxu2 %v2264_v3  ;;  %2954 = vmatmul.f32.gmra.mxu3 %v2300_v56  ;;  %v5715_v16 = vadd.f32 %v3029_v40, %v2905_v37 }
 0x3e8   : > { %3362 = vmatpush.msra.mxu3 %v2559_v42  ;;  %3487 = vmatpush.msra.mxu0 %v2575_v25 }
 0x3ea   : > { %v2782_v63 = vpop.f32.mrf.mxu2  ;;  %v2907_v9 = vpop.f32.mrf.mxu3 }
 0x3eb   : > { %v2783_v34 = vadd.f32 %v2782_v63, %v2658_v21  ;;  %v5719_v44 = vpop.f32.mrf.mxu1  ;;  %v3035_v45 = vpop.f32.mrf.mxu0  ;;  %v2324_v63 = vld [vmem:[#allocation2 + $0x83] sm:$0xff] }
 0x3ed   : > { %v2908_v29 = vadd.f32 %v2907_v9, %v2783_v34  ;;  %v5736_v34 = vld [vmem:[#allocation2 + $0x10a] sm:$0xff] }
 0x3ee   : > { %3156 = vmatmul.f32.gmra.mxu1 %v2322_v26  ;;  %3082 = vmatmul.f32.gmra.mxu0 %v2303_v38  ;;  %v2558_v26 = vld [vmem:[#allocation3 + $0x330] sm:$0xff] }
 0x3ef   : > { %2832 = vmatmul.f32.gmra.mxu2 %v2265_v24  ;;  %2957 = vmatmul.f32.gmra.mxu3 %v2301_v6  ;;  %v5721_v56 = vadd.f32 %v3032_v27, %v2908_v29  ;;  %v2266_v6 = vld [vmem:[#allocation2 + $0xf1] sm:$0xff]  ;;  %v2664_v27 = vadd.f32 %v5643_v22, %v5618_v59  ;;  %v2574_v29 = vld [vmem:[#allocation3 + $0x3b0] sm:$0xff]  ;;  %v2541_v59 = vld [vmem:[#allocation3 + $0x2a8] sm:$0xff] }
 0x3f0   : > { %3363 = vmatpush.msra.mxu3 %v2558_v26  ;;  %v2573_v24 = vld [vmem:[#allocation3 + $0x3a8] sm:$0xff]  ;;  %3488 = vmatpush.msra.mxu0 %v2574_v29  ;;  %v2570_v26 = vld [vmem:[#allocation3 + $0x390] sm:$0xff] }
 0x3f1   : > { %v2537_v29 = vld [vmem:[#allocation3 + $0x288] sm:$0xff] }
 0x3f2   : > { %v2785_v57 = vpop.f32.mrf.mxu2  ;;  %v2910_v40 = vpop.f32.mrf.mxu3  ;;  %3364 = vmatpush.msra.mxu3 %v2557_v51  ;;  %3489 = vmatpush.msra.mxu0 %v2573_v24 }
 0x3f3   : > { %v2786_v30 = vadd.f32 %v2785_v57, %v2661_v2  ;;  %v5725_v10 = vpop.f32.mrf.mxu1  ;;  %v3038_v58 = vpop.f32.mrf.mxu0  ;;  %v2591_v2 = vld [vmem:[#allocation3 + $0x438] sm:$0xff]  ;;  %v2667_v57 = vadd.f32 %v5643_v22, %v5622_v1 }
 0x3f4   : > { %3612 = vmatpush.msra.mxu1 %v2591_v2  ;;  %v2539_v1 = vld [vmem:[#allocation3 + $0x298] sm:$0xff]  ;;  %v2569_v2 = vld [vmem:[#allocation3 + $0x388] sm:$0xff] }
 0x3f5   : > { %v2911_v19 = vadd.f32 %v2910_v40, %v2786_v30  ;;  %v2540_v40 = vld [vmem:[#allocation3 + $0x2a0] sm:$0xff] }
 0x3f6   : > { %3159 = vmatmul.f32.gmra.mxu1 %v2323_v8  ;;  %3085 = vmatmul.f32.gmra.mxu0 %v5727_v55  ;;  %v2556_v30 = vld [vmem:[#allocation3 + $0x320] sm:$0xff] }
 0x3f7   : > { %2835 = vmatmul.f32.gmra.mxu2 %v2266_v6  ;;  %2960 = vmatmul.f32.gmra.mxu3 %v2302_v31  ;;  %v5730_v49 = vadd.f32 %v3035_v45, %v2911_v19  ;;  %v2542_v31 = vld [vmem:[#allocation3 + $0x2b0] sm:$0xff]  ;;  %v2267_v45 = vld [vmem:[#allocation2 + $0xf9] sm:$0xff] }
 0x3f8   : > { %3238 = vmatpush.msra.mxu2 %v2542_v31  ;;  %v2325_v6 = vld [vmem:[#allocation2 + $0x8b] sm:$0xff]  ;;  %3365 = vmatpush.msra.mxu3 %v2556_v30 }
 0x3fa   : > { %v2788_v37 = vpop.f32.mrf.mxu2  ;;  %v2913_v32 = vpop.f32.mrf.mxu3  ;;  %3239 = vmatpush.msra.mxu2 %v2541_v59  ;;  %v2553_v59 = vld [vmem:[#allocation3 + $0x308] sm:$0xff] }
 0x3fb   : > { %v2789_v43 = vadd.f32 %v2788_v37, %v2664_v27  ;;  %v5734_v3 = vpop.f32.mrf.mxu1  ;;  %v3041_v21 = vpop.f32.mrf.mxu0  ;;  %v2306_v27 = vld [vmem:[#allocation2 + $0x112] sm:$0xff] }
 0x3fc   : > { %3240 = vmatpush.msra.mxu2 %v2540_v40  ;;  %v2555_v37 = vld [vmem:[#allocation3 + $0x318] sm:$0xff] }
 0x3fd   : > { %v2914_v9 = vadd.f32 %v2913_v32, %v2789_v43  ;;  %v2268_v32 = vld [vmem:[#allocation2 + $0x101] sm:$0xff]  ;;  %v2571_v43 = vld [vmem:[#allocation3 + $0x398] sm:$0xff]  ;;  %3366 = vmatpush.msra.mxu3 %v2555_v37 }
 0x3fe   : > { %3162 = vmatmul.f32.gmra.mxu1 %v2324_v63  ;;  %3088 = vmatmul.f32.gmra.mxu0 %v5736_v34  ;;  %v2538_v63 = vld [vmem:[#allocation3 + $0x290] sm:$0xff] }
 0x3ff   : > { %2838 = vmatmul.f32.gmra.mxu2 %v2267_v45  ;;  %2963 = vmatmul.f32.gmra.mxu3 %v2303_v38  ;;  %v5739_v13 = vadd.f32 %v3038_v58, %v2914_v9  ;;  %v2572_v38 = vld [vmem:[#allocation3 + $0x3a0] sm:$0xff]  ;;  %v2554_v9 = vld [vmem:[#allocation3 + $0x310] sm:$0xff]  ;;  %v2670_v45 = vadd.f32 %v5643_v22, %v5626_v52 }
 0x400   : > { %3490 = vmatpush.msra.mxu0 %v2572_v38  ;;  %3241 = vmatpush.msra.mxu2 %v2539_v1  ;;  %v2536_v52 = vld [vmem:[#allocation3 + $0x280] sm:$0xff]  ;;  %v2269_v38 = vld [vmem:[#allocation2 + $0x109] sm:$0xff]  ;;  %v2673_v1 = vadd.f32 %v5643_v22, %v5630_v15  ;;  %v2676_v15 = vadd.f32 %v5643_v22, %v5634_v47 }
 0x401   : > { %3367 = vmatpush.msra.mxu3 %v2554_v9 }
 0x402   : > { %v2791_v8 = vpop.f32.mrf.mxu2  ;;  %v2916_v19 = vpop.f32.mrf.mxu3  ;;  %3491 = vmatpush.msra.mxu0 %v2571_v43  ;;  %3242 = vmatpush.msra.mxu2 %v2538_v63 }
 0x403   : > { %v2792_v17 = vadd.f32 %v2791_v8, %v2667_v57  ;;  %v5743_v42 = vpop.f32.mrf.mxu1  ;;  %v3044_v58 = vpop.f32.mrf.mxu0  ;;  %3368 = vmatpush.msra.mxu3 %v2553_v59  ;;  %v2307_v8 = vld [vmem:[#allocation2 + $0x11a] sm:$0xff] }
 0x404   : > { %3492 = vmatpush.msra.mxu0 %v2570_v26  ;;  %3243 = vmatpush.msra.mxu2 %v2537_v29  ;;  %v2308_v29 = vld [vmem:[#allocation2 + $0x122] sm:$0xff] }
 0x405   : > { %v2917_v25 = vadd.f32 %v2916_v19, %v2792_v17  ;;  %v2552_v19 = vld [vmem:[#allocation3 + $0x300] sm:$0xff] }
 0x406   : > { %3165 = vmatmul.f32.gmra.mxu1 %v2325_v6  ;;  %3091 = vmatmul.f32.gmra.mxu0 %v2306_v27  ;;  %v2568_v17 = vld [vmem:[#allocation3 + $0x380] sm:$0xff]  ;;  %v2590_v6 = vld [vmem:[#allocation3 + $0x430] sm:$0xff] }
 0x407   : > { %2841 = vmatmul.f32.gmra.mxu2 %v2268_v32  ;;  %2966 = vmatmul.f32.gmra.mxu3 %v5727_v55  ;;  %v5746_v31 = vadd.f32 %v3041_v21, %v2917_v25  ;;  %v2326_v21 = vld [vmem:[#allocation2 + $0x93] sm:$0xff] }
 0x408   : > { %3493 = vmatpush.msra.mxu0 %v2569_v2  ;;  %3244 = vmatpush.msra.mxu2 %v2536_v52  ;;  %v2309_v52 = vld [vmem:[#allocation2 + $0x12a] sm:$0xff] }
 0x409   : > { %3369 = vmatpush.msra.mxu3 %v2552_v19  ;;  %3613 = vmatpush.msra.mxu1 %v2590_v6  ;;  %v2271_v19 = vld [vmem:[#allocation2 + $0x119] sm:$0xff] }
 0x40a   : > { %v2794_v51 = vpop.f32.mrf.mxu2  ;;  %v2919_v24 = vpop.f32.mrf.mxu3  ;;  %3494 = vmatpush.msra.mxu0 %v2568_v17 }
 0x40b   : > { %v2795_v57 = vadd.f32 %v2794_v51, %v2670_v45  ;;  %v5750_v55 = vpop.f32.mrf.mxu1  ;;  %v3047_v40 = vpop.f32.mrf.mxu0  ;;  %v2327_v45 = vld [vmem:[#allocation2 + $0x9b] sm:$0xff] }
 0x40d   : > { %v2920_v30 = vadd.f32 %v2919_v24, %v2795_v57 }
 0x40e   : > { %3168 = vmatmul.f32.gmra.mxu1 %v2326_v21  ;;  %3094 = vmatmul.f32.gmra.mxu0 %v2307_v8 }
 0x40f   : > { %2844 = vmatmul.f32.gmra.mxu2 %v2269_v38  ;;  %2969 = vmatmul.f32.gmra.mxu3 %v5736_v34  ;;  %v5753_v25 = vadd.f32 %v3044_v58, %v2920_v30  ;;  %v2270_v34 = vld [vmem:[#allocation2 + $0x111] sm:$0xff]  ;;  %v2328_v30 = vld [vmem:[#allocation2 + $0xa3] sm:$0xff] }
 0x412   : > { %v2797_v37 = vpop.f32.mrf.mxu2  ;;  %v2922_v32 = vpop.f32.mrf.mxu3 }
 0x413   : > { %v2798_v43 = vadd.f32 %v2797_v37, %v2673_v1  ;;  %v5757_v63 = vpop.f32.mrf.mxu1  ;;  %v3050_v9 = vpop.f32.mrf.mxu0 }
 0x415   : > { %v2923_v26 = vadd.f32 %v2922_v32, %v2798_v43  ;;  %v2329_v32 = vld [vmem:[#allocation2 + $0xab] sm:$0xff] }
 0x416   : > { %3171 = vmatmul.f32.gmra.mxu1 %v2327_v45  ;;  %3097 = vmatmul.f32.gmra.mxu0 %v2308_v29  ;;  %v2384_v43 = vld [vmem:[#allocation2 + $0x25] sm:$0xff]  ;;  %v2346_v45 = vld [vmem:[#allocation2 + $0x14] sm:$0xff] }
 0x417   : > { %2847 = vmatmul.f32.gmra.mxu2 %v2270_v34  ;;  %2972 = vmatmul.f32.gmra.mxu3 %v2306_v27  ;;  %v5759_v58 = vadd.f32 %v3047_v40, %v2923_v26  ;;  %v2679_v40 = vadd.f32 %v5643_v22, %v5638_v18  ;;  %v2589_v26 = vld [vmem:[#allocation3 + $0x428] sm:$0xff]  ;;  %v2682_v18 = vadd.f32 %v5643_v22, %v5647_v5 }
 0x418   : > { %v2348_v29 = vld [vmem:[#allocation2 + $0x24] sm:$0xff]  ;;  %3614 = vmatpush.msra.mxu1 %v2589_v26  ;;  %v2685_v5 = vadd.f32 %v5643_v22, %v5653_v33  ;;  %v2386_v26 = vld [vmem:[#allocation2 + $0x35] sm:$0xff]  ;;  %v2688_v33 = vadd.f32 %v5643_v22, %v5659_v20 }
 0x41a   : > { %v2800_v59 = vpop.f32.mrf.mxu2  ;;  %v2925_v51 = vpop.f32.mrf.mxu3 }
 0x41b   : > { %v2801_v24 = vadd.f32 %v2800_v59, %v2676_v15  ;;  %v5763_v2 = vpop.f32.mrf.mxu1  ;;  %v3053_v57 = vpop.f32.mrf.mxu0 }
 0x41d   : > { %v2926_v21 = vadd.f32 %v2925_v51, %v2801_v24 }
 0x41e   : > { %3174 = vmatmul.f32.gmra.mxu1 %v2328_v30  ;;  %3100 = vmatmul.f32.gmra.mxu0 %v2309_v52  ;;  %v2385_v30 = vld [vmem:[#allocation2 + $0x2d] sm:$0xff]  ;;  %v2347_v52 = vld [vmem:[#allocation2 + $0x1c] sm:$0xff] }
 0x41f   : > { %2850 = vmatmul.f32.gmra.mxu2 %v2271_v19  ;;  %2975 = vmatmul.f32.gmra.mxu3 %v2307_v8  ;;  %v5765_v27 = vadd.f32 %v3050_v9, %v2926_v21  ;;  %v2330_v21 = vld [vmem:[#allocation2 + $0xb3] sm:$0xff] }
 0x420   : > { %v2349_v19 = vld [vmem:[#allocation2 + $0x2c] sm:$0xff] }
 0x422   : > { %v2803_v47 = vpop.f32.mrf.mxu2  ;;  %v2928_v38 = vpop.f32.mrf.mxu3 }
 0x423   : > { %v2804_v17 = vadd.f32 %v2803_v47, %v2679_v40  ;;  %v5769_v6 = vpop.f32.mrf.mxu1  ;;  %v3056_v1 = vpop.f32.mrf.mxu0 }
 0x425   : > { %v2929_v37 = vadd.f32 %v2928_v38, %v2804_v17 }
 0x426   : > { %3177 = vmatmul.f32.gmra.mxu1 %v2329_v32  ;;  %3495 = vmatmul.f32.vlgmr.msra.gmra.mxu0 %v2384_v43  ;;  %v2331_v43 = vld [vmem:[#allocation2 + $0xbb] sm:$0xff] }
 0x427   : > { %3245 = vmatmul.f32.vlgmr.msra.gmra.mxu2 %v2346_v45  ;;  %3370 = vmatmul.f32.vlgmr.msra.gmra.mxu3 %v2348_v29  ;;  %v5771_v8 = vadd.f32 %v3053_v57, %v2929_v37  ;;  %v2588_v45 = vld [vmem:[#allocation3 + $0x420] sm:$0xff] }
 0x428   : > { %3615 = vmatpush.msra.mxu1 %v2588_v45  ;;  %v2333_v45 = vld [vmem:[#allocation2 + $0xcb] sm:$0xff] }
 0x42a   : > { %v2806_v9 = vpop.f32.mrf.mxu2  ;;  %v2931_v34 = vpop.f32.mrf.mxu3 }
 0x42b   : > { %v2807_v15 = vadd.f32 %v2806_v9, %v2682_v18  ;;  %v5775_v59 = vpop.f32.mrf.mxu1  ;;  %v3059_v51 = vpop.f32.mrf.mxu0  ;;  %v2350_v18 = vld [vmem:[#allocation2 + $0x34] sm:$0xff] }
 0x42d   : > { %v2932_v24 = vadd.f32 %v2931_v34, %v2807_v15 }
 0x42e   : > { %3180 = vmatmul.f32.gmra.mxu1 %v2330_v21  ;;  %3498 = vmatmul.f32.gmra.mxu0 %v2385_v30 }
 0x42f   : > { %3248 = vmatmul.f32.gmra.mxu2 %v2347_v52  ;;  %3373 = vmatmul.f32.gmra.mxu3 %v2349_v19  ;;  %v5777_v57 = vadd.f32 %v3056_v1, %v2932_v24  ;;  %v2332_v52 = vld [vmem:[#allocation2 + $0xc3] sm:$0xff] }
 0x432   : > { %v2809_v40 = vpop.f32.mrf.mxu2  ;;  %v2934_v47 = vpop.f32.mrf.mxu3 }
 0x433   : > { %v2810_v38 = vadd.f32 %v2809_v40, %v2685_v5  ;;  %v5781_v17 = vpop.f32.mrf.mxu1  ;;  %v3062_v37 = vpop.f32.mrf.mxu0  ;;  %v2387_v5 = vld [vmem:[#allocation2 + $0x3d] sm:$0xff] }
 0x434   : > { %v2351_v40 = vld [vmem:[#allocation2 + $0x3c] sm:$0xff] }
 0x435   : > { %v2935_v32 = vadd.f32 %v2934_v47, %v2810_v38 }
 0x436   : > { %3183 = vmatmul.f32.gmra.mxu1 %v2331_v43  ;;  %3501 = vmatmul.f32.gmra.mxu0 %v2386_v26 }
 0x437   : > { %3251 = vmatmul.f32.gmra.mxu2 %v2348_v29  ;;  %3376 = vmatmul.f32.gmra.mxu3 %v2350_v18  ;;  %v5783_v1 = vadd.f32 %v3059_v51, %v2935_v32  ;;  %v2691_v51 = vadd.f32 %v5643_v22, %v5665_v54  ;;  %v2694_v54 = vadd.f32 %v5643_v22, %v5671_v11 }
 0x43a   : > { %v2812_v9 = vpop.f32.mrf.mxu2  ;;  %v2937_v34 = vpop.f32.mrf.mxu3 }
 0x43b   : > { %v2813_v15 = vadd.f32 %v2812_v9, %v2688_v33  ;;  %v5787_v24 = vpop.f32.mrf.mxu1  ;;  %v3065_v21 = vpop.f32.mrf.mxu0  ;;  %v2388_v33 = vld [vmem:[#allocation2 + $0x45] sm:$0xff] }
 0x43c   : > { %v2352_v9 = vld [vmem:[#allocation2 + $0x44] sm:$0xff] }
 0x43d   : > { %v2938_v30 = vadd.f32 %v2937_v34, %v2813_v15  ;;  %v2587_v34 = vld [vmem:[#allocation3 + $0x418] sm:$0xff] }
 0x43e   : > { %3186 = vmatmul.f32.gmra.mxu1 %v2332_v52  ;;  %3504 = vmatmul.f32.gmra.mxu0 %v2387_v5 }
 0x43f   : > { %3254 = vmatmul.f32.gmra.mxu2 %v2349_v19  ;;  %3379 = vmatmul.f32.gmra.mxu3 %v2351_v40  ;;  %v5789_v29 = vadd.f32 %v3062_v37, %v2938_v30 }
 0x440   : > { %3616 = vmatpush.msra.mxu1 %v2587_v34 }
 0x442   : > { %v2815_v20 = vpop.f32.mrf.mxu2  ;;  %v2940_v47 = vpop.f32.mrf.mxu3 }
 0x443   : > { %v2816_v38 = vadd.f32 %v2815_v20, %v2691_v51  ;;  %v5793_v32 = vpop.f32.mrf.mxu1  ;;  %v3068_v43 = vpop.f32.mrf.mxu0  ;;  %v2334_v20 = vld [vmem:[#allocation2 + $0xd3] sm:$0xff] }
 0x445   : > { %v2941_v26 = vadd.f32 %v2940_v47, %v2816_v38  ;;  %v2389_v47 = vld [vmem:[#allocation2 + $0x4d] sm:$0xff] }
 0x446   : > { %3189 = vmatmul.f32.gmra.mxu1 %v2333_v45  ;;  %3507 = vmatmul.f32.gmra.mxu0 %v2388_v33  ;;  %v2353_v38 = vld [vmem:[#allocation2 + $0x4c] sm:$0xff] }
 0x447   : > { %3257 = vmatmul.f32.gmra.mxu2 %v2350_v18  ;;  %3382 = vmatmul.f32.gmra.mxu3 %v2352_v9  ;;  %v5795_v19 = vadd.f32 %v3065_v21, %v2941_v26  ;;  %v2697_v21 = vadd.f32 %v5643_v22, %v5677_v60  ;;  %v5812_v22 = vld [vmem:[%s6214_s5] ss:$0 sm:$0xff] }
 0x448   : > { %v2700_v60 = vadd.f32 %v5812_v22, %v5683_v14 }
 0x44a   : > { %v2818_v37 = vpop.f32.mrf.mxu2  ;;  %v2943_v15 = vpop.f32.mrf.mxu3 }
 0x44b   : > { %v2819_v30 = vadd.f32 %v2818_v37, %v2694_v54  ;;  %v5799_v52 = vpop.f32.mrf.mxu1  ;;  %v3071_v5 = vpop.f32.mrf.mxu0  ;;  %v2335_v37 = vld [vmem:[#allocation2 + $0xdb] sm:$0xff] }
 0x44d   : > { %v2944_v51 = vadd.f32 %v2943_v15, %v2819_v30  ;;  %v2390_v15 = vld [vmem:[#allocation2 + $0x55] sm:$0xff] }
 0x44e   : > { %3192 = vmatmul.f32.gmra.mxu1 %v2334_v20  ;;  %3510 = vmatmul.f32.gmra.mxu0 %v2389_v47  ;;  %v2354_v30 = vld [vmem:[#allocation2 + $0x54] sm:$0xff] }
 0x44f   : > { %3260 = vmatmul.f32.gmra.mxu2 %v2351_v40  ;;  %3385 = vmatmul.f32.gmra.mxu3 %v2353_v38  ;;  %v5801_v18 = vadd.f32 %v3068_v43, %v2944_v51  ;;  %v2586_v40 = vld [vmem:[#allocation3 + $0x410] sm:$0xff] }
 0x450   : > { %3617 = vmatpush.msra.mxu1 %v2586_v40 }
 0x451   : > { %6240 = vst [vmem:[#allocation11_spill] sm:$0xff] %v5801_v18  ;;  %v2585_v18 = vld [vmem:[#allocation3 + $0x408] sm:$0xff] }
 0x452   : > { %v2821_v11 = vpop.f32.mrf.mxu2  ;;  %v2946_v26 = vpop.f32.mrf.mxu3  ;;  %3618 = vmatpush.msra.mxu1 %v2585_v18  ;;  %v2712_v18 = vadd.f32 %v5812_v22, %v5707_v23  ;;  %v2715_v23 = vadd.f32 %v5812_v22, %v5713_v61 }
 0x453   : > { %v2822_v45 = vadd.f32 %v2821_v11, %v2697_v21  ;;  %v5805_v33 = vpop.f32.mrf.mxu1  ;;  %v3074_v34 = vpop.f32.mrf.mxu0 }
 0x455   : > { %v2947_v54 = vadd.f32 %v2946_v26, %v2822_v45  ;;  %v2336_v26 = vld [vmem:[#allocation2 + $0xe3] sm:$0xff] }
 0x456   : > { %3195 = vmatmul.f32.gmra.mxu1 %v2335_v37  ;;  %3513 = vmatmul.f32.gmra.mxu0 %v2390_v15  ;;  %v2391_v45 = vld [vmem:[#allocation2 + $0x5d] sm:$0xff]  ;;  %v2703_v37 = vadd.f32 %v5812_v22, %v5689_v62 }
 0x457   : > { %3263 = vmatmul.f32.gmra.mxu2 %v2352_v9  ;;  %3388 = vmatmul.f32.gmra.mxu3 %v2354_v30  ;;  %v5807_v43 = vadd.f32 %v3071_v5, %v2947_v54  ;;  %v2355_v5 = vld [vmem:[#allocation2 + $0x5c] sm:$0xff] }
 0x459   : > { %6241 = vst [vmem:[#allocation12_spill] sm:$0xff] %v5807_v43 }
 0x45a   : > { %v2824_v51 = vpop.f32.mrf.mxu2  ;;  %v2949_v20 = vpop.f32.mrf.mxu3 }
 0x45b   : > { %v2825_v47 = vadd.f32 %v2824_v51, %v2700_v60  ;;  %v5816_v21 = vpop.f32.mrf.mxu1  ;;  %v3077_v11 = vpop.f32.mrf.mxu0 }
 0x45d   : > { %v2950_v9 = vadd.f32 %v2949_v20, %v2825_v47  ;;  %v2337_v20 = vld [vmem:[#allocation2 + $0xeb] sm:$0xff] }
 0x45e   : > { %3198 = vmatmul.f32.gmra.mxu1 %v2336_v26  ;;  %3516 = vmatmul.f32.gmra.mxu0 %v2391_v45  ;;  %v2392_v47 = vld [vmem:[#allocation2 + $0x65] sm:$0xff] }
 0x45f   : > { %3266 = vmatmul.f32.gmra.mxu2 %v2353_v38  ;;  %3391 = vmatmul.f32.gmra.mxu3 %v2355_v5  ;;  %v5818_v54 = vadd.f32 %v3074_v34, %v2950_v9  ;;  %v2356_v26 = vld [vmem:[#allocation2 + $0x64] sm:$0xff]  ;;  %v2706_v34 = vadd.f32 %v5812_v22, %v5695_v41  ;;  %v2709_v41 = vadd.f32 %v5812_v22, %v5701_v12 }
 0x461   : > { %6242 = vst [vmem:[#allocation13_spill] sm:$0xff] %v5818_v54 }
 0x462   : > { %v2827_v14 = vpop.f32.mrf.mxu2  ;;  %v2952_v15 = vpop.f32.mrf.mxu3 }
 0x463   : > { %v2828_v40 = vadd.f32 %v2827_v14, %v2703_v37  ;;  %v5822_v60 = vpop.f32.mrf.mxu1  ;;  %v3080_v51 = vpop.f32.mrf.mxu0 }
 0x465   : > { %v2953_v43 = vadd.f32 %v2952_v15, %v2828_v40  ;;  %v2338_v15 = vld [vmem:[#allocation2 + $0xf3] sm:$0xff] }
 0x466   : > { %3201 = vmatmul.f32.gmra.mxu1 %v2337_v20  ;;  %3519 = vmatmul.f32.gmra.mxu0 %v2392_v47  ;;  %v2393_v40 = vld [vmem:[#allocation2 + $0x6d] sm:$0xff] }
 0x467   : > { %3269 = vmatmul.f32.gmra.mxu2 %v2354_v30  ;;  %3394 = vmatmul.f32.gmra.mxu3 %v2356_v26  ;;  %v5824_v38 = vadd.f32 %v3077_v11, %v2953_v43  ;;  %v2357_v20 = vld [vmem:[#allocation2 + $0x6c] sm:$0xff] }
 0x469   : > { %6243 = vst [vmem:[#allocation14_spill] sm:$0xff] %v5824_v38  ;;  %v2394_v38 = vld [vmem:[#allocation2 + $0x75] sm:$0xff] }
 0x46a   : > { %v2830_v62 = vpop.f32.mrf.mxu2  ;;  %v2955_v9 = vpop.f32.mrf.mxu3 }
 0x46b   : > { %v2831_v45 = vadd.f32 %v2830_v62, %v2706_v34  ;;  %v5828_v37 = vpop.f32.mrf.mxu1  ;;  %v3083_v14 = vpop.f32.mrf.mxu0 }
 0x46d   : > { %v2956_v54 = vadd.f32 %v2955_v9, %v2831_v45  ;;  %v2339_v45 = vld [vmem:[#allocation2 + $0xfb] sm:$0xff] }
 0x46e   : > { %3204 = vmatmul.f32.gmra.mxu1 %v2338_v15  ;;  %3522 = vmatmul.f32.gmra.mxu0 %v2393_v40  ;;  %v2358_v15 = vld [vmem:[#allocation2 + $0x74] sm:$0xff] }
 0x46f   : > { %3272 = vmatmul.f32.gmra.mxu2 %v2355_v5  ;;  %3397 = vmatmul.f32.gmra.mxu3 %v2357_v20  ;;  %v5830_v30 = vadd.f32 %v3080_v51, %v2956_v54 }
 0x471   : > { %6244 = vst [vmem:[#allocation15_spill] sm:$0xff] %v5830_v30  ;;  %v2584_v30 = vld [vmem:[#allocation3 + $0x400] sm:$0xff] }
 0x472   : > { %v2833_v43 = vpop.f32.mrf.mxu2  ;;  %v2958_v11 = vpop.f32.mrf.mxu3  ;;  %3619 = vmatpush.msra.mxu1 %v2584_v30  ;;  %v2718_v30 = vadd.f32 %v5812_v22, %v5719_v44 }
 0x473   : > { %v2834_v47 = vadd.f32 %v2833_v43, %v2709_v41  ;;  %v5834_v34 = vpop.f32.mrf.mxu1  ;;  %v3086_v62 = vpop.f32.mrf.mxu0 }
 0x475   : > { %v2959_v9 = vadd.f32 %v2958_v11, %v2834_v47  ;;  %v2340_v11 = vld [vmem:[#allocation2 + $0x103] sm:$0xff] }
 0x476   : > { %3207 = vmatmul.f32.gmra.mxu1 %v2339_v45  ;;  %3525 = vmatmul.f32.gmra.mxu0 %v2394_v38  ;;  %v2395_v47 = vld [vmem:[#allocation2 + $0x7d] sm:$0xff] }
 0x477   : > { %3275 = vmatmul.f32.gmra.mxu2 %v2356_v26  ;;  %3400 = vmatmul.f32.gmra.mxu3 %v2358_v15  ;;  %v5836_v5 = vadd.f32 %v3083_v14, %v2959_v9  ;;  %v2359_v45 = vld [vmem:[#allocation2 + $0x7c] sm:$0xff] }
 0x479   : > { %6245 = vst [vmem:[#allocation16_spill] sm:$0xff] %v5836_v5  ;;  %v2396_v5 = vld [vmem:[#allocation2 + $0x85] sm:$0xff] }
 0x47a   : > { %v2836_v12 = vpop.f32.mrf.mxu2  ;;  %v2961_v54 = vpop.f32.mrf.mxu3 }
 0x47b   : > { %v2837_v51 = vadd.f32 %v2836_v12, %v2712_v18  ;;  %v5840_v40 = vpop.f32.mrf.mxu1  ;;  %v3089_v41 = vpop.f32.mrf.mxu0 }
 0x47d   : > { %v2962_v43 = vadd.f32 %v2961_v54, %v2837_v51  ;;  %v2341_v51 = vld [vmem:[#allocation2 + $0x10b] sm:$0xff] }
 0x47e   : > { %3210 = vmatmul.f32.gmra.mxu1 %v2340_v11  ;;  %3528 = vmatmul.f32.gmra.mxu0 %v2395_v47  ;;  %v2360_v11 = vld [vmem:[#allocation2 + $0x84] sm:$0xff] }
 0x47f   : > { %3278 = vmatmul.f32.gmra.mxu2 %v2357_v20  ;;  %3403 = vmatmul.f32.gmra.mxu3 %v2359_v45  ;;  %v5842_v26 = vadd.f32 %v3086_v62, %v2962_v43 }
 0x482   : > { %v2839_v38 = vpop.f32.mrf.mxu2  ;;  %v2964_v14 = vpop.f32.mrf.mxu3 }
 0x483   : > { %v2840_v9 = vadd.f32 %v2839_v38, %v2715_v23  ;;  %v5846_v18 = vpop.f32.mrf.mxu1  ;;  %v3092_v12 = vpop.f32.mrf.mxu0 }
 0x485   : > { %v2965_v54 = vadd.f32 %v2964_v14, %v2840_v9  ;;  %v2342_v14 = vld [vmem:[#allocation2 + $0x113] sm:$0xff] }
 0x486   : > { %3213 = vmatmul.f32.gmra.mxu1 %v2341_v51  ;;  %3531 = vmatmul.f32.gmra.mxu0 %v2396_v5  ;;  %v2397_v9 = vld [vmem:[#allocation2 + $0x8d] sm:$0xff]  ;;  %v2721_v5 = vadd.f32 %v5812_v22, %v5725_v10 }
 0x487   : > { %3281 = vmatmul.f32.gmra.mxu2 %v2358_v15  ;;  %3406 = vmatmul.f32.gmra.mxu3 %v2360_v11  ;;  %v5848_v20 = vadd.f32 %v3089_v41, %v2965_v54  ;;  %v2361_v51 = vld [vmem:[#allocation2 + $0x8c] sm:$0xff] }
 0x489   : > { %6246 = vst [vmem:[#allocation17_spill] sm:$0xff] %v5848_v20 }
 0x48a   : > { %v2842_v61 = vpop.f32.mrf.mxu2  ;;  %v2967_v62 = vpop.f32.mrf.mxu3 }
 0x48b   : > { %v2843_v43 = vadd.f32 %v2842_v61, %v2718_v30  ;;  %v5852_v47 = vpop.f32.mrf.mxu1  ;;  %v3095_v23 = vpop.f32.mrf.mxu0 }
 0x48d   : > { %v2968_v38 = vadd.f32 %v2967_v62, %v2843_v43  ;;  %v2343_v62 = vld [vmem:[#allocation2 + $0x11b] sm:$0xff] }
 0x48e   : > { %3216 = vmatmul.f32.gmra.mxu1 %v2342_v14  ;;  %3534 = vmatmul.f32.gmra.mxu0 %v2397_v9  ;;  %v2398_v43 = vld [vmem:[#allocation2 + $0x95] sm:$0xff] }
 0x48f   : > { %3284 = vmatmul.f32.gmra.mxu2 %v2359_v45  ;;  %3409 = vmatmul.f32.gmra.mxu3 %v2361_v51  ;;  %v5854_v15 = vadd.f32 %v3092_v12, %v2968_v38  ;;  %v2362_v14 = vld [vmem:[#allocation2 + $0x94] sm:$0xff]  ;;  %v2724_v12 = vadd.f32 %v5812_v22, %v5734_v3 }
 0x491   : > { %6247 = vst [vmem:[#allocation9_spill] sm:$0xff] %v5854_v15 }
 0x492   : > { %v2845_v44 = vpop.f32.mrf.mxu2  ;;  %v2970_v41 = vpop.f32.mrf.mxu3 }
 0x493   : > { %v2846_v54 = vadd.f32 %v2845_v44, %v2721_v5  ;;  %v5858_v30 = vpop.f32.mrf.mxu1  ;;  %v3098_v61 = vpop.f32.mrf.mxu0 }
 0x495   : > { %v2971_v20 = vadd.f32 %v2970_v41, %v2846_v54  ;;  %v2344_v41 = vld [vmem:[#allocation2 + $0x123] sm:$0xff] }
 0x496   : > { %3219 = vmatmul.f32.gmra.mxu1 %v2343_v62  ;;  %3537 = vmatmul.f32.gmra.mxu0 %v2398_v43  ;;  %v2399_v54 = vld [vmem:[#allocation2 + $0x9d] sm:$0xff] }
 0x497   : > { %3287 = vmatmul.f32.gmra.mxu2 %v2360_v11  ;;  %3412 = vmatmul.f32.gmra.mxu3 %v2362_v14  ;;  %v5860_v45 = vadd.f32 %v3095_v23, %v2971_v20  ;;  %v2363_v62 = vld [vmem:[#allocation2 + $0x9c] sm:$0xff]  ;;  %v2727_v20 = vadd.f32 %v5812_v22, %v5743_v42 }
 0x499   : > { %6248 = vst [vmem:[#allocation10_spill] sm:$0xff] %v5860_v45 }
 0x49a   : > { %v2848_v10 = vpop.f32.mrf.mxu2  ;;  %v2973_v38 = vpop.f32.mrf.mxu3 }
 0x49b   : > { %v2849_v9 = vadd.f32 %v2848_v10, %v2724_v12  ;;  %v5864_v5 = vpop.f32.mrf.mxu1  ;;  %v3101_v44 = vpop.f32.mrf.mxu0 }
 0x49d   : > { %v2974_v15 = vadd.f32 %v2973_v38, %v2849_v9  ;;  %v2345_v38 = vld [vmem:[#allocation2 + $0x12b] sm:$0xff] }
 0x49e   : > { %3222 = vmatmul.f32.gmra.mxu1 %v2344_v41  ;;  %3540 = vmatmul.f32.gmra.mxu0 %v2399_v54  ;;  %v2400_v9 = vld [vmem:[#allocation2 + $0xa5] sm:$0xff] }
 0x49f   : > { %3290 = vmatmul.f32.gmra.mxu2 %v2361_v51  ;;  %3415 = vmatmul.f32.gmra.mxu3 %v2363_v62  ;;  %v5866_v11 = vadd.f32 %v3098_v61, %v2974_v15  ;;  %v2364_v41 = vld [vmem:[#allocation2 + $0xa4] sm:$0xff]  ;;  %v3122_v15 = vadd.f32 %v5750_v55, %v5649_v46 }
 0x4a2   : > { %v2851_v3 = vpop.f32.mrf.mxu2  ;;  %v2976_v23 = vpop.f32.mrf.mxu3 }
 0x4a3   : > { %v2852_v43 = vadd.f32 %v2851_v3, %v2727_v20  ;;  %v5870_v12 = vpop.f32.mrf.mxu1  ;;  %v3496_v10 = vpop.f32.mrf.mxu0 }
 0x4a5   : > { %v2977_v45 = vadd.f32 %v2976_v23, %v2852_v43  ;;  %v2420_v23 = vld [vmem:[#allocation2 + $0x26] sm:$0xff] }
 0x4a6   : > { %3225 = vmatmul.f32.gmra.mxu1 %v2345_v38  ;;  %3543 = vmatmul.f32.gmra.mxu0 %v2400_v9  ;;  %v2401_v43 = vld [vmem:[#allocation2 + $0xad] sm:$0xff] }
 0x4a7   : > { %3293 = vmatmul.f32.gmra.mxu2 %v2362_v14  ;;  %3418 = vmatmul.f32.gmra.mxu3 %v2364_v41  ;;  %v5872_v51 = vadd.f32 %v3101_v44, %v2977_v45  ;;  %v2365_v38 = vld [vmem:[#allocation2 + $0xac] sm:$0xff]  ;;  %v3125_v45 = vadd.f32 %v5757_v63, %v5655_v35 }
 0x4a9   : > { %6249 = vst [vmem:[#allocation18_spill] sm:$0xff] %v5872_v51  ;;  %v2383_v51 = vld [vmem:[#allocation2 + $0x13c] sm:$0xff] }
 0x4aa   : > { %v3246_v42 = vpop.f32.mrf.mxu2  ;;  %v3371_v22 = vpop.f32.mrf.mxu3 }
 0x4ab   : > { %v3247_v61 = vadd.f32 %v3246_v42, %v3122_v15  ;;  %v5876_v54 = vpop.f32.mrf.mxu1  ;;  %v3499_v20 = vpop.f32.mrf.mxu0 }
 0x4ad   : > { %v3372_v3 = vadd.f32 %v3371_v22, %v3247_v61  ;;  %v2421_v22 = vld [vmem:[#allocation2 + $0x2e] sm:$0xff] }
 0x4ae   : > { %3620 = vmatmul.f32.vlgmr.msra.gmra.mxu1 %v2420_v23  ;;  %3546 = vmatmul.f32.gmra.mxu0 %v2401_v43  ;;  %v2402_v61 = vld [vmem:[#allocation2 + $0xb5] sm:$0xff] }
 0x4af   : > { %3296 = vmatmul.f32.gmra.mxu2 %v2363_v62  ;;  %3421 = vmatmul.f32.gmra.mxu3 %v2365_v38  ;;  %v5878_v14 = vadd.f32 %v3496_v10, %v3372_v3  ;;  %v2366_v23 = vld [vmem:[#allocation2 + $0xb4] sm:$0xff]  ;;  %v3128_v10 = vadd.f32 %v5763_v2, %v5661_v0 }
 0x4b2   : > { %v3249_v46 = vpop.f32.mrf.mxu2  ;;  %v3374_v55 = vpop.f32.mrf.mxu3 }
 0x4b3   : > { %v3250_v44 = vadd.f32 %v3249_v46, %v3125_v45  ;;  %v5882_v9 = vpop.f32.mrf.mxu1  ;;  %v3502_v15 = vpop.f32.mrf.mxu0 }
 0x4b5   : > { %v3375_v42 = vadd.f32 %v3374_v55, %v3250_v44  ;;  %v2422_v55 = vld [vmem:[#allocation2 + $0x36] sm:$0xff] }
 0x4b6   : > { %3623 = vmatmul.f32.gmra.mxu1 %v2421_v22  ;;  %3549 = vmatmul.f32.gmra.mxu0 %v2402_v61  ;;  %v2403_v44 = vld [vmem:[#allocation2 + $0xbd] sm:$0xff] }
 0x4b7   : > { %3299 = vmatmul.f32.gmra.mxu2 %v2364_v41  ;;  %3424 = vmatmul.f32.gmra.mxu3 %v2366_v23  ;;  %v5884_v62 = vadd.f32 %v3499_v20, %v3375_v42  ;;  %v2367_v22 = vld [vmem:[#allocation2 + $0xbc] sm:$0xff]  ;;  %v3131_v20 = vadd.f32 %v5769_v6, %v5667_v50 }
 0x4ba   : > { %v3252_v35 = vpop.f32.mrf.mxu2  ;;  %v3377_v63 = vpop.f32.mrf.mxu3 }
 0x4bb   : > { %v3253_v3 = vadd.f32 %v3252_v35, %v3128_v10  ;;  %v5888_v43 = vpop.f32.mrf.mxu1  ;;  %v3505_v45 = vpop.f32.mrf.mxu0 }
 0x4bd   : > { %v3378_v46 = vadd.f32 %v3377_v63, %v3253_v3  ;;  %v2423_v63 = vld [vmem:[#allocation2 + $0x3e] sm:$0xff] }
 0x4be   : > { %3626 = vmatmul.f32.gmra.mxu1 %v2422_v55  ;;  %3552 = vmatmul.f32.gmra.mxu0 %v2403_v44  ;;  %v2404_v3 = vld [vmem:[#allocation2 + $0xc5] sm:$0xff] }
 0x4bf   : > { %3302 = vmatmul.f32.gmra.mxu2 %v2365_v38  ;;  %3427 = vmatmul.f32.gmra.mxu3 %v2367_v22  ;;  %v5890_v41 = vadd.f32 %v3502_v15, %v3378_v46  ;;  %v2368_v55 = vld [vmem:[#allocation2 + $0xc4] sm:$0xff]  ;;  %v3134_v15 = vadd.f32 %v5775_v59, %v5673_v36 }
 0x4c2   : > { %v3255_v0 = vpop.f32.mrf.mxu2  ;;  %v3380_v2 = vpop.f32.mrf.mxu3 }
 0x4c3   : > { %v3256_v42 = vadd.f32 %v3255_v0, %v3131_v20  ;;  %v5894_v61 = vpop.f32.mrf.mxu1  ;;  %v3508_v10 = vpop.f32.mrf.mxu0 }
 0x4c5   : > { %v3381_v35 = vadd.f32 %v3380_v2, %v3256_v42  ;;  %v2424_v2 = vld [vmem:[#allocation2 + $0x46] sm:$0xff] }
 0x4c6   : > { %3629 = vmatmul.f32.gmra.mxu1 %v2423_v63  ;;  %3555 = vmatmul.f32.gmra.mxu0 %v2404_v3  ;;  %v2405_v42 = vld [vmem:[#allocation2 + $0xcd] sm:$0xff] }
 0x4c7   : > { %3305 = vmatmul.f32.gmra.mxu2 %v2366_v23  ;;  %3430 = vmatmul.f32.gmra.mxu3 %v2368_v55  ;;  %v5896_v38 = vadd.f32 %v3505_v45, %v3381_v35  ;;  %v2369_v63 = vld [vmem:[#allocation2 + $0xcc] sm:$0xff]  ;;  %v3137_v45 = vadd.f32 %v5781_v17, %v5679_v28 }
 0x4ca   : > { %v3258_v50 = vpop.f32.mrf.mxu2  ;;  %v3383_v6 = vpop.f32.mrf.mxu3 }
 0x4cb   : > { %v3259_v46 = vadd.f32 %v3258_v50, %v3134_v15  ;;  %v5900_v44 = vpop.f32.mrf.mxu1  ;;  %v3511_v20 = vpop.f32.mrf.mxu0 }
 0x4cd   : > { %v3384_v0 = vadd.f32 %v3383_v6, %v3259_v46  ;;  %v2425_v6 = vld [vmem:[#allocation2 + $0x4e] sm:$0xff] }
 0x4ce   : > { %3632 = vmatmul.f32.gmra.mxu1 %v2424_v2  ;;  %3558 = vmatmul.f32.gmra.mxu0 %v2405_v42  ;;  %v2406_v46 = vld [vmem:[#allocation2 + $0xd5] sm:$0xff] }
 0x4cf   : > { %3308 = vmatmul.f32.gmra.mxu2 %v2367_v22  ;;  %3433 = vmatmul.f32.gmra.mxu3 %v2369_v63  ;;  %v5902_v23 = vadd.f32 %v3508_v10, %v3384_v0  ;;  %v2370_v2 = vld [vmem:[#allocation2 + $0xd4] sm:$0xff]  ;;  %v3140_v10 = vadd.f32 %v5787_v24, %v5685_v53 }
 0x4d2   : > { %v3261_v36 = vpop.f32.mrf.mxu2  ;;  %v3386_v59 = vpop.f32.mrf.mxu3 }
 0x4d3   : > { %v3262_v35 = vadd.f32 %v3261_v36, %v3137_v45  ;;  %v5906_v3 = vpop.f32.mrf.mxu1  ;;  %v3514_v15 = vpop.f32.mrf.mxu0 }
 0x4d5   : > { %v3387_v50 = vadd.f32 %v3386_v59, %v3262_v35  ;;  %v2426_v59 = vld [vmem:[#allocation2 + $0x56] sm:$0xff] }
 0x4d6   : > { %3635 = vmatmul.f32.gmra.mxu1 %v2425_v6  ;;  %3561 = vmatmul.f32.gmra.mxu0 %v2406_v46  ;;  %v2407_v35 = vld [vmem:[#allocation2 + $0xdd] sm:$0xff] }
 0x4d7   : > { %3311 = vmatmul.f32.gmra.mxu2 %v2368_v55  ;;  %3436 = vmatmul.f32.gmra.mxu3 %v2370_v2  ;;  %v5908_v22 = vadd.f32 %v3511_v20, %v3387_v50  ;;  %v2371_v6 = vld [vmem:[#allocation2 + $0xdc] sm:$0xff]  ;;  %v3143_v20 = vadd.f32 %v5793_v32, %v5691_v39 }
 0x4da   : > { %v3264_v28 = vpop.f32.mrf.mxu2  ;;  %v3389_v17 = vpop.f32.mrf.mxu3 }
 0x4db   : > { %v3265_v0 = vadd.f32 %v3264_v28, %v3140_v10  ;;  %v5912_v42 = vpop.f32.mrf.mxu1  ;;  %v3517_v36 = vpop.f32.mrf.mxu0  ;;  %v2427_v28 = vld [vmem:[#allocation2 + $0x5e] sm:$0xff] }
 0x4dd   : > { %v3390_v45 = vadd.f32 %v3389_v17, %v3265_v0  ;;  %v2408_v17 = vld [vmem:[#allocation2 + $0xe5] sm:$0xff] }
 0x4de   : > { %3638 = vmatmul.f32.gmra.mxu1 %v2426_v59  ;;  %3564 = vmatmul.f32.gmra.mxu0 %v2407_v35  ;;  %v2372_v0 = vld [vmem:[#allocation2 + $0xe4] sm:$0xff] }
 0x4df   : > { %3314 = vmatmul.f32.gmra.mxu2 %v2369_v63  ;;  %3439 = vmatmul.f32.gmra.mxu3 %v2371_v6  ;;  %v5914_v55 = vadd.f32 %v3514_v15, %v3390_v45  ;;  %v3146_v15 = vadd.f32 %v5799_v52, %v5697_v7 }
 0x4e2   : > { %v3267_v53 = vpop.f32.mrf.mxu2  ;;  %v3392_v24 = vpop.f32.mrf.mxu3 }
 0x4e3   : > { %v3268_v50 = vadd.f32 %v3267_v53, %v3143_v20  ;;  %v5918_v46 = vpop.f32.mrf.mxu1  ;;  %v3520_v59 = vpop.f32.mrf.mxu0  ;;  %v2428_v53 = vld [vmem:[#allocation2 + $0x66] sm:$0xff] }
 0x4e5   : > { %v3393_v10 = vadd.f32 %v3392_v24, %v3268_v50  ;;  %v2409_v24 = vld [vmem:[#allocation2 + $0xed] sm:$0xff] }
 0x4e6   : > { %3641 = vmatmul.f32.gmra.mxu1 %v2427_v28  ;;  %3567 = vmatmul.f32.gmra.mxu0 %v2408_v17  ;;  %v2373_v50 = vld [vmem:[#allocation2 + $0xec] sm:$0xff] }
 0x4e7   : > { %3317 = vmatmul.f32.gmra.mxu2 %v2370_v2  ;;  %3442 = vmatmul.f32.gmra.mxu3 %v2372_v0  ;;  %v5920_v63 = vadd.f32 %v3517_v36, %v3393_v10  ;;  %v3149_v36 = vadd.f32 %v5805_v33, %v5703_v4 }
 0x4ea   : > { %v3270_v39 = vpop.f32.mrf.mxu2  ;;  %v3395_v32 = vpop.f32.mrf.mxu3 }
 0x4eb   : > { %v3271_v45 = vadd.f32 %v3270_v39, %v3146_v15  ;;  %v5924_v35 = vpop.f32.mrf.mxu1  ;;  %v3523_v10 = vpop.f32.mrf.mxu0  ;;  %v2429_v39 = vld [vmem:[#allocation2 + $0x6e] sm:$0xff] }
 0x4ed   : > { %v3396_v20 = vadd.f32 %v3395_v32, %v3271_v45  ;;  %v2410_v32 = vld [vmem:[#allocation2 + $0xf5] sm:$0xff] }
 0x4ee   : > { %3644 = vmatmul.f32.gmra.mxu1 %v2428_v53  ;;  %3570 = vmatmul.f32.gmra.mxu0 %v2409_v24  ;;  %v2374_v45 = vld [vmem:[#allocation2 + $0xf4] sm:$0xff] }
 0x4ef   : > { %3320 = vmatmul.f32.gmra.mxu2 %v2371_v6  ;;  %3445 = vmatmul.f32.gmra.mxu3 %v2373_v50  ;;  %v5926_v2 = vadd.f32 %v3520_v59, %v3396_v20  ;;  %v3152_v59 = vadd.f32 %v5816_v21, %v5709_v48 }
 0x4f2   : > { %v3273_v7 = vpop.f32.mrf.mxu2  ;;  %v3398_v52 = vpop.f32.mrf.mxu3 }
 0x4f3   : > { %v3274_v28 = vadd.f32 %v3273_v7, %v3149_v36  ;;  %v5930_v17 = vpop.f32.mrf.mxu1  ;;  %v3526_v24 = vpop.f32.mrf.mxu0  ;;  %v2430_v7 = vld [vmem:[#allocation2 + $0x76] sm:$0xff] }
 0x4f5   : > { %v3399_v15 = vadd.f32 %v3398_v52, %v3274_v28  ;;  %v2411_v52 = vld [vmem:[#allocation2 + $0xfd] sm:$0xff] }
 0x4f6   : > { %3647 = vmatmul.f32.gmra.mxu1 %v2429_v39  ;;  %3573 = vmatmul.f32.gmra.mxu0 %v2410_v32  ;;  %v2375_v28 = vld [vmem:[#allocation2 + $0xfc] sm:$0xff] }
 0x4f7   : > { %3323 = vmatmul.f32.gmra.mxu2 %v2372_v0  ;;  %3448 = vmatmul.f32.gmra.mxu3 %v2374_v45  ;;  %v5932_v6 = vadd.f32 %v3523_v10, %v3399_v15  ;;  %v3155_v10 = vadd.f32 %v5822_v60, %v5715_v16  ;;  %v2413_v16 = vld [vmem:[#allocation2 + $0x10d] sm:$0xff] }
 0x4f8   : > { %v2377_v60 = vld [vmem:[#allocation2 + $0x10c] sm:$0xff] }
 0x4fa   : > { %v3276_v4 = vpop.f32.mrf.mxu2  ;;  %v3401_v33 = vpop.f32.mrf.mxu3 }
 0x4fb   : > { %v3277_v20 = vadd.f32 %v3276_v4, %v3152_v59  ;;  %v5936_v53 = vpop.f32.mrf.mxu1  ;;  %v2431_v59 = vld [vmem:[#allocation2 + $0x7e] sm:$0xff] }
 0x4fc   : > { %v2412_v4 = vld [vmem:[#allocation2 + $0x105] sm:$0xff] }
 0x4fd   : > { %v3402_v36 = vadd.f32 %v3401_v33, %v3277_v20  ;;  %v3529_v33 = vpop.f32.mrf.mxu0  ;;  %v2376_v20 = vld [vmem:[#allocation2 + $0x104] sm:$0xff] }
 0x4fe   : > { %3650 = vmatmul.f32.gmra.mxu1 %v2430_v7  ;;  %3576 = vmatmul.f32.gmra.mxu0 %v2411_v52  ;;  %v2433_v52 = vld [vmem:[#allocation2 + $0x8e] sm:$0xff] }
 0x4ff   : > { %3326 = vmatmul.f32.gmra.mxu2 %v2373_v50  ;;  %3451 = vmatmul.f32.gmra.mxu3 %v2375_v28  ;;  %v5938_v0 = vadd.f32 %v3526_v24, %v3402_v36  ;;  %v2432_v36 = vld [vmem:[#allocation2 + $0x86] sm:$0xff] }
 0x502   : > { %v3279_v48 = vpop.f32.mrf.mxu2  ;;  %v3404_v39 = vpop.f32.mrf.mxu3 }
 0x503   : > { %v3280_v21 = vadd.f32 %v3279_v48, %v3155_v10  ;;  %v5942_v15 = vpop.f32.mrf.mxu1  ;;  %v2414_v10 = vld [vmem:[#allocation2 + $0x115] sm:$0xff] }
 0x504   : > { %v2378_v48 = vld [vmem:[#allocation2 + $0x114] sm:$0xff] }
 0x505   : > { %v3405_v32 = vadd.f32 %v3404_v39, %v3280_v21  ;;  %v2434_v21 = vld [vmem:[#allocation2 + $0x96] sm:$0xff] }
 0x506   : > { %3653 = vmatmul.f32.gmra.mxu1 %v2431_v59  ;;  %3579 = vmatmul.f32.gmra.mxu0 %v2412_v4  ;;  %v2415_v39 = vld [vmem:[#allocation2 + $0x11d] sm:$0xff]  ;;  %v2416_v4 = vld [vmem:[#allocation2 + $0x125] sm:$0xff] }
 0x507   : > { %3329 = vmatmul.f32.gmra.mxu2 %v2374_v45  ;;  %3454 = vmatmul.f32.gmra.mxu3 %v2376_v20  ;;  %v5944_v50 = vadd.f32 %v3529_v33, %v3405_v32  ;;  %v2379_v32 = vld [vmem:[#allocation2 + $0x11c] sm:$0xff]  ;;  %v2380_v33 = vld [vmem:[#allocation2 + $0x124] sm:$0xff] }
 0x508   : > { %v2435_v59 = vld [vmem:[#allocation2 + $0x9e] sm:$0xff] }
 0x50b   : > { %v5946_v24 = vpop.f32.mrf.mxu1 }
 0x50e   : > { %3656 = vmatmul.f32.gmra.mxu1 %v2432_v36  ;;  %3582 = vmatmul.f32.gmra.mxu0 %v2413_v16  ;;  %v3729_v36 = vld [vmem:[%s4467_s18 + $0x13] sm:$0xff] }
 0x50f   : > { %3332 = vmatmul.f32.gmra.mxu2 %v2375_v28  ;;  %3457 = vmatmul.f32.gmra.mxu3 %v2377_v60 }
 0x513   : > { %v5948_v7 = vpop.f32.mrf.mxu1 }
 0x516   : > { %3659 = vmatmul.f32.gmra.mxu1 %v2433_v52  ;;  %3585 = vmatmul.f32.gmra.mxu0 %v2414_v10  ;;  %v2436_v52 = vld [vmem:[#allocation2 + $0xa6] sm:$0xff] }
 0x517   : > { %3335 = vmatmul.f32.gmra.mxu2 %v2376_v20  ;;  %3460 = vmatmul.f32.gmra.mxu3 %v2378_v48 }
 0x51b   : > { %v5950_v45 = vpop.f32.mrf.mxu1 }
 0x51c   : > { %6250 = vst [vmem:[#allocation19_spill] sm:$0xff] %v5950_v45 }
 0x51e   : > { %3662 = vmatmul.f32.gmra.mxu1 %v2434_v21  ;;  %3588 = vmatmul.f32.gmra.mxu0 %v2415_v39  ;;  %v2381_v21 = vld [vmem:[#allocation2 + $0x12c] sm:$0xff] }
 0x51f   : > { %3338 = vmatmul.f32.gmra.mxu2 %v2377_v60  ;;  %3463 = vmatmul.f32.gmra.mxu3 %v2379_v32  ;;  %v2417_v60 = vld [vmem:[#allocation2 + $0x12d] sm:$0xff] }
 0x523   : > { %v5952_v28 = vpop.f32.mrf.mxu1 }
 0x524   : > { %6251 = vst [vmem:[#allocation20_spill] sm:$0xff] %v5952_v28 }
 0x526   : > { %3665 = vmatmul.f32.gmra.mxu1 %v2435_v59  ;;  %3591 = vmatmul.f32.gmra.mxu0 %v2416_v4  ;;  %v3730_v4 = vld [vmem:[%s4467_s18 + $0x1b] sm:$0xff] }
 0x527   : > { %3341 = vmatmul.f32.gmra.mxu2 %v2378_v48  ;;  %3466 = vmatmul.f32.gmra.mxu3 %v2380_v33 }
 0x52b   : > { %v3621_v20 = vpop.f32.mrf.mxu1 }
 0x52c   : > { %v3622_v16 = vadd.f32 %v3621_v20, %v5878_v14  ;;  %v2418_v14 = vld [vmem:[#allocation2 + $0x135] sm:$0xff] }
 0x52e   : > { %v3765_v10 = vadd.f32 %v3729_v36, %v3622_v16  ;;  %3668 = vmatmul.f32.gmra.mxu1 %v2436_v52  ;;  %3594 = vmatmul.f32.gmra.mxu0 %v2417_v60  ;;  %v2382_v36 = vld [vmem:[#allocation2 + $0x134] sm:$0xff] }
 0x52f   : > { %3344 = vmatmul.f32.gmra.mxu2 %v2379_v32  ;;  %3469 = vmatmul.f32.gmra.mxu3 %v2381_v21  ;;  %v2437_v16 = vld [vmem:[#allocation2 + $0xae] sm:$0xff] }
 0x530   : > { %vm3801_vm4 = vcmp.ge.f32.partialorder %v3765_v10, 0.0  ;;  %v3837_v39 = vmul.f32 0.01, %v3765_v10 }
 0x532   : > { %v3873_v48 = vsel %vm3801_vm4, %v3765_v10, %v3837_v39  ;;  %v3731_v39 = vld [vmem:[%s4467_s18 + $0x23] sm:$0xff] }
 0x533   : > { %3909 = vst [vmem:[%s5959_s28] sm:$0xff] %v3873_v48  ;;  %v3624_v59 = vpop.f32.mrf.mxu1  ;;  %v2419_v48 = vld [vmem:[#allocation2 + $0x13d] sm:$0xff] }
 0x534   : > { %v3625_v20 = vadd.f32 %v3624_v59, %v5884_v62  ;;  %v2438_v62 = vld [vmem:[#allocation2 + $0xb6] sm:$0xff] }
 0x536   : > { %v3766_v52 = vadd.f32 %v3730_v4, %v3625_v20  ;;  %3671 = vmatmul.f32.gmra.mxu1 %v2437_v16  ;;  %3597 = vmatmul.f32.gmra.mxu0 %v2418_v14  ;;  %v3732_v20 = vld [vmem:[%s4467_s18 + $0x2b] sm:$0xff]  ;;  %v2439_v16 = vld [vmem:[#allocation2 + $0xbe] sm:$0xff] }
 0x537   : > { %3347 = vmatmul.f32.gmra.mxu2 %v2380_v33  ;;  %3472 = vmatmul.f32.gmra.mxu3 %v2382_v36 }
 0x538   : > { %vm3802_vm5 = vcmp.ge.f32.partialorder %v3766_v52, 0.0  ;;  %v3838_v32 = vmul.f32 0.01, %v3766_v52 }
 0x53a   : > { %v3874_v60 = vsel %vm3802_vm5, %v3766_v52, %v3838_v32 }
 0x53b   : > { %3910 = vst [vmem:[%s5959_s28 + $0x8] sm:$0xff] %v3874_v60  ;;  %v3627_v10 = vpop.f32.mrf.mxu1  ;;  %v2440_v60 = vld [vmem:[#allocation2 + $0xc6] sm:$0xff] }
 0x53c   : > { %v3628_v28 = vadd.f32 %v3627_v10, %v5890_v41 }
 0x53e   : > { %v3767_v59 = vadd.f32 %v3731_v39, %v3628_v28  ;;  %3674 = vmatmul.f32.gmra.mxu1 %v2438_v62  ;;  %3600 = vmatmul.f32.gmra.mxu0 %v2419_v48 }
 0x53f   : > { %3350 = vmatmul.f32.gmra.mxu2 %v2381_v21  ;;  %3475 = vmatmul.f32.gmra.mxu3 %v2383_v51  ;;  %v3733_v51 = vld [vmem:[%s4467_s18 + $0x33] sm:$0xff] }
 0x540   : > { %vm3803_vm6 = vcmp.ge.f32.partialorder %v3767_v59, 0.0  ;;  %v3839_v33 = vmul.f32 0.01, %v3767_v59 }
 0x542   : > { %v3875_v4 = vsel %vm3803_vm6, %v3767_v59, %v3839_v33  ;;  %v3734_v59 = vld [vmem:[%s4467_s18 + $0x3b] sm:$0xff] }
 0x543   : > { %3911 = vst [vmem:[%s5959_s28 + $0x10] sm:$0xff] %v3875_v4  ;;  %v3630_v14 = vpop.f32.mrf.mxu1  ;;  %v2441_v4 = vld [vmem:[#allocation2 + $0xce] sm:$0xff] }
 0x544   : > { %v3631_v36 = vadd.f32 %v3630_v14, %v5896_v38  ;;  %v5973_v38 = vpop.f32.mrf.mxu2 }
 0x546   : > { %v3768_v52 = vadd.f32 %v3732_v20, %v3631_v36  ;;  %3677 = vmatmul.f32.gmra.mxu1 %v2439_v16  ;;  %v5978_v20 = vpop.f32.mrf.mxu3  ;;  %v5980_v36 = vpop.f32.mrf.mxu0 }
 0x548   : > { %vm3804_vm7 = vcmp.ge.f32.partialorder %v3768_v52, 0.0  ;;  %v3840_v41 = vmul.f32 0.01, %v3768_v52 }
 0x54a   : > { %v3876_v28 = vsel %vm3804_vm7, %v3768_v52, %v3840_v41 }
 0x54b   : > { %3912 = vst [vmem:[%s5959_s28 + $0x18] sm:$0xff] %v3876_v28  ;;  %v3633_v21 = vpop.f32.mrf.mxu1  ;;  %v3735_v28 = vld [vmem:[%s4467_s18 + $0x43] sm:$0xff] }
 0x54c   : > { %v3634_v32 = vadd.f32 %v3633_v21, %v5902_v23  ;;  %v5982_v52 = vpop.f32.mrf.mxu2 }
 0x54e   : > { %v3769_v10 = vadd.f32 %v3733_v51, %v3634_v32  ;;  %3680 = vmatmul.f32.gmra.mxu1 %v2440_v60  ;;  %v5987_v60 = vpop.f32.mrf.mxu3 }
 0x550   : > { %vm3805_vm8 = vcmp.ge.f32.partialorder %v3769_v10, 0.0  ;;  %v3841_v39 = vmul.f32 0.01, %v3769_v10 }
 0x552   : > { %v3877_v48 = vsel %vm3805_vm8, %v3769_v10, %v3841_v39 }
 0x553   : > { %3913 = vst [vmem:[%s5959_s28 + $0x20] sm:$0xff] %v3877_v48  ;;  %v3636_v62 = vpop.f32.mrf.mxu1  ;;  %v3736_v48 = vld [vmem:[%s4467_s18 + $0x4b] sm:$0xff] }
 0x554   : > { %v3637_v33 = vadd.f32 %v3636_v62, %v5908_v22  ;;  %v2442_v22 = vld [vmem:[#allocation2 + $0xd6] sm:$0xff]  ;;  %v5991_v62 = vpop.f32.mrf.mxu0 }
 0x556   : > { %v3770_v14 = vadd.f32 %v3734_v59, %v3637_v33  ;;  %3683 = vmatmul.f32.gmra.mxu1 %v2441_v4  ;;  %v5994_v33 = vpop.f32.mrf.mxu2 }
 0x558   : > { %vm3806_vm9 = vcmp.ge.f32.partialorder %v3770_v14, 0.0  ;;  %v3842_v23 = vmul.f32 0.01, %v3770_v14 }
 0x55a   : > { %v3878_v16 = vsel %vm3806_vm9, %v3770_v14, %v3842_v23 }
 0x55b   : > { %3914 = vst [vmem:[%s5959_s28 + $0x28] sm:$0xff] %v3878_v16  ;;  %v3639_v41 = vpop.f32.mrf.mxu1  ;;  %v5996_v16 = vpop.f32.mrf.mxu3 }
 0x55c   : > { %v3640_v21 = vadd.f32 %v3639_v41, %v5914_v55  ;;  %v2443_v55 = vld [vmem:[#allocation2 + $0xde] sm:$0xff] }
 0x55e   : > { %v3771_v51 = vadd.f32 %v3735_v28, %v3640_v21  ;;  %3686 = vmatmul.f32.gmra.mxu1 %v2442_v22  ;;  %v3737_v28 = vld [vmem:[%s4467_s18 + $0x53] sm:$0xff]  ;;  %v2444_v22 = vld [vmem:[#allocation2 + $0xe6] sm:$0xff] }
 0x560   : > { %vm3807_vm10 = vcmp.ge.f32.partialorder %v3771_v51, 0.0  ;;  %v3843_v32 = vmul.f32 0.01, %v3771_v51 }
 0x562   : > { %v3879_v10 = vsel %vm3807_vm10, %v3771_v51, %v3843_v32  ;;  %v6001_v51 = vpop.f32.mrf.mxu0  ;;  %v6003_v32 = vpop.f32.mrf.mxu2 }
 0x563   : > { %3915 = vst [vmem:[%s5959_s28 + $0x30] sm:$0xff] %v3879_v10  ;;  %v3642_v39 = vpop.f32.mrf.mxu1 }
 0x564   : > { %v3643_v59 = vadd.f32 %v3642_v39, %v5920_v63 }
 0x566   : > { %v3772_v4 = vadd.f32 %v3736_v48, %v3643_v59  ;;  %3689 = vmatmul.f32.gmra.mxu1 %v2443_v55  ;;  %v3738_v59 = vld [vmem:[%s4467_s18 + $0x5b] sm:$0xff] }
 0x568   : > { %vm3808_vm11 = vcmp.ge.f32.partialorder %v3772_v4, 0.0  ;;  %v3844_v14 = vmul.f32 0.01, %v3772_v4 }
 0x56a   : > { %v3880_v23 = vsel %vm3808_vm11, %v3772_v4, %v3844_v14  ;;  %v6008_v4 = vpop.f32.mrf.mxu3 }
 0x56b   : > { %3916 = vst [vmem:[%s5959_s28 + $0x38] sm:$0xff] %v3880_v23  ;;  %v3645_v41 = vpop.f32.mrf.mxu1  ;;  %v6010_v23 = vpop.f32.mrf.mxu0 }
 0x56c   : > { %v3646_v21 = vadd.f32 %v3645_v41, %v5926_v2  ;;  %v2445_v2 = vld [vmem:[#allocation2 + $0xee] sm:$0xff] }
 0x56e   : > { %v3773_v63 = vadd.f32 %v3737_v28, %v3646_v21  ;;  %3692 = vmatmul.f32.gmra.mxu1 %v2444_v22  ;;  %v6012_v28 = vpop.f32.mrf.mxu2 }
 0x570   : > { %vm3809_vm12 = vcmp.ge.f32.partialorder %v3773_v63, 0.0  ;;  %v3845_v10 = vmul.f32 0.01, %v3773_v63 }
 0x572   : > { %v3881_v39 = vsel %vm3809_vm12, %v3773_v63, %v3845_v10  ;;  %v3739_v63 = vld [vmem:[%s4467_s18 + $0x63] sm:$0xff] }
 0x573   : > { %3917 = vst [vmem:[%s5959_s28 + $0x40] sm:$0xff] %v3881_v39  ;;  %v3648_v48 = vpop.f32.mrf.mxu1 }
 0x574   : > { %v3649_v55 = vadd.f32 %v3648_v48, %v5932_v6  ;;  %v2446_v6 = vld [vmem:[#allocation2 + $0xf6] sm:$0xff]  ;;  %v6017_v48 = vpop.f32.mrf.mxu3 }
 0x576   : > { %v3774_v14 = vadd.f32 %v3738_v59, %v3649_v55  ;;  %3695 = vmatmul.f32.gmra.mxu1 %v2445_v2  ;;  %v3158_v59 = vadd.f32 %v5828_v37, %v5721_v56  ;;  %v3161_v37 = vadd.f32 %v5834_v34, %v5730_v49  ;;  %v2448_v49 = vld [vmem:[#allocation2 + $0x106] sm:$0xff] }
 0x578   : > { %vm3810_vm13 = vcmp.ge.f32.partialorder %v3774_v14, 0.0  ;;  %v3846_v41 = vmul.f32 0.01, %v3774_v14  ;;  %v3283_v2 = vadd.f32 %v5973_v38, %v3158_v59  ;;  %v3286_v59 = vadd.f32 %v5982_v52, %v3161_v37  ;;  %v3742_v37 = vld [vmem:[%s4467_s18 + $0x7b] sm:$0xff] }
 0x579   : > { %v3164_v52 = vadd.f32 %v5840_v40, %v5739_v13 }
 0x57a   : > { %v3882_v21 = vsel %vm3810_vm13, %v3774_v14, %v3846_v41  ;;  %v6022_v14 = vpop.f32.mrf.mxu0  ;;  %v3411_v34 = vadd.f32 %v5987_v60, %v3286_v59 }
 0x57b   : > { %3918 = vst [vmem:[%s5959_s28 + $0x48] sm:$0xff] %v3882_v21  ;;  %v3651_v22 = vpop.f32.mrf.mxu1  ;;  %v6024_v21 = vpop.f32.mrf.mxu2 }
 0x57c   : > { %v3652_v10 = vadd.f32 %v3651_v22, %v5938_v0  ;;  %v3740_v22 = vld [vmem:[%s4467_s18 + $0x6b] sm:$0xff] }
 0x57e   : > { %v3775_v39 = vadd.f32 %v3739_v63, %v3652_v10  ;;  %3698 = vmatmul.f32.gmra.mxu1 %v2446_v6  ;;  %v2447_v10 = vld [vmem:[#allocation2 + $0xfe] sm:$0xff]  ;;  %v3408_v6 = vadd.f32 %v5978_v20, %v3283_v2 }
 0x580   : > { %vm3811_vm14 = vcmp.ge.f32.partialorder %v3775_v39, 0.0  ;;  %v3847_v55 = vmul.f32 0.01, %v3775_v39 }
 0x582   : > { %v3883_v41 = vsel %vm3811_vm14, %v3775_v39, %v3847_v55  ;;  %v6032_v39 = vpop.f32.mrf.mxu3 }
 0x583   : > { %3919 = vst [vmem:[%s5959_s28 + $0x50] sm:$0xff] %v3883_v41  ;;  %v3654_v0 = vpop.f32.mrf.mxu1  ;;  %v3533_v41 = vadd.f32 %v5980_v36, %v3408_v6  ;;  %v6040_v2 = vpop.f32.mrf.mxu2  ;;  %v3536_v6 = vadd.f32 %v5991_v62, %v3411_v34  ;;  %v3167_v62 = vadd.f32 %v5846_v18, %v5746_v31  ;;  %v3170_v31 = vadd.f32 %v5852_v47, %v5753_v25 }
 0x584   : > { %v3655_v63 = vadd.f32 %v3654_v0, %v5944_v50  ;;  %v3741_v50 = vld [vmem:[%s4467_s18 + $0x73] sm:$0xff]  ;;  %v6038_v0 = vpop.f32.mrf.mxu0 }
 0x586   : > { %v3776_v56 = vadd.f32 %v3740_v22, %v3655_v63  ;;  %3701 = vmatmul.f32.gmra.mxu1 %v2447_v10  ;;  %v3289_v63 = vadd.f32 %v5994_v33, %v3164_v52  ;;  %v2450_v52 = vld [vmem:[#allocation2 + $0x116] sm:$0xff] }
 0x588   : > { %vm3812_vm15 = vcmp.ge.f32.partialorder %v3776_v56, 0.0  ;;  %v3848_v38 = vmul.f32 0.01, %v3776_v56  ;;  %v3414_v59 = vadd.f32 %v5996_v16, %v3289_v63  ;;  %v3743_v16 = vld [vmem:[%s4467_s18 + $0x83] sm:$0xff] }
 0x58a   : > { %v3884_v55 = vsel %vm3812_vm15, %v3776_v56, %v3848_v38  ;;  %v6047_v56 = vpop.f32.mrf.mxu3  ;;  %v2449_v38 = vld [vmem:[#allocation2 + $0x10e] sm:$0xff] }
 0x58b   : > { %3920 = vst [vmem:[%s5959_s28 + $0x58] sm:$0xff] %v3884_v55  ;;  %v3657_v45 = vpop.f32.mrf.mxu1  ;;  %v6054_v40 = vpop.f32.mrf.mxu2 }
 0x58c   : > { %v3658_v20 = vadd.f32 %v3657_v45, %v3533_v41  ;;  %v6052_v55 = vpop.f32.mrf.mxu0  ;;  %v3292_v41 = vadd.f32 %v6003_v32, %v3167_v62 }
 0x58e   : > { %v3777_v22 = vadd.f32 %v3741_v50, %v3658_v20  ;;  %3704 = vmatmul.f32.gmra.mxu1 %v2448_v49  ;;  %v3539_v20 = vadd.f32 %v6001_v51, %v3414_v59 }
 0x590   : > { %vm3813_vm0 = vcmp.ge.f32.partialorder %v3777_v22, 0.0  ;;  %v3849_v36 = vmul.f32 0.01, %v3777_v22 }
 0x592   : > { %v3885_v10 = vsel %vm3813_vm0, %v3777_v22, %v3849_v36  ;;  %v6062_v22 = vpop.f32.mrf.mxu3  ;;  %v3417_v36 = vadd.f32 %v6008_v4, %v3292_v41  ;;  %v3744_v4 = vld [vmem:[%s4467_s18 + $0x8b] sm:$0xff] }
 0x593   : > { %3921 = vst [vmem:[%s5959_s28 + $0x60] sm:$0xff] %v3885_v10  ;;  %v3660_v45 = vpop.f32.mrf.mxu1  ;;  %v6069_v32 = vpop.f32.mrf.mxu2  ;;  %v3295_v10 = vadd.f32 %v6012_v28, %v3170_v31 }
 0x594   : > { %v3661_v60 = vadd.f32 %v3660_v45, %v3536_v6  ;;  %v6067_v18 = vpop.f32.mrf.mxu0  ;;  %v3542_v45 = vadd.f32 %v6010_v23, %v3417_v36 }
 0x595   : > { %v3420_v25 = vadd.f32 %v6017_v48, %v3295_v10 }
 0x596   : > { %v3778_v13 = vadd.f32 %v3742_v37, %v3661_v60  ;;  %3707 = vmatmul.f32.gmra.mxu1 %v2449_v38  ;;  %v2451_v38 = vld [vmem:[#allocation2 + $0x11e] sm:$0xff] }
 0x597   : > { %v3545_v41 = vadd.f32 %v6022_v14, %v3420_v25 }
 0x598   : > { %vm3814_vm1 = vcmp.ge.f32.partialorder %v3778_v13, 0.0  ;;  %v3850_v33 = vmul.f32 0.01, %v3778_v13 }
 0x59a   : > { %v3886_v50 = vsel %vm3814_vm1, %v3778_v13, %v3850_v33  ;;  %v6076_v59 = vpop.f32.mrf.mxu3  ;;  %v3173_v13 = vadd.f32 %v5858_v30, %v5759_v58 }
 0x59b   : > { %3922 = vst [vmem:[%s5959_s28 + $0x68] sm:$0xff] %v3886_v50  ;;  %v3663_v49 = vpop.f32.mrf.mxu1  ;;  %v6084_v50 = vpop.f32.mrf.mxu2 }
 0x59c   : > { %v3664_v34 = vadd.f32 %v3663_v49, %v3539_v20  ;;  %v3298_v23 = vadd.f32 %v6024_v21, %v3173_v13  ;;  %v6081_v62 = vpop.f32.mrf.mxu0  ;;  %v3745_v20 = vld [vmem:[%s4467_s18 + $0x93] sm:$0xff]  ;;  %v3176_v21 = vadd.f32 %v5864_v5, %v5765_v27  ;;  %v3179_v5 = vadd.f32 %v5870_v12, %v5771_v8 }
 0x59d   : > { %v2454_v13 = vld [vmem:[#allocation2 + $0x136] sm:$0xff]  ;;  %v3182_v12 = vadd.f32 %v5876_v54, %v5777_v57  ;;  %v3185_v57 = vadd.f32 %v5882_v9, %v5783_v1  ;;  %v3188_v1 = vadd.f32 %v5888_v43, %v5789_v29 }
 0x59e   : > { %v3779_v63 = vadd.f32 %v3743_v16, %v3664_v34  ;;  %3710 = vmatmul.f32.gmra.mxu1 %v2450_v52  ;;  %v2452_v16 = vld [vmem:[#allocation2 + $0x126] sm:$0xff]  ;;  %v3423_v58 = vadd.f32 %v6032_v39, %v3298_v23  ;;  %v3301_v14 = vadd.f32 %v6040_v2, %v3176_v21 }
 0x5a0   : > { %vm3815_vm2 = vcmp.ge.f32.partialorder %v3779_v63, 0.0  ;;  %v3851_v51 = vmul.f32 0.01, %v3779_v63 }
 0x5a2   : > { %v3887_v6 = vsel %vm3815_vm2, %v3779_v63, %v3851_v51  ;;  %v3434_v52 = vpop.f32.mrf.mxu3  ;;  %v3548_v63 = vadd.f32 %v6038_v0, %v3423_v58  ;;  %v3746_v51 = vld [vmem:[%s4467_s18 + $0x9b] sm:$0xff]  ;;  %v3304_v0 = vadd.f32 %v6054_v40, %v3179_v5 }
 0x5a3   : > { %3923 = vst [vmem:[%s5959_s28 + $0x70] sm:$0xff] %v3887_v6  ;;  %v3666_v37 = vpop.f32.mrf.mxu1  ;;  %v3312_v6 = vpop.f32.mrf.mxu2 }
 0x5a4   : > { %v3667_v60 = vadd.f32 %v3666_v37, %v3542_v45  ;;  %v3559_v10 = vpop.f32.mrf.mxu0  ;;  %v2453_v45 = vld [vmem:[#allocation2 + $0x12e] sm:$0xff]  ;;  %v3426_v37 = vadd.f32 %v6047_v56, %v3301_v14 }
 0x5a6   : > { %v3780_v47 = vadd.f32 %v3744_v4, %v3667_v60  ;;  %3713 = vmatmul.f32.gmra.mxu1 %v2451_v38  ;;  %v3551_v60 = vadd.f32 %v6052_v55, %v3426_v37  ;;  %v3307_v55 = vadd.f32 %v6069_v32, %v3182_v12  ;;  %v3313_v37 = vadd.f32 %v3312_v6, %v3188_v1 }
 0x5a8   : > { %vm3816_vm3 = vcmp.ge.f32.partialorder %v3780_v47, 0.0  ;;  %v3852_v28 = vmul.f32 0.01, %v3780_v47 }
 0x5aa   : > { %v3888_v33 = vsel %vm3816_vm3, %v3780_v47, %v3852_v28  ;;  %v3437_v38 = vpop.f32.mrf.mxu3  ;;  %v3747_v47 = vld [vmem:[%s4467_s18 + $0xa3] sm:$0xff]  ;;  %v3429_v28 = vadd.f32 %v6062_v22, %v3304_v0  ;;  %v3750_v0 = vld [vmem:[%s4467_s18 + $0xbb] sm:$0xff] }
 0x5ab   : > { %3924 = vst [vmem:[%s5959_s28 + $0x78] sm:$0xff] %v3888_v33  ;;  %v3669_v48 = vpop.f32.mrf.mxu1  ;;  %v3315_v8 = vpop.f32.mrf.mxu2 }
 0x5ac   : > { %v3670_v49 = vadd.f32 %v3669_v48, %v3545_v41  ;;  %v3562_v23 = vpop.f32.mrf.mxu0  ;;  %v3554_v48 = vadd.f32 %v6067_v18, %v3429_v28  ;;  %v3310_v18 = vadd.f32 %v6084_v50, %v3185_v57  ;;  %v6253_v57 = vld [vmem:[#allocation12_spill] sm:$0xff] }
 0x5ae   : > { %v3781_v30 = vadd.f32 %v3745_v20, %v3670_v49  ;;  %3716 = vmatmul.f32.gmra.mxu1 %v2452_v16  ;;  %v3748_v49 = vld [vmem:[%s4467_s18 + $0xab] sm:$0xff]  ;;  %v2455_v16 = vld [vmem:[#allocation2 + $0x13e] sm:$0xff] }
 0x5b0   : > { %vm3817_vm4 = vcmp.ge.f32.partialorder %v3781_v30, 0.0  ;;  %v3853_v34 = vmul.f32 0.01, %v3781_v30 }
 0x5b2   : > { %v3889_v36 = vsel %vm3817_vm4, %v3781_v30, %v3853_v34  ;;  %v3440_v58 = vpop.f32.mrf.mxu3  ;;  %v3432_v30 = vadd.f32 %v6076_v59, %v3307_v55  ;;  %v6252_v55 = vld [vmem:[#allocation11_spill] sm:$0xff] }
 0x5b3   : > { %3925 = vst [vmem:[%s5959_s28 + $0x80] sm:$0xff] %v3889_v36  ;;  %v3672_v31 = vpop.f32.mrf.mxu1  ;;  %v3318_v34 = vpop.f32.mrf.mxu2 }
 0x5b4   : > { %v3673_v39 = vadd.f32 %v3672_v31, %v3548_v63  ;;  %v3565_v54 = vpop.f32.mrf.mxu0  ;;  %v3557_v36 = vadd.f32 %v6081_v62, %v3432_v30  ;;  %v3749_v31 = vld [vmem:[%s4467_s18 + $0xb3] sm:$0xff] }
 0x5b6   : > { %v3782_v27 = vadd.f32 %v3746_v51, %v3673_v39  ;;  %3719 = vmatmul.f32.gmra.mxu1 %v2453_v45  ;;  %v3435_v51 = vadd.f32 %v3434_v52, %v3310_v18 }
 0x5b8   : > { %vm3818_vm5 = vcmp.ge.f32.partialorder %v3782_v27, 0.0  ;;  %v3854_v2 = vmul.f32 0.01, %v3782_v27  ;;  %v3560_v5 = vadd.f32 %v3559_v10, %v3435_v51 }
 0x5ba   : > { %v3890_v4 = vsel %vm3818_vm5, %v3782_v27, %v3854_v2  ;;  %v3443_v45 = vpop.f32.mrf.mxu3 }
 0x5bb   : > { %3926 = vst [vmem:[%s5959_s28 + $0x88] sm:$0xff] %v3890_v4  ;;  %v3675_v25 = vpop.f32.mrf.mxu1  ;;  %v3321_v62 = vpop.f32.mrf.mxu2 }
 0x5bc   : > { %v3676_v56 = vadd.f32 %v3675_v25, %v3551_v60  ;;  %v3568_v27 = vpop.f32.mrf.mxu0  ;;  %v3438_v60 = vadd.f32 %v3437_v38, %v3313_v37  ;;  %v3191_v25 = vadd.f32 %v5894_v61, %v5795_v19 }
 0x5be   : > { %v3783_v33 = vadd.f32 %v3747_v47, %v3676_v56  ;;  %3722 = vmatmul.f32.gmra.mxu1 %v2454_v13  ;;  %v3316_v47 = vadd.f32 %v3315_v8, %v3191_v25  ;;  %v3563_v13 = vadd.f32 %v3562_v23, %v3438_v60  ;;  %v3751_v56 = vld [vmem:[%s4467_s18 + $0xc3] sm:$0xff] }
 0x5c0   : > { %vm3819_vm6 = vcmp.ge.f32.partialorder %v3783_v33, 0.0  ;;  %v3855_v40 = vmul.f32 0.01, %v3783_v33 }
 0x5c2   : > { %v3891_v41 = vsel %vm3819_vm6, %v3783_v33, %v3855_v40  ;;  %v3446_v43 = vpop.f32.mrf.mxu3  ;;  %v3441_v40 = vadd.f32 %v3440_v58, %v3316_v47 }
 0x5c3   : > { %3927 = vst [vmem:[%s5959_s28 + $0x90] sm:$0xff] %v3891_v41  ;;  %v3678_v20 = vpop.f32.mrf.mxu1  ;;  %v3324_v12 = vpop.f32.mrf.mxu2  ;;  %v3194_v41 = vadd.f32 %v5900_v44, %v6252_v55 }
 0x5c4   : > { %v3679_v22 = vadd.f32 %v3678_v20, %v3554_v48  ;;  %v3571_v28 = vpop.f32.mrf.mxu0  ;;  %v3566_v8 = vadd.f32 %v3565_v54, %v3441_v40  ;;  %v6256_v40 = vld [vmem:[#allocation15_spill] sm:$0xff] }
 0x5c5   : > { %v3319_v61 = vadd.f32 %v3318_v34, %v3194_v41 }
 0x5c6   : > { %v3784_v21 = vadd.f32 %v3748_v49, %v3679_v22  ;;  %3725 = vmatmul.f32.gmra.mxu1 %v2455_v16  ;;  %v3752_v49 = vld [vmem:[%s4467_s18 + $0xcb] sm:$0xff] }
 0x5c7   : > { %v3444_v22 = vadd.f32 %v3443_v45, %v3319_v61 }
 0x5c8   : > { %vm3820_vm7 = vcmp.ge.f32.partialorder %v3784_v21, 0.0  ;;  %v3856_v32 = vmul.f32 0.01, %v3784_v21 }
 0x5ca   : > { %v3892_v14 = vsel %vm3820_vm7, %v3784_v21, %v3856_v32  ;;  %v3449_v23 = vpop.f32.mrf.mxu3  ;;  %v3197_v32 = vadd.f32 %v5906_v3, %v6253_v57 }
 0x5cb   : > { %3928 = vst [vmem:[%s5959_s28 + $0x98] sm:$0xff] %v3892_v14  ;;  %v3681_v63 = vpop.f32.mrf.mxu1  ;;  %v3327_v58 = vpop.f32.mrf.mxu2  ;;  %v3569_v14 = vadd.f32 %v3568_v27, %v3444_v22 }
 0x5cc   : > { %v3682_v59 = vadd.f32 %v3681_v63, %v3557_v36  ;;  %v3574_v30 = vpop.f32.mrf.mxu0  ;;  %v3322_v18 = vadd.f32 %v3321_v62, %v3197_v32  ;;  %v3753_v36 = vld [vmem:[%s4467_s18 + $0xd3] sm:$0xff]  ;;  %v3754_v62 = vld [vmem:[%s4467_s18 + $0xdb] sm:$0xff] }
 0x5ce   : > { %v3785_v39 = vadd.f32 %v3749_v31, %v3682_v59  ;;  %v3447_v59 = vadd.f32 %v3446_v43, %v3322_v18 }
 0x5d0   : > { %vm3821_vm8 = vcmp.ge.f32.partialorder %v3785_v39, 0.0  ;;  %v3857_v9 = vmul.f32 0.01, %v3785_v39 }
 0x5d2   : > { %v3893_v50 = vsel %vm3821_vm8, %v3785_v39, %v3857_v9  ;;  %v3452_v31 = vpop.f32.mrf.mxu3  ;;  %v6254_v39 = vld [vmem:[#allocation13_spill] sm:$0xff] }
 0x5d3   : > { %3929 = vst [vmem:[%s5959_s28 + $0xa0] sm:$0xff] %v3893_v50  ;;  %v3684_v2 = vpop.f32.mrf.mxu1  ;;  %v3200_v45 = vadd.f32 %v5912_v42, %v6254_v39  ;;  %v3330_v9 = vpop.f32.mrf.mxu2 }
 0x5d4   : > { %v3685_v4 = vadd.f32 %v3684_v2, %v3560_v5  ;;  %v3577_v1 = vpop.f32.mrf.mxu0  ;;  %v3572_v5 = vadd.f32 %v3571_v28, %v3447_v59  ;;  %v3212_v59 = vadd.f32 %v5936_v53, %v5842_v26 }
 0x5d5   : > { %v3325_v37 = vadd.f32 %v3324_v12, %v3200_v45 }
 0x5d6   : > { %v3786_v52 = vadd.f32 %v3750_v0, %v3685_v4 }
 0x5d7   : > { %v3450_v0 = vadd.f32 %v3449_v23, %v3325_v37 }
 0x5d8   : > { %vm3822_vm9 = vcmp.ge.f32.partialorder %v3786_v52, 0.0  ;;  %v3858_v29 = vmul.f32 0.01, %v3786_v52 }
 0x5da   : > { %v3894_v6 = vsel %vm3822_vm9, %v3786_v52, %v3858_v29  ;;  %v3455_v60 = vpop.f32.mrf.mxu3  ;;  %v6255_v52 = vld [vmem:[#allocation14_spill] sm:$0xff] }
 0x5db   : > { %3930 = vst [vmem:[%s5959_s28 + $0xa8] sm:$0xff] %v3894_v6  ;;  %v3687_v10 = vpop.f32.mrf.mxu1  ;;  %v3203_v25 = vadd.f32 %v5918_v46, %v6255_v52  ;;  %v3575_v6 = vadd.f32 %v3574_v30, %v3450_v0  ;;  %v6257_v30 = vld [vmem:[#allocation16_spill] sm:$0xff] }
 0x5dc   : > { %v3688_v33 = vadd.f32 %v3687_v10, %v3563_v13  ;;  %v3580_v43 = vpop.f32.mrf.mxu0  ;;  %v3333_v13 = vpop.f32.mrf.mxu2 }
 0x5dd   : > { %v3328_v29 = vadd.f32 %v3327_v58, %v3203_v25  ;;  %v3759_v25 = vld [vmem:[%s4467_s18 + $0x103] sm:$0xff] }
 0x5de   : > { %v3787_v38 = vadd.f32 %v3751_v56, %v3688_v33  ;;  %v3755_v56 = vld [vmem:[%s4467_s18 + $0xe3] sm:$0xff] }
 0x5df   : > { %v3453_v33 = vadd.f32 %v3452_v31, %v3328_v29 }
 0x5e0   : > { %vm3823_vm10 = vcmp.ge.f32.partialorder %v3787_v38, 0.0  ;;  %v3859_v19 = vmul.f32 0.01, %v3787_v38 }
 0x5e1   : > { %v3578_v61 = vadd.f32 %v3577_v1, %v3453_v33 }
 0x5e2   : > { %v3895_v48 = vsel %vm3823_vm10, %v3787_v38, %v3859_v19  ;;  %v3206_v38 = vadd.f32 %v5924_v35, %v6256_v40  ;;  %v3458_v55 = vpop.f32.mrf.mxu3 }
 0x5e3   : > { %3931 = vst [vmem:[%s5959_s28 + $0xb0] sm:$0xff] %v3895_v48  ;;  %v3690_v20 = vpop.f32.mrf.mxu1 }
 0x5e4   : > { %v3691_v16 = vadd.f32 %v3690_v20, %v3566_v8  ;;  %v3331_v41 = vadd.f32 %v3330_v9, %v3206_v38  ;;  %v3756_v8 = vld [vmem:[%s4467_s18 + $0xeb] sm:$0xff]  ;;  %v3583_v23 = vpop.f32.mrf.mxu0 }
 0x5e5   : > { %v3760_v38 = vld [vmem:[%s4467_s18 + $0x10b] sm:$0xff] }
 0x5e6   : > { %v3788_v21 = vadd.f32 %v3752_v49, %v3691_v16  ;;  %v3336_v49 = vpop.f32.mrf.mxu2  ;;  %v3456_v16 = vadd.f32 %v3455_v60, %v3331_v41 }
 0x5e8   : > { %vm3824_vm11 = vcmp.ge.f32.partialorder %v3788_v21, 0.0  ;;  %v3860_v44 = vmul.f32 0.01, %v3788_v21  ;;  %v3581_v32 = vadd.f32 %v3580_v43, %v3456_v16  ;;  %v3761_v16 = vld [vmem:[%s4467_s18 + $0x113] sm:$0xff] }
 0x5ea   : > { %v3896_v34 = vsel %vm3824_vm11, %v3788_v21, %v3860_v44  ;;  %v3209_v21 = vadd.f32 %v5930_v17, %v6257_v30  ;;  %v3461_v44 = vpop.f32.mrf.mxu3 }
 0x5eb   : > { %3932 = vst [vmem:[%s5959_s28 + $0xb8] sm:$0xff] %v3896_v34  ;;  %v3693_v54 = vpop.f32.mrf.mxu1  ;;  %v3757_v34 = vld [vmem:[%s4467_s18 + $0xf3] sm:$0xff] }
 0x5ec   : > { %v3694_v63 = vadd.f32 %v3693_v54, %v3569_v14  ;;  %v3334_v58 = vadd.f32 %v3333_v13, %v3209_v21 }
 0x5ee   : > { %v3789_v51 = vadd.f32 %v3753_v36, %v3694_v63  ;;  %v3459_v54 = vadd.f32 %v3458_v55, %v3334_v58  ;;  %v3586_v36 = vpop.f32.mrf.mxu0  ;;  %v3339_v31 = vpop.f32.mrf.mxu2 }
 0x5f0   : > { %vm3825_vm12 = vcmp.ge.f32.partialorder %v3789_v51, 0.0  ;;  %v3861_v3 = vmul.f32 0.01, %v3789_v51  ;;  %v3584_v45 = vadd.f32 %v3583_v23, %v3459_v54 }
 0x5f2   : > { %v3897_v50 = vsel %vm3825_vm12, %v3789_v51, %v3861_v3  ;;  %v3337_v51 = vadd.f32 %v3336_v49, %v3212_v59  ;;  %v3758_v3 = vld [vmem:[%s4467_s18 + $0xfb] sm:$0xff]  ;;  %v3464_v37 = vpop.f32.mrf.mxu3 }
 0x5f3   : > { %3933 = vst [vmem:[%s5959_s28 + $0xc0] sm:$0xff] %v3897_v50  ;;  %v3696_v27 = vpop.f32.mrf.mxu1 }
 0x5f4   : > { %v3697_v2 = vadd.f32 %v3696_v27, %v3572_v5  ;;  %v3462_v50 = vadd.f32 %v3461_v44, %v3337_v51  ;;  %v6258_v27 = vld [vmem:[#allocation17_spill] sm:$0xff] }
 0x5f6   : > { %v3790_v4 = vadd.f32 %v3754_v62, %v3697_v2  ;;  %v3215_v62 = vadd.f32 %v5942_v15, %v6258_v27  ;;  %v3589_v2 = vpop.f32.mrf.mxu0  ;;  %v3342_v53 = vpop.f32.mrf.mxu2  ;;  %v3587_v60 = vadd.f32 %v3586_v36, %v3462_v50  ;;  %v3762_v36 = vld [vmem:[%s4467_s18 + $0x11b] sm:$0xff]  ;;  %v3763_v27 = vld [vmem:[%s4467_s18 + $0x123] sm:$0xff] }
 0x5f8   : > { %vm3826_vm13 = vcmp.ge.f32.partialorder %v3790_v4, 0.0  ;;  %v3862_v42 = vmul.f32 0.01, %v3790_v4  ;;  %v3340_v0 = vadd.f32 %v3339_v31, %v3215_v62 }
 0x5fa   : > { %v3898_v47 = vsel %vm3826_vm13, %v3790_v4, %v3862_v42  ;;  %v3465_v29 = vadd.f32 %v3464_v37, %v3340_v0 }
 0x5fb   : > { %3934 = vst [vmem:[%s5959_s28 + $0xc8] sm:$0xff] %v3898_v47  ;;  %v3699_v10 = vpop.f32.mrf.mxu1  ;;  %v3467_v47 = vpop.f32.mrf.mxu3 }
 0x5fc   : > { %v3700_v28 = vadd.f32 %v3699_v10, %v3575_v6  ;;  %v6259_v6 = vld [vmem:[#allocation9_spill] sm:$0xff]  ;;  %v3590_v33 = vadd.f32 %v3589_v2, %v3465_v29 }
 0x5fd   : > { %v3218_v13 = vadd.f32 %v5946_v24, %v6259_v6 }
 0x5fe   : > { %v3791_v12 = vadd.f32 %v3755_v56, %v3700_v28  ;;  %v3592_v10 = vpop.f32.mrf.mxu0 }
 0x5ff   : > { %v3343_v56 = vadd.f32 %v3342_v53, %v3218_v13 }
 0x600   : > { %vm3827_vm14 = vcmp.ge.f32.partialorder %v3791_v12, 0.0  ;;  %v3863_v46 = vmul.f32 0.01, %v3791_v12 }
 0x601   : > { %v3468_v55 = vadd.f32 %v3467_v47, %v3343_v56 }
 0x602   : > { %v3899_v19 = vsel %vm3827_vm14, %v3791_v12, %v3863_v46  ;;  %v3345_v12 = vpop.f32.mrf.mxu2 }
 0x603   : > { %3935 = vst [vmem:[%s5959_s28 + $0xd0] sm:$0xff] %v3899_v19  ;;  %v3702_v48 = vpop.f32.mrf.mxu1  ;;  %v6260_v19 = vld [vmem:[#allocation10_spill] sm:$0xff] }
 0x604   : > { %v3703_v20 = vadd.f32 %v3702_v48, %v3578_v61  ;;  %v3221_v61 = vadd.f32 %v5948_v7, %v6260_v19  ;;  %v3470_v48 = vpop.f32.mrf.mxu3 }
 0x606   : > { %v3792_v22 = vadd.f32 %v3756_v8, %v3703_v20  ;;  %v3346_v8 = vadd.f32 %v3345_v12, %v3221_v61  ;;  %v3593_v20 = vadd.f32 %v3592_v10, %v3468_v55  ;;  %v3595_v30 = vpop.f32.mrf.mxu0 }
 0x608   : > { %vm3828_vm15 = vcmp.ge.f32.partialorder %v3792_v22, 0.0  ;;  %v3864_v35 = vmul.f32 0.01, %v3792_v22 }
 0x60a   : > { %v3900_v57 = vsel %vm3828_vm15, %v3792_v22, %v3864_v35  ;;  %v3348_v21 = vpop.f32.mrf.mxu2  ;;  %v3471_v35 = vadd.f32 %v3470_v48, %v3346_v8 }
 0x60b   : > { %3936 = vst [vmem:[%s5959_s28 + $0xd8] sm:$0xff] %v3900_v57  ;;  %v3705_v18 = vpop.f32.mrf.mxu1  ;;  %v6261_v57 = vld [vmem:[#allocation19_spill] sm:$0xff] }
 0x60c   : > { %v3706_v14 = vadd.f32 %v3705_v18, %v3581_v32  ;;  %v3224_v32 = vadd.f32 %v6261_v57, %v5866_v11  ;;  %v3473_v44 = vpop.f32.mrf.mxu3 }
 0x60e   : > { %v3793_v63 = vadd.f32 %v3757_v34, %v3706_v14  ;;  %v3349_v18 = vadd.f32 %v3348_v21, %v3224_v32  ;;  %v3596_v14 = vadd.f32 %v3595_v30, %v3471_v35  ;;  %v3598_v31 = vpop.f32.mrf.mxu0 }
 0x610   : > { %vm3829_vm0 = vcmp.ge.f32.partialorder %v3793_v63, 0.0  ;;  %v3865_v17 = vmul.f32 0.01, %v3793_v63  ;;  %v3474_v59 = vadd.f32 %v3473_v44, %v3349_v18 }
 0x612   : > { %v3901_v39 = vsel %vm3829_vm0, %v3793_v63, %v3865_v17  ;;  %v3351_v51 = vpop.f32.mrf.mxu2 }
 0x613   : > { %3937 = vst [vmem:[%s5959_s28 + $0xe0] sm:$0xff] %v3901_v39  ;;  %v3708_v1 = vpop.f32.mrf.mxu1  ;;  %v6262_v39 = vld [vmem:[#allocation18_spill] sm:$0xff] }
 0x614   : > { %v3709_v9 = vadd.f32 %v3708_v1, %v3584_v45  ;;  %v6263_v45 = vld [vmem:[#allocation20_spill] sm:$0xff]  ;;  %v3476_v50 = vpop.f32.mrf.mxu3 }
 0x615   : > { %v3227_v11 = vadd.f32 %v6263_v45, %v6262_v39 }
 0x616   : > { %v3794_v5 = vadd.f32 %v3758_v3, %v3709_v9  ;;  %v3599_v3 = vadd.f32 %v3598_v31, %v3474_v59  ;;  %v3601_v53 = vpop.f32.mrf.mxu0 }
 0x617   : > { %v3352_v9 = vadd.f32 %v3351_v51, %v3227_v11 }
 0x618   : > { %vm3830_vm1 = vcmp.ge.f32.partialorder %v3794_v5, 0.0  ;;  %v3866_v26 = vmul.f32 0.01, %v3794_v5 }
 0x619   : > { %v3477_v2 = vadd.f32 %v3476_v50, %v3352_v9 }
 0x61a   : > { %v3902_v4 = vsel %vm3830_vm1, %v3794_v5, %v3866_v26 }
 0x61b   : > { %3938 = vst [vmem:[%s5959_s28 + $0xe8] sm:$0xff] %v3902_v4  ;;  %v3711_v52 = vpop.f32.mrf.mxu1  ;;  %v3602_v4 = vadd.f32 %v3601_v53, %v3477_v2 }
 0x61c   : > { %v3712_v42 = vadd.f32 %v3711_v52, %v3587_v60 }
 0x61e   : > { %v3795_v43 = vadd.f32 %v3759_v25, %v3712_v42  ;;  %v3764_v25 = vld [vmem:[%s4467_s18 + $0x12b] sm:$0xff]  ;;  %s4223_s18 = scalar_lea.hbm %s4222_s15, 288 }
 0x61f   : > { %p4224_p0 = scmp.ne.s32.totalorder %s4222_s15, %s4223_s18  ;;  %p4229_p4 = scmp.lt.s32.totalorder %s4227_s19, %s4223_s18 }
 0x620   : > { %vm3831_vm2 = vcmp.ge.f32.partialorder %v3795_v43, 0.0  ;;  %v3867_v15 = vmul.f32 0.01, %v3795_v43 }
 0x621   : > { %p4225_p1 = pnand %p4224_p0, %p4355_p5  ;;  %p4230_p7 = por %p4229_p4, %p4228_p3 }
 0x622   : > { %v3903_v28 = vsel %vm3831_vm2, %v3795_v43, %v3867_v15 }
 0x623   : > { %3939 = vst [vmem:[%s5959_s28 + $0xf0] sm:$0xff] %v3903_v28  ;;  %v3714_v40 = vpop.f32.mrf.mxu1  ;;  %p4226_p2 = pneg %p4225_p1 }
 0x624   : > { %v3715_v46 = vadd.f32 %v3714_v40, %v3590_v33 }
 0x625   : > { %p4231_p8 = pnand %p4230_p7, %p4226_p2 }
 0x626   : > { %v3796_v41 = vadd.f32 %v3760_v38, %v3715_v46 }
 0x628   : > { %vm3832_vm3 = vcmp.ge.f32.partialorder %v3796_v41, 0.0  ;;  %v3868_v24 = vmul.f32 0.01, %v3796_v41 }
 0x62a   : > { %v3904_v23 = vsel %vm3832_vm3, %v3796_v41, %v3868_v24 }
 0x62b   : > { %3940 = vst [vmem:[%s5959_s28 + $0xf8] sm:$0xff] %v3904_v23  ;;  %v3717_v49 = vpop.f32.mrf.mxu1 }
 0x62c   : > { %v3718_v22 = vadd.f32 %v3717_v49, %v3593_v20 }
 0x62e   : > { %v3797_v58 = vadd.f32 %v3761_v16, %v3718_v22 }
 0x630   : > { %vm3833_vm4 = vcmp.ge.f32.partialorder %v3797_v58, 0.0  ;;  %v3869_v7 = vmul.f32 0.01, %v3797_v58 }
 0x632   : > { %v3905_v34 = vsel %vm3833_vm4, %v3797_v58, %v3869_v7 }
 0x633   : > { %3941 = vst [vmem:[%s5959_s28 + $0x100] sm:$0xff] %v3905_v34  ;;  %v3720_v54 = vpop.f32.mrf.mxu1 }
 0x634   : > { %v3721_v63 = vadd.f32 %v3720_v54, %v3596_v14 }
 0x636   : > { %v3798_v17 = vadd.f32 %v3762_v36, %v3721_v63 }
 0x638   : > { %vm3834_vm5 = vcmp.ge.f32.partialorder %v3798_v17, 0.0  ;;  %v3870_v1 = vmul.f32 0.01, %v3798_v17 }
 0x63a   : > { %v3906_v37 = vsel %vm3834_vm5, %v3798_v17, %v3870_v1 }
 0x63b   : > { %3942 = vst [vmem:[%s5959_s28 + $0x108] sm:$0xff] %v3906_v37  ;;  %v3723_v5 = vpop.f32.mrf.mxu1 }
 0x63c   : > { %v3724_v62 = vadd.f32 %v3723_v5, %v3599_v3 }
 0x63e   : > { %v3799_v26 = vadd.f32 %v3763_v27, %v3724_v62 }
 0x640   : > { %vm3835_vm6 = vcmp.ge.f32.partialorder %v3799_v26, 0.0  ;;  %v3871_v0 = vmul.f32 0.01, %v3799_v26 }
 0x642   : > { %v3907_v60 = vsel %vm3835_vm6, %v3799_v26, %v3871_v0 }
 0x643   : > { %3943 = vst [vmem:[%s5959_s28 + $0x110] sm:$0xff] %v3907_v60  ;;  %v3726_v52 = vpop.f32.mrf.mxu1 }
 0x644   : > { %v3727_v42 = vadd.f32 %v3726_v52, %v3602_v4 }
 0x646   : > { %v3800_v29 = vadd.f32 %v3764_v25, %v3727_v42 }
 0x648   : > { %vm3836_vm7 = vcmp.ge.f32.partialorder %v3800_v29, 0.0  ;;  %v3872_v43 = vmul.f32 0.01, %v3800_v29 }
 0x64a   : > { %v3908_v47 = vsel %vm3836_vm7, %v3800_v29, %v3872_v43 }
 0x64b   : > { %3944 = vst [vmem:[%s5959_s28 + $0x118] sm:$0xff] %v3908_v47 }
 0x64c   : > { %4234 = shalt.err (!%p4231_p8)
}
 0x64d   : > { %s4280_s26 = smov 128   ;;  %s4281_s28 = smov 8  }
 0x64e   : > { %4084 = dma.vmem_to_hbm [thread:$0]  (%p4355_p5), %s3959_s14, 4608, %s3961_s13, %s3946_s25, %s4280_s26, %s4280_s26, %s4281_s28  }
 0x64f PF: > { %p4096_p9 = scmp.ge.s32.totalorder %s4273_s24, 2  ;;  %s3975_s9 = sand.u32 1, %s4261_s21  }
 0x650   : > { %s3976_s10 = scalar_lea.sflag [#allocation5], %s3975_s9 }
 0x651   : > { %p4091_p10 = pnand %p4096_p9, %p4359_p6 }
 0x653   : > { %p4092_p11 = pneg %p4091_p10 }
 0x655   : > { %4256 = dma.done.wait (%p4092_p11), %s3976_s10, 4608  }
 0x656   : > { %4258 = vsyncadd (%p4092_p11), %s3976_s10, 4294962688  ;;  %p17_p12 = scmp.ge.s32.totalorder %s4342_s27, 4   ;;  %s6264_s21 = smov %s4265_s22 }
 0x657   : > { %s6265_s22 = smov %s4269_s23  ;;  %s6266_s23 = smov %s4353_s30 }
 0x658   : > { %s6267_s24 = smov %s4342_s27  ;;  %19 = sbr.rel (!%p17_p12) target bundleno = 4 (0x4), region = 84 }
 0x65d   :  { %3982 = vsyncpa [#allocation4], 1 }
 0x65e   :  { %3984 = vsyncpa [#allocation4 + $0x1], 1 }
 0x65f   :  { %3985 = vsyncpa [#allocation5], 1 }
 0x660   :  { %3987 = vsyncpa [#allocation5 + $0x1], 1 }

</bundles_post_ra>
